<compile_context>
chip_gen: v5e
topology: v5e:2x2
jax: 0.10.0
libtpu: 0.0.40
codegen_flags: <defaults>
</compile_context>

<pallas_src>
import jax
import jax.numpy as jnp
from jax.experimental import pallas as pl
from jax.experimental.pallas import tpu as pltpu


def _cnn_attention_kernel(x_ref, w1_ref, b1_ref, w2_ref, b2_ref,
                          wfc_ref, bfc_ref, out_ref):
    """One batch tile: fused attention-MLP + feature re-weighting + fc."""
    x = x_ref[...].astype(jnp.float32)                          # [TB, D]

    # attention[0:2]: Linear(D, H) + Tanh   (MXU matmul, EUP tanh)
    h = jnp.tanh(
        jnp.dot(x, w1_ref[...], preferred_element_type=jnp.float32)
        + b1_ref[...]                                           # [1, H] broadcast
    )                                                           # [TB, H]

    # attention[2]: Linear(H, 1). W2 is passed pre-transposed as [1, H] so the
    # N=1 matmul becomes a broadcast-multiply + lane reduce (no lane-sparse MXU).
    a = jnp.sum(h * w2_ref[...], axis=-1, keepdims=True) + b2_ref[...]   # [TB, 1]

    # attention[3]: Softmax(dim=1) over the size-1 axis (faithful to PyTorch:
    # softmax of a single element == 1.0). Numerically stable form anyway.
    a = a - jnp.max(a, axis=-1, keepdims=True)
    e = jnp.exp(a)
    attn = e / jnp.sum(e, axis=-1, keepdims=True)               # [TB, 1] (== 1.0)

    attended = x * attn                                         # [TB, D]

    # fc: Linear(D, OUT)
    out = (jnp.dot(attended, wfc_ref[...], preferred_element_type=jnp.float32)
           + bfc_ref[...])                                      # [TB, OUT]
    out_ref[...] = out.astype(out_ref.dtype)


def cnn_attention_head(features, w1, b1, w2, b2, wfc, bfc, *, tile_b=128):
    """features: [B, 2048] float (resnet50 pooled features) -> [B, 128] f32."""
    B, D = features.shape
    H = w1.shape[1]
    OUT = wfc.shape[1]

    # Batch tile: multiple of 8 (sublane rule), capped so the x tile stays small
    # next to the resident weights (W1 ~4 MiB + Wfc ~1 MiB, double-buffered
    # ~10 MiB total) — comfortably inside 32 MiB scoped VMEM on v5e/v6e/v7x.
    tb = max(8, min(int(tile_b), B))
    tb = (tb // 8) * 8
    Bp = pl.cdiv(B, tb) * tb
    if Bp != B:
        features = jnp.pad(features, ((0, Bp - B), (0, 0)))

    # Lane-friendly 2-D parameter layouts (biases as [1, X]; W2 pre-transposed).
    b1_2d = b1.reshape(1, H).astype(jnp.float32)
    w2_t = w2.reshape(H, 1).T.astype(jnp.float32)               # [1, H]
    b2_2d = b2.reshape(1, 1).astype(jnp.float32)
    bfc_2d = bfc.reshape(1, OUT).astype(jnp.float32)

    grid = (Bp // tb,)
    cost = pl.CostEstimate(
        flops=2 * Bp * D * H + 3 * Bp * H + 2 * Bp * D * OUT + 2 * Bp * D,
        transcendentals=Bp * H + Bp,
        bytes_accessed=4 * (Bp * D + D * H + H + H + 1 + D * OUT + OUT + Bp * OUT),
    )

    out = pl.pallas_call(
        _cnn_attention_kernel,
        out_shape=jax.ShapeDtypeStruct((Bp, OUT), jnp.float32),
        grid=grid,
        in_specs=[
            pl.BlockSpec((tb, D), lambda i: (i, 0)),      # features, tiled over batch
            pl.BlockSpec((D, H), lambda i: (0, 0)),       # W1  (VMEM-resident)
            pl.BlockSpec((1, H), lambda i: (0, 0)),       # b1
            pl.BlockSpec((1, H), lambda i: (0, 0)),       # W2^T
            pl.BlockSpec((1, 1), lambda i: (0, 0)),       # b2
            pl.BlockSpec((D, OUT), lambda i: (0, 0)),     # Wfc (VMEM-resident)
            pl.BlockSpec((1, OUT), lambda i: (0, 0)),     # bfc
        ],
        out_specs=pl.BlockSpec((tb, OUT), lambda i: (i, 0)),    # lane-dense (OUT=128)
        compiler_params=pltpu.CompilerParams(
            dimension_semantics=("parallel",),
            vmem_limit_bytes=32 * 1024 * 1024,
        ),
        cost_estimate=cost,
    )(features, w1.astype(jnp.float32), b1_2d, w2_t, b2_2d,
      wfc.astype(jnp.float32), bfc_2d)
    return out[:B]


def _cnn_attention_ref(x, w1, b1, w2, b2, wfc, bfc):
    # Pure-JAX reference (mirrors the PyTorch forward on top of resnet features).
    hp = jax.lax.Precision.HIGHEST
    h = jnp.tanh(jnp.dot(x, w1, precision=hp) + b1)
    a = jnp.dot(h, w2, precision=hp) + b2                       # [B, 1]
    attn = jax.nn.softmax(a, axis=1)                            # size-1 axis -> ones
    attended = x * attn
    return jnp.dot(attended, wfc, precision=hp) + bfc


if __name__ == "__main__":
    key = jax.random.PRNGKey(0)
    ks = jax.random.split(key, 7)

    # Head dims are fixed by the module: 2048 -> 512 -> 1 (attention), 2048 -> 128 (fc).
    B, D, H, OUT = 16, 2048, 512, 128

    # TODO(synk): the resnet50 backbone (self.cnn) has no clean single-kernel
    # Pallas equivalent; the kernel consumes its pooled 2048-d features directly.
    features = jax.random.normal(ks[0], (B, D), dtype=jnp.float32)
    w1 = jax.random.normal(ks[1], (D, H), dtype=jnp.float32) * 0.02
    b1 = jax.random.normal(ks[2], (H,), dtype=jnp.float32) * 0.02
    w2 = jax.random.normal(ks[3], (H, 1), dtype=jnp.float32) * 0.02
    b2 = jax.random.normal(ks[4], (1,), dtype=jnp.float32) * 0.02
    wfc = jax.random.normal(ks[5], (D, OUT), dtype=jnp.float32) * 0.02
    bfc = jax.random.normal(ks[6], (OUT,), dtype=jnp.float32) * 0.02

    out = cnn_attention_head(features, w1, b1, w2, b2, wfc, bfc, tile_b=8)
    out = jax.block_until_ready(out)

    ref = _cnn_attention_ref(features, w1, b1, w2, b2, wfc, bfc)
    assert out.shape == (B, OUT), out.shape
    assert jnp.allclose(out, ref, atol=2e-2, rtol=2e-2), (
        "max abs err", float(jnp.max(jnp.abs(out - ref))))

    print("KERNEL_OK")
</pallas_src>

<mosaic_0001>
module attributes {stable_mosaic.version = 11 : i64} {
  func.func @_cnn_attention_kernel(%arg0: i32, %arg1: memref<8x2048xf32, #tpu.memory_space<vmem>>, %arg2: memref<2048x512xf32, #tpu.memory_space<vmem>>, %arg3: memref<1x512xf32, #tpu.memory_space<vmem>>, %arg4: memref<1x512xf32, #tpu.memory_space<vmem>>, %arg5: memref<1x1xf32, #tpu.memory_space<vmem>>, %arg6: memref<2048x128xf32, #tpu.memory_space<vmem>>, %arg7: memref<1x128xf32, #tpu.memory_space<vmem>>, %arg8: memref<8x128xf32, #tpu.memory_space<vmem>>) attributes {dimension_semantics = [#tpu.dimension_semantics<parallel>], iteration_bounds = array<i64: 2>, scalar_prefetch = 0 : i64, scratch_operands = 0 : i64, tpu.core_type = #tpu.core_type<tc>, window_params = [{transform_indices = @transform_0, window_bounds = array<i64: 8, 2048>}, {pipeline_mode = #tpu.pipeline_mode<synchronous>, transform_indices = @transform_1, window_bounds = array<i64: 2048, 512>}, {pipeline_mode = #tpu.pipeline_mode<synchronous>, transform_indices = @transform_2, window_bounds = array<i64: 1, 512>}, {pipeline_mode = #tpu.pipeline_mode<synchronous>, transform_indices = @transform_3, window_bounds = array<i64: 1, 512>}, {pipeline_mode = #tpu.pipeline_mode<synchronous>, transform_indices = @transform_4, window_bounds = array<i64: 1, 1>}, {pipeline_mode = #tpu.pipeline_mode<synchronous>, transform_indices = @transform_5, window_bounds = array<i64: 2048, 128>}, {pipeline_mode = #tpu.pipeline_mode<synchronous>, transform_indices = @transform_6, window_bounds = array<i64: 1, 128>}, {transform_indices = @transform_7, window_bounds = array<i64: 8, 128>}]} {
    %c0 = arith.constant 0 : index
    %c0_0 = arith.constant 0 : index
    %0 = vector.load %arg1[%c0, %c0_0] : memref<8x2048xf32, #tpu.memory_space<vmem>>, vector<8x2048xf32>
    %c0_1 = arith.constant 0 : index
    %c0_2 = arith.constant 0 : index
    %1 = vector.load %arg2[%c0_1, %c0_2] : memref<2048x512xf32, #tpu.memory_space<vmem>>, vector<2048x512xf32>
    %cst = arith.constant dense<0.000000e+00> : vector<8x512xf32>
    %2 = tpu.matmul %0, %1, %cst {dimension_numbers = #tpu.dot_dimension_numbers<[1], [0], [0], [1], [0, 0, 1, 1], [], []>} : vector<8x2048xf32>, vector<2048x512xf32>, vector<8x512xf32> -> vector<8x512xf32>
    %c0_3 = arith.constant 0 : index
    %c0_4 = arith.constant 0 : index
    %3 = vector.load %arg3[%c0_3, %c0_4] : memref<1x512xf32, #tpu.memory_space<vmem>>, vector<1x512xf32>
    %4 = vector.broadcast %3 : vector<1x512xf32> to vector<8x512xf32>
    %5 = arith.addf %2, %4 : vector<8x512xf32>
    %6 = math.tanh %5 : vector<8x512xf32>
    %c0_5 = arith.constant 0 : index
    %c0_6 = arith.constant 0 : index
    %7 = vector.load %arg4[%c0_5, %c0_6] : memref<1x512xf32, #tpu.memory_space<vmem>>, vector<1x512xf32>
    %8 = vector.broadcast %7 : vector<1x512xf32> to vector<8x512xf32>
    %9 = arith.mulf %6, %8 : vector<8x512xf32>
    %cst_7 = arith.constant dense<0.000000e+00> : vector<8xf32>
    %10 = vector.multi_reduction <add>, %9, %cst_7 [1] : vector<8x512xf32> to vector<8xf32>
    %11 = vector.shape_cast %10 : vector<8xf32> to vector<8x1xf32>
    %c0_8 = arith.constant 0 : index
    %c0_9 = arith.constant 0 : index
    %12 = vector.load %arg5[%c0_8, %c0_9] : memref<1x1xf32, #tpu.memory_space<vmem>>, vector<1x1xf32>
    %13 = vector.broadcast %12 : vector<1x1xf32> to vector<8x1xf32>
    %14 = arith.addf %11, %13 : vector<8x1xf32>
    %cst_10 = arith.constant dense<0xFF800000> : vector<8xf32>
    %15 = vector.multi_reduction <maximumf>, %14, %cst_10 [1] : vector<8x1xf32> to vector<8xf32>
    %16 = vector.shape_cast %15 : vector<8xf32> to vector<8x1xf32>
    %17 = arith.subf %14, %16 : vector<8x1xf32>
    %18 = math.exp %17 : vector<8x1xf32>
    %cst_11 = arith.constant dense<0.000000e+00> : vector<8xf32>
    %19 = vector.multi_reduction <add>, %18, %cst_11 [1] : vector<8x1xf32> to vector<8xf32>
    %20 = vector.shape_cast %19 : vector<8xf32> to vector<8x1xf32>
    %21 = arith.divf %18, %20 : vector<8x1xf32>
    %22 = vector.broadcast %21 : vector<8x1xf32> to vector<8x2048xf32>
    %23 = arith.mulf %0, %22 : vector<8x2048xf32>
    %c0_12 = arith.constant 0 : index
    %c0_13 = arith.constant 0 : index
    %24 = vector.load %arg6[%c0_12, %c0_13] : memref<2048x128xf32, #tpu.memory_space<vmem>>, vector<2048x128xf32>
    %cst_14 = arith.constant dense<0.000000e+00> : vector<8x128xf32>
    %25 = tpu.matmul %23, %24, %cst_14 {dimension_numbers = #tpu.dot_dimension_numbers<[1], [0], [0], [1], [0, 0, 1, 1], [], []>} : vector<8x2048xf32>, vector<2048x128xf32>, vector<8x128xf32> -> vector<8x128xf32>
    %c0_15 = arith.constant 0 : index
    %c0_16 = arith.constant 0 : index
    %26 = vector.load %arg7[%c0_15, %c0_16] : memref<1x128xf32, #tpu.memory_space<vmem>>, vector<1x128xf32>
    %27 = vector.broadcast %26 : vector<1x128xf32> to vector<8x128xf32>
    %28 = arith.addf %25, %27 : vector<8x128xf32>
    %c0_17 = arith.constant 0 : index
    %c0_18 = arith.constant 0 : index
    %29 = vector.load %arg8[%c0_17, %c0_18] : memref<8x128xf32, #tpu.memory_space<vmem>>, vector<8x128xf32>
    tpu.vector_store %arg8[%c0_17, %c0_18], %28 {strides = array<i32>} : memref<8x128xf32, #tpu.memory_space<vmem>>, vector<8x128xf32>,
    return
  }
  func.func @transform_0(%arg0: i32) -> (i32, i32) {
    %c0_i32 = arith.constant 0 : i32
    %c0_i32_0 = arith.constant 0 : i32
    return %arg0, %c0_i32 : i32, i32
  }
  func.func @transform_1(%arg0: i32) -> (i32, i32) {
    %c0_i32 = arith.constant 0 : i32
    %c0_i32_0 = arith.constant 0 : i32
    %c0_i32_1 = arith.constant 0 : i32
    return %c0_i32, %c0_i32_0 : i32, i32
  }
  func.func @transform_2(%arg0: i32) -> (i32, i32) {
    %c0_i32 = arith.constant 0 : i32
    %c0_i32_0 = arith.constant 0 : i32
    %c0_i32_1 = arith.constant 0 : i32
    return %c0_i32, %c0_i32_0 : i32, i32
  }
  func.func @transform_3(%arg0: i32) -> (i32, i32) {
    %c0_i32 = arith.constant 0 : i32
    %c0_i32_0 = arith.constant 0 : i32
    %c0_i32_1 = arith.constant 0 : i32
    return %c0_i32, %c0_i32_0 : i32, i32
  }
  func.func @transform_4(%arg0: i32) -> (i32, i32) {
    %c0_i32 = arith.constant 0 : i32
    %c0_i32_0 = arith.constant 0 : i32
    %c0_i32_1 = arith.constant 0 : i32
    return %c0_i32, %c0_i32_0 : i32, i32
  }
  func.func @transform_5(%arg0: i32) -> (i32, i32) {
    %c0_i32 = arith.constant 0 : i32
    %c0_i32_0 = arith.constant 0 : i32
    %c0_i32_1 = arith.constant 0 : i32
    return %c0_i32, %c0_i32_0 : i32, i32
  }
  func.func @transform_6(%arg0: i32) -> (i32, i32) {
    %c0_i32 = arith.constant 0 : i32
    %c0_i32_0 = arith.constant 0 : i32
    %c0_i32_1 = arith.constant 0 : i32
    return %c0_i32, %c0_i32_0 : i32, i32
  }
  func.func @transform_7(%arg0: i32) -> (i32, i32) {
    %c0_i32 = arith.constant 0 : i32
    %c0_i32_0 = arith.constant 0 : i32
    return %arg0, %c0_i32 : i32, i32
  }
}

</mosaic_0001>

<bundles_post_ra>
// kernel: tpu_custom_call.1
= control target key start
LH: loop header
LB: loop body
LE: loop exit
PB: predicated region body
PF: predicated region fallthrough
CT: control target
= control target key end

     0   :  { %s4318_s0 = inlined_call_operand.hbm [shape: f32[16,2048], index: 0, kind: input, shape index: {}]   ;;  %s4319_s1 = inlined_call_operand.hbm [shape: f32[2048,512], index: 1, kind: input, shape index: {}]   ;;  %s4320_s2 = inlined_call_operand.hbm [shape: f32[1,512], index: 2, kind: input, shape index: {}]   ;;  %s4321_s3 = inlined_call_operand.hbm [shape: f32[1,512], index: 3, kind: input, shape index: {}]   ;;  %s4322_s4 = inlined_call_operand.<no memory space> [shape: f32[1,1], index: 4, kind: input, shape index: {}]   ;;  %s4323_s5 = inlined_call_operand.hbm [shape: f32[2048,128], index: 5, kind: input, shape index: {}]   ;;  %s4324_s6 = inlined_call_operand.hbm [shape: f32[1,128], index: 6, kind: input, shape index: {}]   ;;  %s4325_s7 = inlined_call_operand.hbm [shape: f32[16,128], index: 7, kind: output, shape index: {}]  }
   0x1   :  { %v12_v0 = vstv %s4322_s4 }
   0x2   :  { %13 = vst [vmem:[#allocation2] sm:$0x1] %v12_v0 }
   0x3   :  { %14 = vsyncpa [#allocation4], 0 }
   0x4   :  { %16 = vsyncpa [#allocation4 + $0x1], 0 }
   0x5   :  { %17 = vsyncpa [#allocation7], 0 }
   0x6   :  { %18 = vsyncpa [#allocation10], 0 }
   0x7   :  { %19 = vsyncpa [#allocation13], 0 }
   0x8   :  { %20 = vsyncpa [#allocation5], 0 }
   0x9   :  { %22 = vsyncpa [#allocation5 + $0x1], 0  ;;  %s4008_s26 = smov 0   ;;  %s4010_s27 = smov 0  }
   0xa   :  { %s4012_s28 = smov 0   ;;  %s4014_s29 = smov 0  }
   0xb LB: > { %s222_s8 = sshll.u32 %s4319_s1, 4  ;;  %s4032_s9 = sadd.s32 4294967295, %s3953_s29   ;;  %s3953_s29 = sphi %s4014_s29, %s4336_s29   ;;  %s3949_s28 = sphi %s4012_s28, %s4335_s28   ;;  %s3945_s27 = sphi %s4010_s27, %s4334_s27   ;;  %s3941_s26 = sphi %s4008_s26, %s4333_s26   ;;  %s223_s8 = int_to_ptr.hbm [resolvable:$true] %s222_s8 }
   0xc   : > { %p3490_p0 = scmp.ge.s32.totalorder %s3953_s29, 1  ;;  %p49_p1 = scmp.eq.s32.totalorder %s4032_s9, 0 }
   0xd   : > { %p211_p2 = scmp.lt.s32.totalorder %s3953_s29, 3  ;;  %s3955_s11 = smov [#allocation6]  }
   0xe   : > { %s224_s12 = sshll.u32 %s3955_s11, 4  ;;  %s249_s15 = sshll.u32 %s4321_s3, 4  ;;  %s225_s12 = int_to_ptr.vmem [resolvable:$true] %s224_s12  ;;  %s250_s15 = int_to_ptr.hbm [resolvable:$true] %s249_s15 }
   0xf   : > { %p4037_p3 = pnand %p3490_p0, %p211_p2  ;;  %s237_s19 = sshll.u32 %s4320_s2, 4  ;;  %s238_s19 = int_to_ptr.hbm [resolvable:$true] %s237_s19 }
  0x10   : > { %s3956_s20 = smov [#allocation9]   ;;  %s3957_s22 = smov 512  }
  0x11   : > { %p3537_p4 = pneg %p4037_p3  ;;  %s251_s21 = sshll.u32 %s3956_s20, 4  ;;  %s252_s21 = int_to_ptr.vmem [resolvable:$true] %s251_s21 }
  0x12   : > { %s3958_s23 = smov 32   ;;  %s263_s4 = sshll.u32 %s4323_s5, 4  ;;  %s264_s4 = int_to_ptr.hbm [resolvable:$true] %s263_s4 }
  0x13   : > { %p4049_p6 = pnand %p3537_p4, %p49_p1  ;;  %s3959_s30 = smov [#allocation8]  }
  0x14   : > { %s239_s11 = sshll.u32 %s3959_s30, 4  ;;  %s3961_s13 = smov 128   ;;  %s240_s11 = int_to_ptr.vmem [resolvable:$true] %s239_s11 }
  0x15   : > { %3540 = dma.hbm_to_vmem [thread:$0]  (!%p4049_p6), %s223_s8, 131072, %s225_s12, [#allocation7], %s3957_s22, %s3957_s22, %s3958_s23  }
  0x16   : > { %3546 = dma.hbm_to_vmem [thread:$0]  (!%p4049_p6), %s250_s15, 64, %s252_s21, [#allocation10]  }
  0x17   : > { %3543 = dma.hbm_to_vmem [thread:$0]  (!%p4049_p6), %s238_s19, 64, %s240_s11, [#allocation7]  }
  0x18   : > { %s3960_s8 = smov [#allocation11]   ;;  %s3962_s14 = smov 8  }
  0x19   : > { %s265_s12 = sshll.u32 %s3960_s8, 4  ;;  %s278_s18 = sshll.u32 %s4324_s6, 4  ;;  %s266_s12 = int_to_ptr.vmem [resolvable:$true] %s265_s12  ;;  %s279_s18 = int_to_ptr.hbm [resolvable:$true] %s278_s18 }
  0x1a   : > { %3549 = dma.hbm_to_vmem [thread:$0]  (!%p4049_p6), %s264_s4, 32768, %s266_s12, [#allocation10], %s3961_s13, %s3961_s13, %s3962_s14  }
  0x1b   : > { %s3963_s19 = smov [#allocation12]   ;;  %s3489_s21 = sadd.s32 4294967294, %s3953_s29  }
  0x1c   : > { %s280_s20 = sshll.u32 %s3963_s19, 4  ;;  %s4074_s22 = sadd.s32 1, %s3953_s29   ;;  %s281_s20 = int_to_ptr.vmem [resolvable:$true] %s280_s20 }
  0x1d   : > { %3552 = dma.hbm_to_vmem [thread:$0]  (!%p4049_p6), %s279_s18, 16, %s281_s20, [#allocation13]  }
  0x1e   : > { %s35_s23 = sadd.s32 1, %s3949_s28  ;;  %s32_s24 = ssub.s32 %s3953_s29, %s4074_s22 }
  0x1f   : > { %p42_p7 = scmp.ne.s32.totalorder %s3949_s28, %s3945_s27  ;;  %p33_p8 = scmp.eq.s32.totalorder %s32_s24, 0 }
  0x20   : > { %p43_p9 = scmp.eq.s32.totalorder %s3953_s29, 0  ;;  %p48_p10 = scmp.ne.s32.totalorder %s3945_s27, %s3941_s26 }
  0x21   : > { %p198_p11 = scmp.eq.s32.totalorder %s4032_s9, 1  ;;  %p204_p0 = scmp.eq.s32.totalorder %s3489_s21, 1 }
  0x22   : > { %s4086_s25 = scalar_select %p33_p8, %s3949_s28, %s35_s23  }
  0x23   : > { %p4090_p12 = por %p49_p1, %p48_p10  ;;  %p4094_p13 = por %p198_p11, %p42_p7 }
  0x24   : > { %p44_p2 = por %p43_p9, %p42_p7  ;;  %s291_s30 = sand.u32 1, %s3949_s28  }
  0x25   : > { %p4099_p4 = por %p204_p0, %p48_p10  ;;  %p3566_p6 = scmp.lt.s32.totalorder %s3953_s29, 2 }
  0x26   : > { %s3497_s8 = sshll.u32 %s291_s30, 7  ;;  %s3512_s12 = sshll.u32 %s3953_s29, 7 }
  0x27   : > { %s300_s15 = scalar_lea.hbm %s4318_s0, %s3512_s12  ;;  %s295_s18 = scalar_lea.vmem [#allocation3], %s3497_s8 }
  0x28   : > { %s302_s17 = sshll.u32 %s300_s15, 4  ;;  %s304_s19 = sshll.u32 %s295_s18, 4  ;;  %s303_s17 = int_to_ptr.hbm [resolvable:$true] %s302_s17  ;;  %s305_s19 = int_to_ptr.vmem [resolvable:$true] %s304_s19 }
  0x29   : > { %p4108_p8 = pnand %p3566_p6, %p44_p2  ;;  %s292_s21 = scalar_lea.sflag [#allocation4], %s291_s30 }
  0x2a   : > { %s3845_s23 = sshra.s32 %s303_s17, 4  ;;  %s3852_s8 = scalar_lea.hbm %s4318_s0, 256  ;;  %s3846_s23 = int_to_ptr.hbm [resolvable:$true] %s3845_s23 }
  0x2b   : > { %s3847_s24 = scalar_lea.hbm %s3846_s23, 128  ;;  %p3849_p9 = pneg %p4108_p8 }
  0x2c   : > { %p3848_p7 = scmp.ne.s32.totalorder %s3846_s23, %s3847_s24  ;;  %p3853_p0 = scmp.lt.s32.totalorder %s3846_s23, %s4318_s0 }
  0x2d   : > { %p3854_p2 = scmp.lt.s32.totalorder %s3852_s8, %s3847_s24 }
  0x2e   : > { %p3850_p10 = pnand %p3849_p9, %p3848_p7 }
  0x2f   : > { %p3855_p6 = por %p3854_p2, %p3853_p0 }
  0x30   : > { %p3851_p11 = pneg %p3850_p10 }
  0x32   : > { %p3856_p5 = pnand %p3855_p6, %p3851_p11 }
  0x34   : > { %3859 = shalt.err (!%p3856_p5)
}
  0x35   : > { %3556 = dma.hbm_to_vmem [thread:$0]  (!%p4108_p8), %s303_s17, 2048, %s305_s19, %s292_s21  }
  0x36   : > { %313 = sbr.rel (%p4037_p3) target bundleno = 1548 (0x60c), region = 48  ;;  %s4125_s30 = sand.u32 (!%p4037_p3), 1, %s3945_s27  }
  0x37   : > { %s3501_s18 = sshll.u32 (!%p4037_p3), %s4125_s30, 7  ;;  %s316_s12 = scalar_lea.sflag (!%p4037_p3), [#allocation4], %s4125_s30 }
  0x38   : > { %s4129_s13 = scalar_lea.vmem (!%p4037_p3), [#allocation3], %s3501_s18 }
  0x3b   : > { %3920 = dma.done.wait (%p4090_p12), %s316_s12, 2048  }
  0x3c   : > { %3922 = vsyncadd (%p4090_p12), %s316_s12, 4294965248 }
  0x3d   : > { %3924 = dma.done.wait (%p49_p1), [#allocation7], 131136  }
  0x3e   : > { %3926 = vsyncadd (%p49_p1), [#allocation7], 4294836160 }
  0x3f   : > { %3928 = dma.done.wait (%p49_p1), [#allocation10], 32832  }
  0x40   : > { %3930 = vsyncadd (%p49_p1), [#allocation10], 4294934464 }
  0x41   : > { %3932 = dma.done.wait (%p49_p1), [#allocation13], 16  }
  0x42   : > { %3934 = vsyncadd (%p49_p1), [#allocation13], 4294967280  ;;  %v452_v1 = vld [vmem:[#allocation6 + $0x1e0] sm:$0xff]  ;;  %s3507_s10 = sshll.u32 %s4125_s30, 3  ;;  %s3509_s16 = sshll.u32 %s4032_s9, 3 }
  0x43   : > { %v580_v2 = vld [vmem:[#allocation6 + $0x5e0] sm:$0xff]  ;;  %1426 = vmatpush.msra.mxu0 %v452_v1  ;;  %s3366_s20 = scalar_lea.hbm %s4325_s7, %s3509_s16  ;;  %s375_s21 = scalar_lea.vmem [#allocation14], %s3507_s10 }
  0x44   : > { %v448_v3 = vld [vmem:[#allocation6 + $0x1c0] sm:$0xff]  ;;  %1466 = vmatpush.msra.mxu2 %v580_v2  ;;  %s3368_s23 = sshll.u32 %s375_s21, 4  ;;  %s3370_s24 = sshll.u32 %s3366_s20, 4  ;;  %s3369_s23 = int_to_ptr.vmem [resolvable:$true] %s3368_s23  ;;  %s3371_s24 = int_to_ptr.hbm [resolvable:$true] %s3370_s24 }
  0x45   : > { %v516_v4 = vld [vmem:[#allocation6 + $0x3e0] sm:$0xff]  ;;  %1427 = vmatpush.msra.mxu0 %v448_v3  ;;  %s3356_s8 = scalar_lea.sflag [#allocation5], %s4125_s30  ;;  %s3889_s9 = sshra.s32 %s3371_s24, 4  ;;  %s3890_s9 = int_to_ptr.hbm [resolvable:$true] %s3889_s9 }
  0x46   : > { %v576_v5 = vld [vmem:[#allocation6 + $0x5c0] sm:$0xff]  ;;  %1446 = vmatpush.msra.mxu1 %v516_v4  ;;  %s3891_s14 = scalar_lea.hbm %s3890_s9, 8  ;;  %s3895_s12 = scalar_lea.hbm %s4325_s7, 16 }
  0x47   : > { %v644_v6 = vld [vmem:[#allocation6 + $0x7e0] sm:$0xff]  ;;  %1467 = vmatpush.msra.mxu2 %v576_v5  ;;  %p3892_p1 = scmp.ne.s32.totalorder %s3890_s9, %s3891_s14  ;;  %p3896_p12 = scmp.lt.s32.totalorder %s3890_s9, %s4325_s7 }
  0x48   : > { %1486 = vmatpush.msra.mxu3 %v644_v6  ;;  %v444_v7 = vld [vmem:[#allocation6 + $0x1a0] sm:$0xff]  ;;  %p3897_p8 = scmp.lt.s32.totalorder %s3895_s12, %s3891_s14 }
  0x49   : > { %v512_v8 = vld [vmem:[#allocation6 + $0x3c0] sm:$0xff]  ;;  %1428 = vmatpush.msra.mxu0 %v444_v7  ;;  %p3893_p3 = pnand %p3892_p1, %p4094_p13 }
  0x4a   : > { %v572_v9 = vld [vmem:[#allocation6 + $0x5a0] sm:$0xff]  ;;  %1447 = vmatpush.msra.mxu1 %v512_v8  ;;  %p3898_p7 = por %p3897_p8, %p3896_p12 }
  0x4b   : > { %v640_v10 = vld [vmem:[#allocation6 + $0x7c0] sm:$0xff]  ;;  %1468 = vmatpush.msra.mxu2 %v572_v9  ;;  %p3894_p5 = pneg %p3893_p3 }
  0x4c   : > { %v508_v11 = vld [vmem:[#allocation6 + $0x3a0] sm:$0xff]  ;;  %1487 = vmatpush.msra.mxu3 %v640_v10 }
  0x4d   : > { %v440_v12 = vld [vmem:[#allocation6 + $0x180] sm:$0xff]  ;;  %1448 = vmatpush.msra.mxu1 %v508_v11  ;;  %p3899_p9 = pnand %p3898_p7, %p3894_p5 }
  0x4e   : > { %v568_v13 = vld [vmem:[#allocation6 + $0x580] sm:$0xff]  ;;  %1429 = vmatpush.msra.mxu0 %v440_v12 }
  0x4f   : > { %v636_v14 = vld [vmem:[#allocation6 + $0x7a0] sm:$0xff]  ;;  %1469 = vmatpush.msra.mxu2 %v568_v13 }
  0x50   : > { %v504_v15 = vld [vmem:[#allocation6 + $0x380] sm:$0xff]  ;;  %1488 = vmatpush.msra.mxu3 %v636_v14 }
  0x51   : > { %v632_v16 = vld [vmem:[#allocation6 + $0x780] sm:$0xff]  ;;  %1449 = vmatpush.msra.mxu1 %v504_v15 }
  0x52   : > { %v436_v17 = vld [vmem:[#allocation6 + $0x160] sm:$0xff]  ;;  %1489 = vmatpush.msra.mxu3 %v632_v16 }
  0x53   : > { %v564_v18 = vld [vmem:[#allocation6 + $0x560] sm:$0xff]  ;;  %1430 = vmatpush.msra.mxu0 %v436_v17 }
  0x54   : > { %v500_v19 = vld [vmem:[#allocation6 + $0x360] sm:$0xff]  ;;  %1470 = vmatpush.msra.mxu2 %v564_v18 }
  0x55   : > { %v628_v20 = vld [vmem:[#allocation6 + $0x760] sm:$0xff]  ;;  %1450 = vmatpush.msra.mxu1 %v500_v19 }
  0x56   : > { %v432_v21 = vld [vmem:[#allocation6 + $0x140] sm:$0xff]  ;;  %1490 = vmatpush.msra.mxu3 %v628_v20 }
  0x57   : > { %v560_v22 = vld [vmem:[#allocation6 + $0x540] sm:$0xff]  ;;  %1431 = vmatpush.msra.mxu0 %v432_v21 }
  0x58   : > { %v496_v23 = vld [vmem:[#allocation6 + $0x340] sm:$0xff]  ;;  %1471 = vmatpush.msra.mxu2 %v560_v22 }
  0x59   : > { %v624_v24 = vld [vmem:[#allocation6 + $0x740] sm:$0xff]  ;;  %1451 = vmatpush.msra.mxu1 %v496_v23 }
  0x5a   : > { %v428_v25 = vld [vmem:[#allocation6 + $0x120] sm:$0xff]  ;;  %1491 = vmatpush.msra.mxu3 %v624_v24 }
  0x5b   : > { %v556_v26 = vld [vmem:[#allocation6 + $0x520] sm:$0xff]  ;;  %1432 = vmatpush.msra.mxu0 %v428_v25 }
  0x5c   : > { %v492_v27 = vld [vmem:[#allocation6 + $0x320] sm:$0xff]  ;;  %1472 = vmatpush.msra.mxu2 %v556_v26 }
  0x5d   : > { %v620_v28 = vld [vmem:[#allocation6 + $0x720] sm:$0xff]  ;;  %1452 = vmatpush.msra.mxu1 %v492_v27 }
  0x5e   : > { %v424_v29 = vld [vmem:[#allocation6 + $0x100] sm:$0xff]  ;;  %1492 = vmatpush.msra.mxu3 %v620_v28 }
  0x5f   : > { %v552_v30 = vld [vmem:[#allocation6 + $0x500] sm:$0xff]  ;;  %1433 = vmatpush.msra.mxu0 %v424_v29 }
  0x60   : > { %v488_v31 = vld [vmem:[#allocation6 + $0x300] sm:$0xff]  ;;  %1473 = vmatpush.msra.mxu2 %v552_v30 }
  0x61   : > { %v616_v32 = vld [vmem:[#allocation6 + $0x700] sm:$0xff]  ;;  %1453 = vmatpush.msra.mxu1 %v488_v31 }
  0x62   : > { %v420_v33 = vld [vmem:[#allocation6 + $0xe0] sm:$0xff]  ;;  %1493 = vmatpush.msra.mxu3 %v616_v32 }
  0x63   : > { %v548_v34 = vld [vmem:[#allocation6 + $0x4e0] sm:$0xff]  ;;  %1434 = vmatpush.msra.mxu0 %v420_v33 }
  0x64   : > { %v484_v35 = vld [vmem:[#allocation6 + $0x2e0] sm:$0xff]  ;;  %1474 = vmatpush.msra.mxu2 %v548_v34 }
  0x65   : > { %v612_v36 = vld [vmem:[#allocation6 + $0x6e0] sm:$0xff]  ;;  %1454 = vmatpush.msra.mxu1 %v484_v35 }
  0x66   : > { %v416_v37 = vld [vmem:[#allocation6 + $0xc0] sm:$0xff]  ;;  %1494 = vmatpush.msra.mxu3 %v612_v36 }
  0x67   : > { %v544_v38 = vld [vmem:[#allocation6 + $0x4c0] sm:$0xff]  ;;  %1435 = vmatpush.msra.mxu0 %v416_v37 }
  0x68   : > { %v480_v39 = vld [vmem:[#allocation6 + $0x2c0] sm:$0xff]  ;;  %1475 = vmatpush.msra.mxu2 %v544_v38 }
  0x69   : > { %v608_v40 = vld [vmem:[#allocation6 + $0x6c0] sm:$0xff]  ;;  %1455 = vmatpush.msra.mxu1 %v480_v39 }
  0x6a   : > { %v412_v41 = vld [vmem:[#allocation6 + $0xa0] sm:$0xff]  ;;  %1495 = vmatpush.msra.mxu3 %v608_v40 }
  0x6b   : > { %v540_v42 = vld [vmem:[#allocation6 + $0x4a0] sm:$0xff]  ;;  %1436 = vmatpush.msra.mxu0 %v412_v41 }
  0x6c   : > { %v476_v43 = vld [vmem:[#allocation6 + $0x2a0] sm:$0xff]  ;;  %1476 = vmatpush.msra.mxu2 %v540_v42 }
  0x6d   : > { %v604_v44 = vld [vmem:[#allocation6 + $0x6a0] sm:$0xff]  ;;  %1456 = vmatpush.msra.mxu1 %v476_v43 }
  0x6e   : > { %v408_v45 = vld [vmem:[#allocation6 + $0x80] sm:$0xff]  ;;  %1496 = vmatpush.msra.mxu3 %v604_v44 }
  0x6f   : > { %v536_v46 = vld [vmem:[#allocation6 + $0x480] sm:$0xff]  ;;  %1437 = vmatpush.msra.mxu0 %v408_v45 }
  0x70   : > { %v472_v47 = vld [vmem:[#allocation6 + $0x280] sm:$0xff]  ;;  %1477 = vmatpush.msra.mxu2 %v536_v46 }
  0x71   : > { %v600_v48 = vld [vmem:[#allocation6 + $0x680] sm:$0xff]  ;;  %1457 = vmatpush.msra.mxu1 %v472_v47 }
  0x72   : > { %v404_v49 = vld [vmem:[#allocation6 + $0x60] sm:$0xff]  ;;  %1497 = vmatpush.msra.mxu3 %v600_v48 }
  0x73   : > { %v532_v50 = vld [vmem:[#allocation6 + $0x460] sm:$0xff]  ;;  %1438 = vmatpush.msra.mxu0 %v404_v49 }
  0x74   : > { %v468_v51 = vld [vmem:[#allocation6 + $0x260] sm:$0xff]  ;;  %1478 = vmatpush.msra.mxu2 %v532_v50 }
  0x75   : > { %v596_v52 = vld [vmem:[#allocation6 + $0x660] sm:$0xff]  ;;  %1458 = vmatpush.msra.mxu1 %v468_v51 }
  0x76   : > { %v400_v53 = vld [vmem:[#allocation6 + $0x40] sm:$0xff]  ;;  %1498 = vmatpush.msra.mxu3 %v596_v52 }
  0x77   : > { %v528_v54 = vld [vmem:[#allocation6 + $0x440] sm:$0xff]  ;;  %1439 = vmatpush.msra.mxu0 %v400_v53 }
  0x78   : > { %v464_v55 = vld [vmem:[#allocation6 + $0x240] sm:$0xff]  ;;  %1479 = vmatpush.msra.mxu2 %v528_v54 }
  0x79   : > { %v592_v56 = vld [vmem:[#allocation6 + $0x640] sm:$0xff]  ;;  %1459 = vmatpush.msra.mxu1 %v464_v55 }
  0x7a   : > { %v396_v57 = vld [vmem:[#allocation6 + $0x20] sm:$0xff]  ;;  %1499 = vmatpush.msra.mxu3 %v592_v56 }
  0x7b   : > { %v524_v58 = vld [vmem:[#allocation6 + $0x420] sm:$0xff]  ;;  %1440 = vmatpush.msra.mxu0 %v396_v57 }
  0x7c   : > { %v460_v59 = vld [vmem:[#allocation6 + $0x220] sm:$0xff]  ;;  %1480 = vmatpush.msra.mxu2 %v524_v58 }
  0x7d   : > { %v588_v60 = vld [vmem:[#allocation6 + $0x620] sm:$0xff]  ;;  %1460 = vmatpush.msra.mxu1 %v460_v59 }
  0x7e   : > { %v392_v61 = vld [vmem:[#allocation6] sm:$0xff]  ;;  %1500 = vmatpush.msra.mxu3 %v588_v60 }
  0x7f   : > { %v520_v62 = vld [vmem:[#allocation6 + $0x400] sm:$0xff]  ;;  %1441 = vmatpush.msra.mxu0 %v392_v61 }
  0x80   : > { %v708_v63 = vld [vmem:[#allocation6 + $0x9e0] sm:$0xff]  ;;  %1481 = vmatpush.msra.mxu2 %v520_v62 }
  0x81   : > { %v836_v0 = vld [vmem:[#allocation6 + $0xde0] sm:$0xff]  ;;  %1506 = vmatpush.msrb.mxu0 %v708_v63 }
  0x82   : > { %v456_v1 = vld [vmem:[#allocation6 + $0x200] sm:$0xff]  ;;  %1546 = vmatpush.msrb.mxu2 %v836_v0  ;;  %v378_v0 = vld [vmem:[%s4129_s13 + $0x10] sm:$0xff] }
  0x83   : > { %v584_v2 = vld [vmem:[#allocation6 + $0x600] sm:$0xff]  ;;  %1461 = vmatpush.msra.mxu1 %v456_v1  ;;  %1482 = vmatmul.f32.vlgmr.msra.gmra.mxu2 %v378_v0 }
  0x84   : > { %v704_v3 = vld [vmem:[#allocation6 + $0x9c0] sm:$0xff]  ;;  %1501 = vmatpush.msra.mxu3 %v584_v2 }
  0x85   : > { %v772_v4 = vld [vmem:[#allocation6 + $0xbe0] sm:$0xff]  ;;  %1507 = vmatpush.msrb.mxu0 %v704_v3 }
  0x86   : > { %v832_v5 = vld [vmem:[#allocation6 + $0xdc0] sm:$0xff]  ;;  %1526 = vmatpush.msrb.mxu1 %v772_v4 }
  0x87   : > { %v900_v6 = vld [vmem:[#allocation6 + $0xfe0] sm:$0xff]  ;;  %1547 = vmatpush.msrb.mxu2 %v832_v5  ;;  %v377_v5 = vld [vmem:[%s4129_s13 + $0x8] sm:$0xff] }
  0x88   : > { %v700_v7 = vld [vmem:[#allocation6 + $0x9a0] sm:$0xff]  ;;  %1566 = vmatpush.msrb.mxu3 %v900_v6  ;;  %v379_v6 = vld [vmem:[%s4129_s13 + $0x18] sm:$0xff]  ;;  %1462 = vmatmul.f32.vlgmr.msra.gmra.mxu1 %v377_v5 }
  0x89   : > { %v768_v8 = vld [vmem:[#allocation6 + $0xbc0] sm:$0xff]  ;;  %1508 = vmatpush.msrb.mxu0 %v700_v7  ;;  %1502 = vmatmul.f32.vlgmr.msra.gmra.mxu3 %v379_v6 }
  0x8a   : > { %v828_v9 = vld [vmem:[#allocation6 + $0xda0] sm:$0xff]  ;;  %1527 = vmatpush.msrb.mxu1 %v768_v8 }
  0x8b   : > { %v896_v10 = vld [vmem:[#allocation6 + $0xfc0] sm:$0xff]  ;;  %1548 = vmatpush.msrb.mxu2 %v828_v9 }
  0x8c   : > { %v696_v11 = vld [vmem:[#allocation6 + $0x980] sm:$0xff]  ;;  %1567 = vmatpush.msrb.mxu3 %v896_v10 }
  0x8d   : > { %v764_v12 = vld [vmem:[#allocation6 + $0xba0] sm:$0xff]  ;;  %1509 = vmatpush.msrb.mxu0 %v696_v11 }
  0x8e   : > { %v824_v13 = vld [vmem:[#allocation6 + $0xd80] sm:$0xff]  ;;  %1528 = vmatpush.msrb.mxu1 %v764_v12 }
  0x8f   : > { %v892_v14 = vld [vmem:[#allocation6 + $0xfa0] sm:$0xff]  ;;  %1549 = vmatpush.msrb.mxu2 %v824_v13 }
  0x90   : > { %v692_v15 = vld [vmem:[#allocation6 + $0x960] sm:$0xff]  ;;  %1568 = vmatpush.msrb.mxu3 %v892_v14 }
  0x91   : > { %v760_v16 = vld [vmem:[#allocation6 + $0xb80] sm:$0xff]  ;;  %1510 = vmatpush.msrb.mxu0 %v692_v15 }
  0x92   : > { %v820_v17 = vld [vmem:[#allocation6 + $0xd60] sm:$0xff]  ;;  %1529 = vmatpush.msrb.mxu1 %v760_v16 }
  0x93   : > { %v888_v18 = vld [vmem:[#allocation6 + $0xf80] sm:$0xff]  ;;  %1550 = vmatpush.msrb.mxu2 %v820_v17 }
  0x94   : > { %v688_v19 = vld [vmem:[#allocation6 + $0x940] sm:$0xff]  ;;  %1569 = vmatpush.msrb.mxu3 %v888_v18 }
  0x95   : > { %v756_v20 = vld [vmem:[#allocation6 + $0xb60] sm:$0xff]  ;;  %1511 = vmatpush.msrb.mxu0 %v688_v19  ;;  %v382_v19 = vld [vmem:[%s4129_s13 + $0x30] sm:$0xff] }
  0x96   : > { %v816_v21 = vld [vmem:[#allocation6 + $0xd40] sm:$0xff]  ;;  %1530 = vmatpush.msrb.mxu1 %v756_v20 }
  0x97   : > { %v884_v22 = vld [vmem:[#allocation6 + $0xf60] sm:$0xff]  ;;  %1551 = vmatpush.msrb.mxu2 %v816_v21 }
  0x98   : > { %v684_v23 = vld [vmem:[#allocation6 + $0x920] sm:$0xff]  ;;  %1570 = vmatpush.msrb.mxu3 %v884_v22 }
  0x99   : > { %v752_v24 = vld [vmem:[#allocation6 + $0xb40] sm:$0xff]  ;;  %1512 = vmatpush.msrb.mxu0 %v684_v23 }
  0x9a   : > { %v812_v25 = vld [vmem:[#allocation6 + $0xd20] sm:$0xff]  ;;  %1531 = vmatpush.msrb.mxu1 %v752_v24 }
  0x9b   : > { %v880_v26 = vld [vmem:[#allocation6 + $0xf40] sm:$0xff]  ;;  %1552 = vmatpush.msrb.mxu2 %v812_v25  ;;  %v383_v25 = vld [vmem:[%s4129_s13 + $0x38] sm:$0xff] }
  0x9c   : > { %v680_v27 = vld [vmem:[#allocation6 + $0x900] sm:$0xff]  ;;  %1571 = vmatpush.msrb.mxu3 %v880_v26 }
  0x9d   : > { %v748_v28 = vld [vmem:[#allocation6 + $0xb20] sm:$0xff]  ;;  %1513 = vmatpush.msrb.mxu0 %v680_v27 }
  0x9e   : > { %v808_v29 = vld [vmem:[#allocation6 + $0xd00] sm:$0xff]  ;;  %1532 = vmatpush.msrb.mxu1 %v748_v28 }
  0x9f   : > { %v876_v30 = vld [vmem:[#allocation6 + $0xf20] sm:$0xff]  ;;  %1553 = vmatpush.msrb.mxu2 %v808_v29 }
  0xa0   : > { %v676_v31 = vld [vmem:[#allocation6 + $0x8e0] sm:$0xff]  ;;  %1572 = vmatpush.msrb.mxu3 %v876_v30  ;;  %v381_v30 = vld [vmem:[%s4129_s13 + $0x28] sm:$0xff] }
  0xa1   : > { %v744_v32 = vld [vmem:[#allocation6 + $0xb00] sm:$0xff]  ;;  %1514 = vmatpush.msrb.mxu0 %v676_v31 }
  0xa2   : > { %v804_v33 = vld [vmem:[#allocation6 + $0xce0] sm:$0xff]  ;;  %1533 = vmatpush.msrb.mxu1 %v744_v32 }
  0xa3   : > { %v872_v34 = vld [vmem:[#allocation6 + $0xf00] sm:$0xff]  ;;  %1554 = vmatpush.msrb.mxu2 %v804_v33 }
  0xa4   : > { %v672_v35 = vld [vmem:[#allocation6 + $0x8c0] sm:$0xff]  ;;  %1573 = vmatpush.msrb.mxu3 %v872_v34 }
  0xa5   : > { %v740_v36 = vld [vmem:[#allocation6 + $0xae0] sm:$0xff]  ;;  %1515 = vmatpush.msrb.mxu0 %v672_v35 }
  0xa6   : > { %v800_v37 = vld [vmem:[#allocation6 + $0xcc0] sm:$0xff]  ;;  %1534 = vmatpush.msrb.mxu1 %v740_v36 }
  0xa7   : > { %v868_v38 = vld [vmem:[#allocation6 + $0xee0] sm:$0xff]  ;;  %1555 = vmatpush.msrb.mxu2 %v800_v37 }
  0xa8   : > { %v668_v39 = vld [vmem:[#allocation6 + $0x8a0] sm:$0xff]  ;;  %1574 = vmatpush.msrb.mxu3 %v868_v38 }
  0xa9   : > { %v736_v40 = vld [vmem:[#allocation6 + $0xac0] sm:$0xff]  ;;  %1516 = vmatpush.msrb.mxu0 %v668_v39 }
  0xaa   : > { %v796_v41 = vld [vmem:[#allocation6 + $0xca0] sm:$0xff]  ;;  %1535 = vmatpush.msrb.mxu1 %v736_v40 }
  0xab   : > { %v864_v42 = vld [vmem:[#allocation6 + $0xec0] sm:$0xff]  ;;  %1556 = vmatpush.msrb.mxu2 %v796_v41 }
  0xac   : > { %v664_v43 = vld [vmem:[#allocation6 + $0x880] sm:$0xff]  ;;  %1575 = vmatpush.msrb.mxu3 %v864_v42 }
  0xad   : > { %v732_v44 = vld [vmem:[#allocation6 + $0xaa0] sm:$0xff]  ;;  %1517 = vmatpush.msrb.mxu0 %v664_v43 }
  0xae   : > { %v792_v45 = vld [vmem:[#allocation6 + $0xc80] sm:$0xff]  ;;  %1536 = vmatpush.msrb.mxu1 %v732_v44 }
  0xaf   : > { %v860_v46 = vld [vmem:[#allocation6 + $0xea0] sm:$0xff]  ;;  %1557 = vmatpush.msrb.mxu2 %v792_v45 }
  0xb0   : > { %v660_v47 = vld [vmem:[#allocation6 + $0x860] sm:$0xff]  ;;  %1576 = vmatpush.msrb.mxu3 %v860_v46 }
  0xb1   : > { %v728_v48 = vld [vmem:[#allocation6 + $0xa80] sm:$0xff]  ;;  %1518 = vmatpush.msrb.mxu0 %v660_v47 }
  0xb2   : > { %v788_v49 = vld [vmem:[#allocation6 + $0xc60] sm:$0xff]  ;;  %1537 = vmatpush.msrb.mxu1 %v728_v48 }
  0xb3   : > { %v856_v50 = vld [vmem:[#allocation6 + $0xe80] sm:$0xff]  ;;  %1558 = vmatpush.msrb.mxu2 %v788_v49 }
  0xb4   : > { %v656_v51 = vld [vmem:[#allocation6 + $0x840] sm:$0xff]  ;;  %1577 = vmatpush.msrb.mxu3 %v856_v50 }
  0xb5   : > { %v724_v52 = vld [vmem:[#allocation6 + $0xa60] sm:$0xff]  ;;  %1519 = vmatpush.msrb.mxu0 %v656_v51 }
  0xb6   : > { %v784_v53 = vld [vmem:[#allocation6 + $0xc40] sm:$0xff]  ;;  %1538 = vmatpush.msrb.mxu1 %v724_v52 }
  0xb7   : > { %v852_v54 = vld [vmem:[#allocation6 + $0xe60] sm:$0xff]  ;;  %1559 = vmatpush.msrb.mxu2 %v784_v53 }
  0xb8   : > { %v652_v55 = vld [vmem:[#allocation6 + $0x820] sm:$0xff]  ;;  %1578 = vmatpush.msrb.mxu3 %v852_v54 }
  0xb9   : > { %v720_v56 = vld [vmem:[#allocation6 + $0xa40] sm:$0xff]  ;;  %1520 = vmatpush.msrb.mxu0 %v652_v55 }
  0xba   : > { %v780_v57 = vld [vmem:[#allocation6 + $0xc20] sm:$0xff]  ;;  %1539 = vmatpush.msrb.mxu1 %v720_v56 }
  0xbb   : > { %v848_v58 = vld [vmem:[#allocation6 + $0xe40] sm:$0xff]  ;;  %1560 = vmatpush.msrb.mxu2 %v780_v57 }
  0xbc   : > { %v648_v59 = vld [vmem:[#allocation6 + $0x800] sm:$0xff]  ;;  %1579 = vmatpush.msrb.mxu3 %v848_v58 }
  0xbd   : > { %v716_v60 = vld [vmem:[#allocation6 + $0xa20] sm:$0xff]  ;;  %1521 = vmatpush.msrb.mxu0 %v648_v59 }
  0xbe   : > { %v776_v61 = vld [vmem:[#allocation6 + $0xc00] sm:$0xff]  ;;  %1540 = vmatpush.msrb.mxu1 %v716_v60 }
  0xbf   : > { %v844_v62 = vld [vmem:[#allocation6 + $0xe20] sm:$0xff]  ;;  %1561 = vmatpush.msrb.mxu2 %v776_v61 }
  0xc0   : > { %v376_v63 = vld [vmem:[%s4129_s13] sm:$0xff]  ;;  %1580 = vmatpush.msrb.mxu3 %v844_v62  ;;  %1562 = vmatmul.f32.vlgmr.msrb.gmra.mxu2 %v382_v19 }
  0xc1   : > { %v964_v1 = vld [vmem:[#allocation6 + $0x11e0] sm:$0xff]  ;;  %1442 = vmatmul.f32.vlgmr.msra.gmra.mxu0 %v376_v63 }
  0xc2   : > { %v1092_v2 = vld [vmem:[#allocation6 + $0x15e0] sm:$0xff]  ;;  %1586 = vmatpush.msra.mxu0 %v964_v1 }
  0xc3   : > { %v712_v3 = vld [vmem:[#allocation6 + $0xa00] sm:$0xff]  ;;  %1626 = vmatpush.msra.mxu2 %v1092_v2 }
  0xc4   : > { %v840_v4 = vld [vmem:[#allocation6 + $0xe00] sm:$0xff]  ;;  %1541 = vmatpush.msrb.mxu1 %v712_v3 }
  0xc5   : > { %v960_v7 = vld [vmem:[#allocation6 + $0x11c0] sm:$0xff]  ;;  %1581 = vmatpush.msrb.mxu3 %v840_v4  ;;  %1542 = vmatmul.f32.vlgmr.msrb.gmra.mxu1 %v381_v30 }
  0xc6   : > { %v1028_v8 = vld [vmem:[#allocation6 + $0x13e0] sm:$0xff]  ;;  %1587 = vmatpush.msra.mxu0 %v960_v7  ;;  %1582 = vmatmul.f32.vlgmr.msrb.gmra.mxu3 %v383_v25 }
  0xc7   : > { %v1088_v9 = vld [vmem:[#allocation6 + $0x15c0] sm:$0xff]  ;;  %1606 = vmatpush.msra.mxu1 %v1028_v8  ;;  %v386_v8 = vld [vmem:[%s4129_s13 + $0x50] sm:$0xff] }
  0xc8   : > { %v1156_v10 = vld [vmem:[#allocation6 + $0x17e0] sm:$0xff]  ;;  %1627 = vmatpush.msra.mxu2 %v1088_v9 }
  0xc9   : > { %v956_v11 = vld [vmem:[#allocation6 + $0x11a0] sm:$0xff]  ;;  %1646 = vmatpush.msra.mxu3 %v1156_v10 }
  0xca   : > { %v1024_v12 = vld [vmem:[#allocation6 + $0x13c0] sm:$0xff]  ;;  %1588 = vmatpush.msra.mxu0 %v956_v11 }
  0xcb   : > { %v1084_v13 = vld [vmem:[#allocation6 + $0x15a0] sm:$0xff]  ;;  %1607 = vmatpush.msra.mxu1 %v1024_v12 }
  0xcc   : > { %v1152_v14 = vld [vmem:[#allocation6 + $0x17c0] sm:$0xff]  ;;  %1628 = vmatpush.msra.mxu2 %v1084_v13  ;;  %v385_v13 = vld [vmem:[%s4129_s13 + $0x48] sm:$0xff] }
  0xcd   : > { %v952_v15 = vld [vmem:[#allocation6 + $0x1180] sm:$0xff]  ;;  %1647 = vmatpush.msra.mxu3 %v1152_v14  ;;  %v387_v14 = vld [vmem:[%s4129_s13 + $0x58] sm:$0xff] }
  0xce   : > { %v1020_v16 = vld [vmem:[#allocation6 + $0x13a0] sm:$0xff]  ;;  %1589 = vmatpush.msra.mxu0 %v952_v15 }
  0xcf   : > { %v1080_v17 = vld [vmem:[#allocation6 + $0x1580] sm:$0xff]  ;;  %1608 = vmatpush.msra.mxu1 %v1020_v16 }
  0xd0   : > { %v1148_v18 = vld [vmem:[#allocation6 + $0x17a0] sm:$0xff]  ;;  %1629 = vmatpush.msra.mxu2 %v1080_v17 }
  0xd1   : > { %v948_v20 = vld [vmem:[#allocation6 + $0x1160] sm:$0xff]  ;;  %1648 = vmatpush.msra.mxu3 %v1148_v18 }
  0xd2   : > { %v1016_v21 = vld [vmem:[#allocation6 + $0x1380] sm:$0xff]  ;;  %1590 = vmatpush.msra.mxu0 %v948_v20 }
  0xd3   : > { %v1076_v22 = vld [vmem:[#allocation6 + $0x1560] sm:$0xff]  ;;  %1609 = vmatpush.msra.mxu1 %v1016_v21 }
  0xd4   : > { %v1144_v23 = vld [vmem:[#allocation6 + $0x1780] sm:$0xff]  ;;  %1630 = vmatpush.msra.mxu2 %v1076_v22 }
  0xd5   : > { %v380_v24 = vld [vmem:[%s4129_s13 + $0x20] sm:$0xff]  ;;  %1649 = vmatpush.msra.mxu3 %v1144_v23 }
  0xd6   : > { %v944_v26 = vld [vmem:[#allocation6 + $0x1140] sm:$0xff]  ;;  %1522 = vmatmul.f32.vlgmr.msrb.gmra.mxu0 %v380_v24 }
  0xd7   : > { %v1012_v27 = vld [vmem:[#allocation6 + $0x1360] sm:$0xff]  ;;  %1591 = vmatpush.msra.mxu0 %v944_v26 }
  0xd8   : > { %v1072_v28 = vld [vmem:[#allocation6 + $0x1540] sm:$0xff]  ;;  %1610 = vmatpush.msra.mxu1 %v1012_v27 }
  0xd9   : > { %v1140_v29 = vld [vmem:[#allocation6 + $0x1760] sm:$0xff]  ;;  %1631 = vmatpush.msra.mxu2 %v1072_v28 }
  0xda   : > { %v940_v31 = vld [vmem:[#allocation6 + $0x1120] sm:$0xff]  ;;  %1650 = vmatpush.msra.mxu3 %v1140_v29 }
  0xdb   : > { %v1008_v32 = vld [vmem:[#allocation6 + $0x1340] sm:$0xff]  ;;  %1592 = vmatpush.msra.mxu0 %v940_v31 }
  0xdc   : > { %v1068_v33 = vld [vmem:[#allocation6 + $0x1520] sm:$0xff]  ;;  %1611 = vmatpush.msra.mxu1 %v1008_v32 }
  0xdd   : > { %v1136_v34 = vld [vmem:[#allocation6 + $0x1740] sm:$0xff]  ;;  %1632 = vmatpush.msra.mxu2 %v1068_v33 }
  0xde   : > { %v936_v35 = vld [vmem:[#allocation6 + $0x1100] sm:$0xff]  ;;  %1651 = vmatpush.msra.mxu3 %v1136_v34 }
  0xdf   : > { %v1004_v36 = vld [vmem:[#allocation6 + $0x1320] sm:$0xff]  ;;  %1593 = vmatpush.msra.mxu0 %v936_v35 }
  0xe0   : > { %v1064_v37 = vld [vmem:[#allocation6 + $0x1500] sm:$0xff]  ;;  %1612 = vmatpush.msra.mxu1 %v1004_v36 }
  0xe1   : > { %v1132_v38 = vld [vmem:[#allocation6 + $0x1720] sm:$0xff]  ;;  %1633 = vmatpush.msra.mxu2 %v1064_v37 }
  0xe2   : > { %v932_v39 = vld [vmem:[#allocation6 + $0x10e0] sm:$0xff]  ;;  %1652 = vmatpush.msra.mxu3 %v1132_v38 }
  0xe3   : > { %v1000_v40 = vld [vmem:[#allocation6 + $0x1300] sm:$0xff]  ;;  %1594 = vmatpush.msra.mxu0 %v932_v39 }
  0xe4   : > { %v1060_v41 = vld [vmem:[#allocation6 + $0x14e0] sm:$0xff]  ;;  %1613 = vmatpush.msra.mxu1 %v1000_v40 }
  0xe5   : > { %v1128_v42 = vld [vmem:[#allocation6 + $0x1700] sm:$0xff]  ;;  %1634 = vmatpush.msra.mxu2 %v1060_v41 }
  0xe6   : > { %v928_v43 = vld [vmem:[#allocation6 + $0x10c0] sm:$0xff]  ;;  %1653 = vmatpush.msra.mxu3 %v1128_v42 }
  0xe7   : > { %v996_v44 = vld [vmem:[#allocation6 + $0x12e0] sm:$0xff]  ;;  %1595 = vmatpush.msra.mxu0 %v928_v43 }
  0xe8   : > { %v1056_v45 = vld [vmem:[#allocation6 + $0x14c0] sm:$0xff]  ;;  %1614 = vmatpush.msra.mxu1 %v996_v44 }
  0xe9   : > { %v1124_v46 = vld [vmem:[#allocation6 + $0x16e0] sm:$0xff]  ;;  %1635 = vmatpush.msra.mxu2 %v1056_v45 }
  0xea   : > { %v924_v47 = vld [vmem:[#allocation6 + $0x10a0] sm:$0xff]  ;;  %1654 = vmatpush.msra.mxu3 %v1124_v46 }
  0xeb   : > { %v992_v48 = vld [vmem:[#allocation6 + $0x12c0] sm:$0xff]  ;;  %1596 = vmatpush.msra.mxu0 %v924_v47 }
  0xec   : > { %v1052_v49 = vld [vmem:[#allocation6 + $0x14a0] sm:$0xff]  ;;  %1615 = vmatpush.msra.mxu1 %v992_v48 }
  0xed   : > { %v1120_v50 = vld [vmem:[#allocation6 + $0x16c0] sm:$0xff]  ;;  %1636 = vmatpush.msra.mxu2 %v1052_v49 }
  0xee   : > { %v920_v51 = vld [vmem:[#allocation6 + $0x1080] sm:$0xff]  ;;  %1655 = vmatpush.msra.mxu3 %v1120_v50 }
  0xef   : > { %v988_v52 = vld [vmem:[#allocation6 + $0x12a0] sm:$0xff]  ;;  %1597 = vmatpush.msra.mxu0 %v920_v51 }
  0xf0   : > { %v1048_v53 = vld [vmem:[#allocation6 + $0x1480] sm:$0xff]  ;;  %1616 = vmatpush.msra.mxu1 %v988_v52 }
  0xf1   : > { %v1116_v54 = vld [vmem:[#allocation6 + $0x16a0] sm:$0xff]  ;;  %1637 = vmatpush.msra.mxu2 %v1048_v53 }
  0xf2   : > { %v916_v55 = vld [vmem:[#allocation6 + $0x1060] sm:$0xff]  ;;  %1656 = vmatpush.msra.mxu3 %v1116_v54 }
  0xf3   : > { %v984_v56 = vld [vmem:[#allocation6 + $0x1280] sm:$0xff]  ;;  %1598 = vmatpush.msra.mxu0 %v916_v55 }
  0xf4   : > { %v1044_v57 = vld [vmem:[#allocation6 + $0x1460] sm:$0xff]  ;;  %1617 = vmatpush.msra.mxu1 %v984_v56 }
  0xf5   : > { %v1112_v58 = vld [vmem:[#allocation6 + $0x1680] sm:$0xff]  ;;  %1638 = vmatpush.msra.mxu2 %v1044_v57 }
  0xf6   : > { %v912_v59 = vld [vmem:[#allocation6 + $0x1040] sm:$0xff]  ;;  %1657 = vmatpush.msra.mxu3 %v1112_v58 }
  0xf7   : > { %v980_v60 = vld [vmem:[#allocation6 + $0x1260] sm:$0xff]  ;;  %1599 = vmatpush.msra.mxu0 %v912_v59 }
  0xf8   : > { %v1040_v61 = vld [vmem:[#allocation6 + $0x1440] sm:$0xff]  ;;  %1618 = vmatpush.msra.mxu1 %v980_v60 }
  0xf9   : > { %v1108_v62 = vld [vmem:[#allocation6 + $0x1660] sm:$0xff]  ;;  %1639 = vmatpush.msra.mxu2 %v1040_v61 }
  0xfa   : > { %v908_v63 = vld [vmem:[#allocation6 + $0x1020] sm:$0xff]  ;;  %1658 = vmatpush.msra.mxu3 %v1108_v62 }
  0xfb   : > { %v976_v0 = vld [vmem:[#allocation6 + $0x1240] sm:$0xff]  ;;  %1600 = vmatpush.msra.mxu0 %v908_v63 }
  0xfc   : > { %v1036_v1 = vld [vmem:[#allocation6 + $0x1420] sm:$0xff]  ;;  %1619 = vmatpush.msra.mxu1 %v976_v0 }
  0xfd   : > { %v1104_v2 = vld [vmem:[#allocation6 + $0x1640] sm:$0xff]  ;;  %1640 = vmatpush.msra.mxu2 %v1036_v1 }
  0xfe   : > { %v904_v3 = vld [vmem:[#allocation6 + $0x1000] sm:$0xff]  ;;  %1659 = vmatpush.msra.mxu3 %v1104_v2 }
  0xff   : > { %v972_v4 = vld [vmem:[#allocation6 + $0x1220] sm:$0xff]  ;;  %1601 = vmatpush.msra.mxu0 %v904_v3 }
 0x100   : > { %v1032_v5 = vld [vmem:[#allocation6 + $0x1400] sm:$0xff]  ;;  %1620 = vmatpush.msra.mxu1 %v972_v4 }
 0x101   : > { %v1100_v6 = vld [vmem:[#allocation6 + $0x1620] sm:$0xff]  ;;  %1641 = vmatpush.msra.mxu2 %v1032_v5 }
 0x102   : > { %v384_v7 = vld [vmem:[%s4129_s13 + $0x40] sm:$0xff]  ;;  %1660 = vmatpush.msra.mxu3 %v1100_v6  ;;  %1642 = vmatmul.f32.vlgmr.msra.gmra.mxu2 %v386_v8 }
 0x103   : > { %v1220_v9 = vld [vmem:[#allocation6 + $0x19e0] sm:$0xff]  ;;  %1602 = vmatmul.f32.vlgmr.msra.gmra.mxu0 %v384_v7 }
 0x104   : > { %v1348_v10 = vld [vmem:[#allocation6 + $0x1de0] sm:$0xff]  ;;  %1666 = vmatpush.msrb.mxu0 %v1220_v9 }
 0x105   : > { %v968_v11 = vld [vmem:[#allocation6 + $0x1200] sm:$0xff]  ;;  %1706 = vmatpush.msrb.mxu2 %v1348_v10 }
 0x106   : > { %v1096_v12 = vld [vmem:[#allocation6 + $0x1600] sm:$0xff]  ;;  %1621 = vmatpush.msra.mxu1 %v968_v11 }
 0x107   : > { %v1216_v15 = vld [vmem:[#allocation6 + $0x19c0] sm:$0xff]  ;;  %1661 = vmatpush.msra.mxu3 %v1096_v12  ;;  %1622 = vmatmul.f32.vlgmr.msra.gmra.mxu1 %v385_v13  ;;  %v390_v12 = vld [vmem:[%s4129_s13 + $0x70] sm:$0xff]  ;;  %v453_v13 = vld [vmem:[#allocation6 + $0x1e8] sm:$0xff] }
 0x108   : > { %v1284_v16 = vld [vmem:[#allocation6 + $0x1be0] sm:$0xff]  ;;  %1662 = vmatmul.f32.vlgmr.msra.gmra.mxu3 %v387_v14  ;;  %1667 = vmatpush.msrb.mxu0 %v1216_v15  ;;  %v581_v14 = vld [vmem:[#allocation6 + $0x5e8] sm:$0xff] }
 0x109   : > { %v1344_v17 = vld [vmem:[#allocation6 + $0x1dc0] sm:$0xff]  ;;  %1686 = vmatpush.msrb.mxu1 %v1284_v16 }
 0x10a   : > { %v1412_v18 = vld [vmem:[#allocation6 + $0x1fe0] sm:$0xff]  ;;  %1707 = vmatpush.msrb.mxu2 %v1344_v17  ;;  %v389_v17 = vld [vmem:[%s4129_s13 + $0x68] sm:$0xff] }
 0x10b   : > { %v1212_v19 = vld [vmem:[#allocation6 + $0x19a0] sm:$0xff]  ;;  %1726 = vmatpush.msrb.mxu3 %v1412_v18  ;;  %v391_v18 = vld [vmem:[%s4129_s13 + $0x78] sm:$0xff] }
 0x10c   : > { %v1280_v20 = vld [vmem:[#allocation6 + $0x1bc0] sm:$0xff]  ;;  %1668 = vmatpush.msrb.mxu0 %v1212_v19  ;;  %v449_v19 = vld [vmem:[#allocation6 + $0x1c8] sm:$0xff] }
 0x10d   : > { %v1340_v21 = vld [vmem:[#allocation6 + $0x1da0] sm:$0xff]  ;;  %1687 = vmatpush.msrb.mxu1 %v1280_v20  ;;  %v517_v20 = vld [vmem:[#allocation6 + $0x3e8] sm:$0xff] }
 0x10e   : > { %v1408_v22 = vld [vmem:[#allocation6 + $0x1fc0] sm:$0xff]  ;;  %1708 = vmatpush.msrb.mxu2 %v1340_v21  ;;  %v577_v21 = vld [vmem:[#allocation6 + $0x5c8] sm:$0xff] }
 0x10f   : > { %v1208_v23 = vld [vmem:[#allocation6 + $0x1980] sm:$0xff]  ;;  %1727 = vmatpush.msrb.mxu3 %v1408_v22  ;;  %v645_v22 = vld [vmem:[#allocation6 + $0x7e8] sm:$0xff] }
 0x110   : > { %v1276_v24 = vld [vmem:[#allocation6 + $0x1ba0] sm:$0xff]  ;;  %1669 = vmatpush.msrb.mxu0 %v1208_v23  ;;  %v445_v23 = vld [vmem:[#allocation6 + $0x1a8] sm:$0xff] }
 0x111   : > { %v1336_v25 = vld [vmem:[#allocation6 + $0x1d80] sm:$0xff]  ;;  %1688 = vmatpush.msrb.mxu1 %v1276_v24  ;;  %v513_v24 = vld [vmem:[#allocation6 + $0x3c8] sm:$0xff] }
 0x112   : > { %v1404_v26 = vld [vmem:[#allocation6 + $0x1fa0] sm:$0xff]  ;;  %1709 = vmatpush.msrb.mxu2 %v1336_v25  ;;  %v573_v25 = vld [vmem:[#allocation6 + $0x5a8] sm:$0xff] }
 0x113   : > { %v1204_v27 = vld [vmem:[#allocation6 + $0x1960] sm:$0xff]  ;;  %1728 = vmatpush.msrb.mxu3 %v1404_v26  ;;  %v641_v26 = vld [vmem:[#allocation6 + $0x7c8] sm:$0xff] }
 0x114   : > { %v1272_v28 = vld [vmem:[#allocation6 + $0x1b80] sm:$0xff]  ;;  %1670 = vmatpush.msrb.mxu0 %v1204_v27  ;;  %v441_v27 = vld [vmem:[#allocation6 + $0x188] sm:$0xff] }
 0x115   : > { %v1332_v29 = vld [vmem:[#allocation6 + $0x1d60] sm:$0xff]  ;;  %1689 = vmatpush.msrb.mxu1 %v1272_v28  ;;  %v509_v28 = vld [vmem:[#allocation6 + $0x3a8] sm:$0xff] }
 0x116   : > { %v1400_v30 = vld [vmem:[#allocation6 + $0x1f80] sm:$0xff]  ;;  %1710 = vmatpush.msrb.mxu2 %v1332_v29  ;;  %v569_v29 = vld [vmem:[#allocation6 + $0x588] sm:$0xff] }
 0x117   : > { %v1200_v31 = vld [vmem:[#allocation6 + $0x1940] sm:$0xff]  ;;  %1729 = vmatpush.msrb.mxu3 %v1400_v30  ;;  %v637_v30 = vld [vmem:[#allocation6 + $0x7a8] sm:$0xff] }
 0x118   : > { %v1268_v32 = vld [vmem:[#allocation6 + $0x1b60] sm:$0xff]  ;;  %1671 = vmatpush.msrb.mxu0 %v1200_v31  ;;  %v437_v31 = vld [vmem:[#allocation6 + $0x168] sm:$0xff] }
 0x119   : > { %v1328_v33 = vld [vmem:[#allocation6 + $0x1d40] sm:$0xff]  ;;  %1690 = vmatpush.msrb.mxu1 %v1268_v32  ;;  %v505_v32 = vld [vmem:[#allocation6 + $0x388] sm:$0xff] }
 0x11a   : > { %v1396_v34 = vld [vmem:[#allocation6 + $0x1f60] sm:$0xff]  ;;  %1711 = vmatpush.msrb.mxu2 %v1328_v33  ;;  %v565_v33 = vld [vmem:[#allocation6 + $0x568] sm:$0xff] }
 0x11b   : > { %v1196_v35 = vld [vmem:[#allocation6 + $0x1920] sm:$0xff]  ;;  %1730 = vmatpush.msrb.mxu3 %v1396_v34  ;;  %v633_v34 = vld [vmem:[#allocation6 + $0x788] sm:$0xff] }
 0x11c   : > { %v1264_v36 = vld [vmem:[#allocation6 + $0x1b40] sm:$0xff]  ;;  %1672 = vmatpush.msrb.mxu0 %v1196_v35  ;;  %v433_v35 = vld [vmem:[#allocation6 + $0x148] sm:$0xff] }
 0x11d   : > { %v1324_v37 = vld [vmem:[#allocation6 + $0x1d20] sm:$0xff]  ;;  %1691 = vmatpush.msrb.mxu1 %v1264_v36  ;;  %v501_v36 = vld [vmem:[#allocation6 + $0x368] sm:$0xff] }
 0x11e   : > { %v1392_v38 = vld [vmem:[#allocation6 + $0x1f40] sm:$0xff]  ;;  %1712 = vmatpush.msrb.mxu2 %v1324_v37  ;;  %v561_v37 = vld [vmem:[#allocation6 + $0x548] sm:$0xff] }
 0x11f   : > { %v1192_v39 = vld [vmem:[#allocation6 + $0x1900] sm:$0xff]  ;;  %1731 = vmatpush.msrb.mxu3 %v1392_v38  ;;  %v629_v38 = vld [vmem:[#allocation6 + $0x768] sm:$0xff] }
 0x120   : > { %v1260_v40 = vld [vmem:[#allocation6 + $0x1b20] sm:$0xff]  ;;  %1673 = vmatpush.msrb.mxu0 %v1192_v39  ;;  %v429_v39 = vld [vmem:[#allocation6 + $0x128] sm:$0xff] }
 0x121   : > { %v1320_v41 = vld [vmem:[#allocation6 + $0x1d00] sm:$0xff]  ;;  %1692 = vmatpush.msrb.mxu1 %v1260_v40  ;;  %v497_v40 = vld [vmem:[#allocation6 + $0x348] sm:$0xff] }
 0x122   : > { %v1388_v42 = vld [vmem:[#allocation6 + $0x1f20] sm:$0xff]  ;;  %1713 = vmatpush.msrb.mxu2 %v1320_v41  ;;  %v557_v41 = vld [vmem:[#allocation6 + $0x528] sm:$0xff] }
 0x123   : > { %v1188_v43 = vld [vmem:[#allocation6 + $0x18e0] sm:$0xff]  ;;  %1732 = vmatpush.msrb.mxu3 %v1388_v42  ;;  %v625_v42 = vld [vmem:[#allocation6 + $0x748] sm:$0xff] }
 0x124   : > { %v1256_v44 = vld [vmem:[#allocation6 + $0x1b00] sm:$0xff]  ;;  %1674 = vmatpush.msrb.mxu0 %v1188_v43  ;;  %v425_v43 = vld [vmem:[#allocation6 + $0x108] sm:$0xff] }
 0x125   : > { %v1316_v45 = vld [vmem:[#allocation6 + $0x1ce0] sm:$0xff]  ;;  %1693 = vmatpush.msrb.mxu1 %v1256_v44  ;;  %v493_v44 = vld [vmem:[#allocation6 + $0x328] sm:$0xff] }
 0x126   : > { %v1384_v46 = vld [vmem:[#allocation6 + $0x1f00] sm:$0xff]  ;;  %1714 = vmatpush.msrb.mxu2 %v1316_v45  ;;  %v553_v45 = vld [vmem:[#allocation6 + $0x508] sm:$0xff] }
 0x127   : > { %v1184_v47 = vld [vmem:[#allocation6 + $0x18c0] sm:$0xff]  ;;  %1733 = vmatpush.msrb.mxu3 %v1384_v46  ;;  %v621_v46 = vld [vmem:[#allocation6 + $0x728] sm:$0xff] }
 0x128   : > { %v1252_v48 = vld [vmem:[#allocation6 + $0x1ae0] sm:$0xff]  ;;  %1675 = vmatpush.msrb.mxu0 %v1184_v47  ;;  %v421_v47 = vld [vmem:[#allocation6 + $0xe8] sm:$0xff] }
 0x129   : > { %v1312_v49 = vld [vmem:[#allocation6 + $0x1cc0] sm:$0xff]  ;;  %1694 = vmatpush.msrb.mxu1 %v1252_v48  ;;  %v489_v48 = vld [vmem:[#allocation6 + $0x308] sm:$0xff] }
 0x12a   : > { %v1380_v50 = vld [vmem:[#allocation6 + $0x1ee0] sm:$0xff]  ;;  %1715 = vmatpush.msrb.mxu2 %v1312_v49  ;;  %v549_v49 = vld [vmem:[#allocation6 + $0x4e8] sm:$0xff] }
 0x12b   : > { %v1180_v51 = vld [vmem:[#allocation6 + $0x18a0] sm:$0xff]  ;;  %1734 = vmatpush.msrb.mxu3 %v1380_v50  ;;  %v617_v50 = vld [vmem:[#allocation6 + $0x708] sm:$0xff] }
 0x12c   : > { %v1248_v52 = vld [vmem:[#allocation6 + $0x1ac0] sm:$0xff]  ;;  %1676 = vmatpush.msrb.mxu0 %v1180_v51  ;;  %v417_v51 = vld [vmem:[#allocation6 + $0xc8] sm:$0xff] }
 0x12d   : > { %v1308_v53 = vld [vmem:[#allocation6 + $0x1ca0] sm:$0xff]  ;;  %1695 = vmatpush.msrb.mxu1 %v1248_v52  ;;  %v485_v52 = vld [vmem:[#allocation6 + $0x2e8] sm:$0xff] }
 0x12e   : > { %v1376_v54 = vld [vmem:[#allocation6 + $0x1ec0] sm:$0xff]  ;;  %1716 = vmatpush.msrb.mxu2 %v1308_v53  ;;  %v545_v53 = vld [vmem:[#allocation6 + $0x4c8] sm:$0xff] }
 0x12f   : > { %v1176_v55 = vld [vmem:[#allocation6 + $0x1880] sm:$0xff]  ;;  %1735 = vmatpush.msrb.mxu3 %v1376_v54  ;;  %v613_v54 = vld [vmem:[#allocation6 + $0x6e8] sm:$0xff] }
 0x130   : > { %v1244_v56 = vld [vmem:[#allocation6 + $0x1aa0] sm:$0xff]  ;;  %1677 = vmatpush.msrb.mxu0 %v1176_v55  ;;  %v413_v55 = vld [vmem:[#allocation6 + $0xa8] sm:$0xff] }
 0x131   : > { %v1304_v57 = vld [vmem:[#allocation6 + $0x1c80] sm:$0xff]  ;;  %1696 = vmatpush.msrb.mxu1 %v1244_v56  ;;  %v481_v56 = vld [vmem:[#allocation6 + $0x2c8] sm:$0xff] }
 0x132   : > { %v1372_v58 = vld [vmem:[#allocation6 + $0x1ea0] sm:$0xff]  ;;  %1717 = vmatpush.msrb.mxu2 %v1304_v57  ;;  %v541_v57 = vld [vmem:[#allocation6 + $0x4a8] sm:$0xff] }
 0x133   : > { %v1172_v59 = vld [vmem:[#allocation6 + $0x1860] sm:$0xff]  ;;  %1736 = vmatpush.msrb.mxu3 %v1372_v58  ;;  %v609_v58 = vld [vmem:[#allocation6 + $0x6c8] sm:$0xff] }
 0x134   : > { %v1240_v60 = vld [vmem:[#allocation6 + $0x1a80] sm:$0xff]  ;;  %1678 = vmatpush.msrb.mxu0 %v1172_v59  ;;  %v409_v59 = vld [vmem:[#allocation6 + $0x88] sm:$0xff] }
 0x135   : > { %v1300_v61 = vld [vmem:[#allocation6 + $0x1c60] sm:$0xff]  ;;  %1697 = vmatpush.msrb.mxu1 %v1240_v60  ;;  %v477_v60 = vld [vmem:[#allocation6 + $0x2a8] sm:$0xff] }
 0x136   : > { %v1368_v62 = vld [vmem:[#allocation6 + $0x1e80] sm:$0xff]  ;;  %1718 = vmatpush.msrb.mxu2 %v1300_v61  ;;  %v537_v61 = vld [vmem:[#allocation6 + $0x488] sm:$0xff] }
 0x137   : > { %v1168_v63 = vld [vmem:[#allocation6 + $0x1840] sm:$0xff]  ;;  %1737 = vmatpush.msrb.mxu3 %v1368_v62  ;;  %v605_v62 = vld [vmem:[#allocation6 + $0x6a8] sm:$0xff] }
 0x138   : > { %v1236_v0 = vld [vmem:[#allocation6 + $0x1a60] sm:$0xff]  ;;  %1679 = vmatpush.msrb.mxu0 %v1168_v63  ;;  %v405_v63 = vld [vmem:[#allocation6 + $0x68] sm:$0xff] }
 0x139   : > { %v1296_v1 = vld [vmem:[#allocation6 + $0x1c40] sm:$0xff]  ;;  %1698 = vmatpush.msrb.mxu1 %v1236_v0  ;;  %v473_v0 = vld [vmem:[#allocation6 + $0x288] sm:$0xff] }
 0x13a   : > { %v1364_v2 = vld [vmem:[#allocation6 + $0x1e60] sm:$0xff]  ;;  %1719 = vmatpush.msrb.mxu2 %v1296_v1  ;;  %v533_v1 = vld [vmem:[#allocation6 + $0x468] sm:$0xff] }
 0x13b   : > { %v1164_v3 = vld [vmem:[#allocation6 + $0x1820] sm:$0xff]  ;;  %1738 = vmatpush.msrb.mxu3 %v1364_v2  ;;  %v601_v2 = vld [vmem:[#allocation6 + $0x688] sm:$0xff] }
 0x13c   : > { %v1232_v4 = vld [vmem:[#allocation6 + $0x1a40] sm:$0xff]  ;;  %1680 = vmatpush.msrb.mxu0 %v1164_v3  ;;  %v401_v3 = vld [vmem:[#allocation6 + $0x48] sm:$0xff] }
 0x13d   : > { %v1292_v5 = vld [vmem:[#allocation6 + $0x1c20] sm:$0xff]  ;;  %1699 = vmatpush.msrb.mxu1 %v1232_v4  ;;  %v469_v4 = vld [vmem:[#allocation6 + $0x268] sm:$0xff] }
 0x13e   : > { %v1360_v6 = vld [vmem:[#allocation6 + $0x1e40] sm:$0xff]  ;;  %1720 = vmatpush.msrb.mxu2 %v1292_v5  ;;  %v529_v5 = vld [vmem:[#allocation6 + $0x448] sm:$0xff] }
 0x13f   : > { %v1160_v7 = vld [vmem:[#allocation6 + $0x1800] sm:$0xff]  ;;  %1739 = vmatpush.msrb.mxu3 %v1360_v6  ;;  %v597_v6 = vld [vmem:[#allocation6 + $0x668] sm:$0xff] }
 0x140   : > { %v1228_v8 = vld [vmem:[#allocation6 + $0x1a20] sm:$0xff]  ;;  %1681 = vmatpush.msrb.mxu0 %v1160_v7  ;;  %v397_v7 = vld [vmem:[#allocation6 + $0x28] sm:$0xff] }
 0x141   : > { %v1288_v9 = vld [vmem:[#allocation6 + $0x1c00] sm:$0xff]  ;;  %1700 = vmatpush.msrb.mxu1 %v1228_v8  ;;  %v465_v8 = vld [vmem:[#allocation6 + $0x248] sm:$0xff] }
 0x142   : > { %v1356_v10 = vld [vmem:[#allocation6 + $0x1e20] sm:$0xff]  ;;  %1721 = vmatpush.msrb.mxu2 %v1288_v9  ;;  %1746 = vmatpush.msra.mxu0 %v453_v13  ;;  %v525_v9 = vld [vmem:[#allocation6 + $0x428] sm:$0xff] }
 0x143   : > { %v388_v11 = vld [vmem:[%s4129_s13 + $0x60] sm:$0xff]  ;;  %1740 = vmatpush.msrb.mxu3 %v1356_v10  ;;  %1722 = vmatmul.f32.vlgmr.msrb.gmra.mxu2 %v390_v12  ;;  %v593_v10 = vld [vmem:[#allocation6 + $0x648] sm:$0xff] }
 0x144   : > { %v1224_v15 = vld [vmem:[#allocation6 + $0x1a00] sm:$0xff]  ;;  %1682 = vmatmul.f32.vlgmr.msrb.gmra.mxu0 %v388_v11  ;;  %1786 = vmatpush.msra.mxu2 %v581_v14  ;;  %v393_v11 = vld [vmem:[#allocation6 + $0x8] sm:$0xff] }
 0x145   : > { %v1352_v16 = vld [vmem:[#allocation6 + $0x1e00] sm:$0xff]  ;;  %1701 = vmatpush.msrb.mxu1 %v1224_v15  ;;  %1747 = vmatpush.msra.mxu0 %v449_v19  ;;  %v461_v12 = vld [vmem:[#allocation6 + $0x228] sm:$0xff] }
 0x146   : > { %1741 = vmatpush.msrb.mxu3 %v1352_v16  ;;  %1702 = vmatmul.f32.vlgmr.msrb.gmra.mxu1 %v389_v17  ;;  %v521_v13 = vld [vmem:[#allocation6 + $0x408] sm:$0xff] }
 0x147   : > { %1742 = vmatmul.f32.vlgmr.msrb.gmra.mxu3 %v391_v18  ;;  %1766 = vmatpush.msra.mxu1 %v517_v20  ;;  %v589_v14 = vld [vmem:[#allocation6 + $0x628] sm:$0xff] }
 0x148   : > { %1787 = vmatpush.msra.mxu2 %v577_v21  ;;  %1806 = vmatpush.msra.mxu3 %v645_v22  ;;  %v709_v15 = vld [vmem:[#allocation6 + $0x9e8] sm:$0xff] }
 0x149   : > { %1748 = vmatpush.msra.mxu0 %v445_v23  ;;  %1767 = vmatpush.msra.mxu1 %v513_v24  ;;  %v837_v16 = vld [vmem:[#allocation6 + $0xde8] sm:$0xff] }
 0x14a   : > { %1788 = vmatpush.msra.mxu2 %v573_v25  ;;  %1807 = vmatpush.msra.mxu3 %v641_v26  ;;  %v457_v17 = vld [vmem:[#allocation6 + $0x208] sm:$0xff] }
 0x14b   : > { %1749 = vmatpush.msra.mxu0 %v441_v27  ;;  %1768 = vmatpush.msra.mxu1 %v509_v28  ;;  %v585_v18 = vld [vmem:[#allocation6 + $0x608] sm:$0xff] }
 0x14c   : > { %1789 = vmatpush.msra.mxu2 %v569_v29  ;;  %1808 = vmatpush.msra.mxu3 %v637_v30  ;;  %v705_v19 = vld [vmem:[#allocation6 + $0x9c8] sm:$0xff] }
 0x14d   : > { %1750 = vmatpush.msra.mxu0 %v437_v31  ;;  %1769 = vmatpush.msra.mxu1 %v505_v32  ;;  %v773_v20 = vld [vmem:[#allocation6 + $0xbe8] sm:$0xff] }
 0x14e   : > { %1790 = vmatpush.msra.mxu2 %v565_v33  ;;  %1809 = vmatpush.msra.mxu3 %v633_v34  ;;  %v833_v21 = vld [vmem:[#allocation6 + $0xdc8] sm:$0xff] }
 0x14f   : > { %1751 = vmatpush.msra.mxu0 %v433_v35  ;;  %1770 = vmatpush.msra.mxu1 %v501_v36  ;;  %v901_v22 = vld [vmem:[#allocation6 + $0xfe8] sm:$0xff] }
 0x150   : > { %1791 = vmatpush.msra.mxu2 %v561_v37  ;;  %1810 = vmatpush.msra.mxu3 %v629_v38  ;;  %v701_v23 = vld [vmem:[#allocation6 + $0x9a8] sm:$0xff] }
 0x151   : > { %1752 = vmatpush.msra.mxu0 %v429_v39  ;;  %1771 = vmatpush.msra.mxu1 %v497_v40  ;;  %v769_v24 = vld [vmem:[#allocation6 + $0xbc8] sm:$0xff] }
 0x152   : > { %1792 = vmatpush.msra.mxu2 %v557_v41  ;;  %1811 = vmatpush.msra.mxu3 %v625_v42  ;;  %v829_v25 = vld [vmem:[#allocation6 + $0xda8] sm:$0xff] }
 0x153   : > { %1753 = vmatpush.msra.mxu0 %v425_v43  ;;  %1772 = vmatpush.msra.mxu1 %v493_v44  ;;  %v897_v26 = vld [vmem:[#allocation6 + $0xfc8] sm:$0xff] }
 0x154   : > { %1793 = vmatpush.msra.mxu2 %v553_v45  ;;  %1812 = vmatpush.msra.mxu3 %v621_v46  ;;  %v697_v27 = vld [vmem:[#allocation6 + $0x988] sm:$0xff] }
 0x155   : > { %1754 = vmatpush.msra.mxu0 %v421_v47  ;;  %1773 = vmatpush.msra.mxu1 %v489_v48  ;;  %v765_v28 = vld [vmem:[#allocation6 + $0xba8] sm:$0xff] }
 0x156   : > { %1794 = vmatpush.msra.mxu2 %v549_v49  ;;  %1813 = vmatpush.msra.mxu3 %v617_v50  ;;  %v825_v29 = vld [vmem:[#allocation6 + $0xd88] sm:$0xff] }
 0x157   : > { %1755 = vmatpush.msra.mxu0 %v417_v51  ;;  %1774 = vmatpush.msra.mxu1 %v485_v52  ;;  %v893_v30 = vld [vmem:[#allocation6 + $0xfa8] sm:$0xff] }
 0x158   : > { %1795 = vmatpush.msra.mxu2 %v545_v53  ;;  %1814 = vmatpush.msra.mxu3 %v613_v54  ;;  %v693_v31 = vld [vmem:[#allocation6 + $0x968] sm:$0xff]  ;;  %v1416_v53 = vld [vmem:[#allocation8] sm:$0xf] }
 0x159   : > { %1756 = vmatpush.msra.mxu0 %v413_v55  ;;  %1775 = vmatpush.msra.mxu1 %v481_v56  ;;  %v761_v32 = vld [vmem:[#allocation6 + $0xb88] sm:$0xff] }
 0x15a   : > { %1796 = vmatpush.msra.mxu2 %v541_v57  ;;  %1815 = vmatpush.msra.mxu3 %v609_v58  ;;  %v821_v33 = vld [vmem:[#allocation6 + $0xd68] sm:$0xff] }
 0x15b   : > { %1757 = vmatpush.msra.mxu0 %v409_v59  ;;  %1776 = vmatpush.msra.mxu1 %v477_v60  ;;  %v889_v34 = vld [vmem:[#allocation6 + $0xf88] sm:$0xff]  ;;  %v1418_v60 = vperm.slane %v1416_v53, 0 }
 0x15c   : > { %1797 = vmatpush.msra.mxu2 %v537_v61  ;;  %1816 = vmatpush.msra.mxu3 %v605_v62  ;;  %v689_v35 = vld [vmem:[#allocation6 + $0x948] sm:$0xff] }
 0x15d   : > { %1758 = vmatpush.msra.mxu0 %v405_v63  ;;  %1777 = vmatpush.msra.mxu1 %v473_v0  ;;  %v757_v36 = vld [vmem:[#allocation6 + $0xb68] sm:$0xff] }
 0x15e   : > { %1798 = vmatpush.msra.mxu2 %v533_v1  ;;  %1817 = vmatpush.msra.mxu3 %v601_v2  ;;  %v817_v37 = vld [vmem:[#allocation6 + $0xd48] sm:$0xff] }
 0x15f   : > { %1759 = vmatpush.msra.mxu0 %v401_v3  ;;  %1778 = vmatpush.msra.mxu1 %v469_v4  ;;  %v885_v38 = vld [vmem:[#allocation6 + $0xf68] sm:$0xff]  ;;  %v1443_v3 = vpop.f32.mrf.mxu0 }
 0x160   : > { %1799 = vmatpush.msra.mxu2 %v529_v5  ;;  %1818 = vmatpush.msra.mxu3 %v597_v6  ;;  %v685_v39 = vld [vmem:[#allocation6 + $0x928] sm:$0xff]  ;;  %v1444_v6 = vadd.f32 %v1443_v3, %v1418_v60 }
 0x161   : > { %1760 = vmatpush.msra.mxu0 %v397_v7  ;;  %1779 = vmatpush.msra.mxu1 %v465_v8  ;;  %v753_v40 = vld [vmem:[#allocation6 + $0xb48] sm:$0xff] }
 0x162   : > { %1800 = vmatpush.msra.mxu2 %v525_v9  ;;  %1819 = vmatpush.msra.mxu3 %v593_v10  ;;  %v813_v41 = vld [vmem:[#allocation6 + $0xd28] sm:$0xff] }
 0x163   : > { %1761 = vmatpush.msra.mxu0 %v393_v11  ;;  %1780 = vmatpush.msra.mxu1 %v461_v12  ;;  %v881_v42 = vld [vmem:[#allocation6 + $0xf48] sm:$0xff]  ;;  %v1463_v11 = vpop.f32.mrf.mxu1 }
 0x164   : > { %1801 = vmatpush.msra.mxu2 %v521_v13  ;;  %1820 = vmatpush.msra.mxu3 %v589_v14  ;;  %v681_v43 = vld [vmem:[#allocation6 + $0x908] sm:$0xff]  ;;  %v1464_v14 = vadd.f32 %v1463_v11, %v1444_v6 }
 0x165   : > { %1826 = vmatpush.msrb.mxu0 %v709_v15  ;;  %1781 = vmatpush.msra.mxu1 %v457_v17  ;;  %v749_v44 = vld [vmem:[#allocation6 + $0xb28] sm:$0xff] }
 0x166   : > { %1866 = vmatpush.msrb.mxu2 %v837_v16  ;;  %1821 = vmatpush.msra.mxu3 %v585_v18  ;;  %v809_v45 = vld [vmem:[#allocation6 + $0xd08] sm:$0xff] }
 0x167   : > { %1827 = vmatpush.msrb.mxu0 %v705_v19  ;;  %1846 = vmatpush.msrb.mxu1 %v773_v20  ;;  %v877_v46 = vld [vmem:[#allocation6 + $0xf28] sm:$0xff]  ;;  %v1483_v19 = vpop.f32.mrf.mxu2 }
 0x168   : > { %1867 = vmatpush.msrb.mxu2 %v833_v21  ;;  %1886 = vmatpush.msrb.mxu3 %v901_v22  ;;  %v677_v47 = vld [vmem:[#allocation6 + $0x8e8] sm:$0xff]  ;;  %v1484_v22 = vadd.f32 %v1483_v19, %v1464_v14 }
 0x169   : > { %1828 = vmatpush.msrb.mxu0 %v701_v23  ;;  %1847 = vmatpush.msrb.mxu1 %v769_v24  ;;  %v745_v48 = vld [vmem:[#allocation6 + $0xb08] sm:$0xff] }
 0x16a   : > { %1868 = vmatpush.msrb.mxu2 %v829_v25  ;;  %1887 = vmatpush.msrb.mxu3 %v897_v26  ;;  %v805_v49 = vld [vmem:[#allocation6 + $0xce8] sm:$0xff]  ;;  %v1503_v25 = vpop.f32.mrf.mxu3 }
 0x16b   : > { %1829 = vmatpush.msrb.mxu0 %v697_v27  ;;  %1848 = vmatpush.msrb.mxu1 %v765_v28  ;;  %v873_v50 = vld [vmem:[#allocation6 + $0xf08] sm:$0xff]  ;;  %v1504_v28 = vadd.f32 %v1503_v25, %v1484_v22 }
 0x16c   : > { %1869 = vmatpush.msrb.mxu2 %v825_v29  ;;  %1888 = vmatpush.msrb.mxu3 %v893_v30  ;;  %v673_v51 = vld [vmem:[#allocation6 + $0x8c8] sm:$0xff]  ;;  %v3630_v29 = vld [vmem:[%s4129_s13] sm:$0xff]  ;;  %v3631_v30 = vld [vmem:[%s4129_s13 + $0x10] sm:$0xff] }
 0x16d   : > { %1830 = vmatpush.msrb.mxu0 %v693_v31  ;;  %1849 = vmatpush.msrb.mxu1 %v761_v32  ;;  %v741_v52 = vld [vmem:[#allocation6 + $0xae8] sm:$0xff] }
 0x16e   : > { %1870 = vmatpush.msrb.mxu2 %v821_v33  ;;  %1889 = vmatpush.msrb.mxu3 %v889_v34  ;;  %v801_v54 = vld [vmem:[#allocation6 + $0xcc8] sm:$0xff]  ;;  %v1523_v33 = vpop.f32.mrf.mxu0 }
 0x16f   : > { %1831 = vmatpush.msrb.mxu0 %v689_v35  ;;  %1850 = vmatpush.msrb.mxu1 %v757_v36  ;;  %v869_v55 = vld [vmem:[#allocation6 + $0xee8] sm:$0xff]  ;;  %v1524_v36 = vadd.f32 %v1523_v33, %v1504_v28 }
 0x170   : > { %1871 = vmatpush.msrb.mxu2 %v817_v37  ;;  %1890 = vmatpush.msrb.mxu3 %v885_v38  ;;  %v669_v56 = vld [vmem:[#allocation6 + $0x8a8] sm:$0xff]  ;;  %v3633_v38 = vld [vmem:[%s4129_s13 + $0x18] sm:$0xff] }
 0x171   : > { %1832 = vmatpush.msrb.mxu0 %v685_v39  ;;  %1851 = vmatpush.msrb.mxu1 %v753_v40  ;;  %v737_v57 = vld [vmem:[#allocation6 + $0xac8] sm:$0xff] }
 0x172   : > { %1872 = vmatpush.msrb.mxu2 %v813_v41  ;;  %1891 = vmatpush.msrb.mxu3 %v881_v42  ;;  %v797_v58 = vld [vmem:[#allocation6 + $0xca8] sm:$0xff] }
 0x173   : > { %1833 = vmatpush.msrb.mxu0 %v681_v43  ;;  %1852 = vmatpush.msrb.mxu1 %v749_v44  ;;  %v865_v59 = vld [vmem:[#allocation6 + $0xec8] sm:$0xff]  ;;  %v1543_v43 = vpop.f32.mrf.mxu1 }
 0x174   : > { %1873 = vmatpush.msrb.mxu2 %v809_v45  ;;  %1892 = vmatpush.msrb.mxu3 %v877_v46  ;;  %v665_v61 = vld [vmem:[#allocation6 + $0x888] sm:$0xff]  ;;  %v1544_v46 = vadd.f32 %v1543_v43, %v1524_v36 }
 0x175   : > { %1834 = vmatpush.msrb.mxu0 %v677_v47  ;;  %1853 = vmatpush.msrb.mxu1 %v745_v48  ;;  %v733_v62 = vld [vmem:[#allocation6 + $0xaa8] sm:$0xff]  ;;  %v1563_v47 = vpop.f32.mrf.mxu2 }
 0x176   : > { %1874 = vmatpush.msrb.mxu2 %v805_v49  ;;  %1893 = vmatpush.msrb.mxu3 %v873_v50  ;;  %v793_v63 = vld [vmem:[#allocation6 + $0xc88] sm:$0xff] }
 0x177   : > { %1835 = vmatpush.msrb.mxu0 %v673_v51  ;;  %1854 = vmatpush.msrb.mxu1 %v741_v52  ;;  %v861_v0 = vld [vmem:[#allocation6 + $0xea8] sm:$0xff]  ;;  %v1564_v51 = vadd.f32 %v1563_v47, %v1544_v46 }
 0x178   : > { %1875 = vmatpush.msrb.mxu2 %v801_v54  ;;  %1894 = vmatpush.msrb.mxu3 %v869_v55  ;;  %v661_v1 = vld [vmem:[#allocation6 + $0x868] sm:$0xff]  ;;  %v1583_v54 = vpop.f32.mrf.mxu3 }
 0x179   : > { %1836 = vmatpush.msrb.mxu0 %v669_v56  ;;  %1855 = vmatpush.msrb.mxu1 %v737_v57  ;;  %v729_v2 = vld [vmem:[#allocation6 + $0xa88] sm:$0xff]  ;;  %v4167_v56 = vadd.f32 %v1583_v54, %v1564_v51  ;;  %v3634_v57 = vld [vmem:[%s4129_s13 + $0x30] sm:$0xff] }
 0x17a   : > { %1876 = vmatpush.msrb.mxu2 %v797_v58  ;;  %1895 = vmatpush.msrb.mxu3 %v865_v59  ;;  %v789_v4 = vld [vmem:[#allocation6 + $0xc68] sm:$0xff]  ;;  %v3639_v54 = vld [vmem:[%s4129_s13 + $0x50] sm:$0xff] }
 0x17b   : > { %1837 = vmatpush.msrb.mxu0 %v665_v61  ;;  %1856 = vmatpush.msrb.mxu1 %v733_v62  ;;  %v857_v5 = vld [vmem:[#allocation6 + $0xe88] sm:$0xff]  ;;  %v3635_v61 = vld [vmem:[%s4129_s13 + $0x20] sm:$0xff] }
 0x17c   : > { %1877 = vmatpush.msrb.mxu2 %v793_v63  ;;  %1896 = vmatpush.msrb.mxu3 %v861_v0  ;;  %v657_v7 = vld [vmem:[#allocation6 + $0x848] sm:$0xff]  ;;  %v3636_v63 = vld [vmem:[%s4129_s13 + $0x38] sm:$0xff] }
 0x17d   : > { %v725_v8 = vld [vmem:[#allocation6 + $0xa68] sm:$0xff]  ;;  %1838 = vmatpush.msrb.mxu0 %v661_v1  ;;  %1857 = vmatpush.msrb.mxu1 %v729_v2 }
 0x17e   : > { %v785_v9 = vld [vmem:[#allocation6 + $0xc48] sm:$0xff]  ;;  %1878 = vmatpush.msrb.mxu2 %v789_v4  ;;  %1897 = vmatpush.msrb.mxu3 %v857_v5 }
 0x17f   : > { %v853_v10 = vld [vmem:[#allocation6 + $0xe68] sm:$0xff]  ;;  %1839 = vmatpush.msrb.mxu0 %v657_v7  ;;  %1858 = vmatpush.msrb.mxu1 %v725_v8 }
 0x180   : > { %v653_v12 = vld [vmem:[#allocation6 + $0x828] sm:$0xff]  ;;  %1879 = vmatpush.msrb.mxu2 %v785_v9  ;;  %1898 = vmatpush.msrb.mxu3 %v853_v10 }
 0x181   : > { %v721_v13 = vld [vmem:[#allocation6 + $0xa48] sm:$0xff]  ;;  %1840 = vmatpush.msrb.mxu0 %v653_v12  ;;  %1802 = vmatmul.f32.vlgmr.msra.gmra.mxu2 %v3631_v30 }
 0x182   : > { %v781_v15 = vld [vmem:[#allocation6 + $0xc28] sm:$0xff]  ;;  %1859 = vmatpush.msrb.mxu1 %v721_v13  ;;  %1762 = vmatmul.f32.vlgmr.msra.gmra.mxu0 %v3630_v29 }
 0x183   : > { %v849_v16 = vld [vmem:[#allocation6 + $0xe48] sm:$0xff]  ;;  %1880 = vmatpush.msrb.mxu2 %v781_v15  ;;  %1822 = vmatmul.f32.vlgmr.msra.gmra.mxu3 %v3633_v38 }
 0x184   : > { %v649_v17 = vld [vmem:[#allocation6 + $0x808] sm:$0xff]  ;;  %1899 = vmatpush.msrb.mxu3 %v849_v16 }
 0x185   : > { %v717_v18 = vld [vmem:[#allocation6 + $0xa28] sm:$0xff]  ;;  %1841 = vmatpush.msrb.mxu0 %v649_v17  ;;  %v1643_v43 = vpop.f32.mrf.mxu2 }
 0x186   : > { %v777_v20 = vld [vmem:[#allocation6 + $0xc08] sm:$0xff]  ;;  %1860 = vmatpush.msrb.mxu1 %v717_v18 }
 0x187   : > { %v845_v21 = vld [vmem:[#allocation6 + $0xe28] sm:$0xff]  ;;  %1881 = vmatpush.msrb.mxu2 %v777_v20 }
 0x188   : > { %v965_v23 = vld [vmem:[#allocation6 + $0x11e8] sm:$0xff]  ;;  %1900 = vmatpush.msrb.mxu3 %v845_v21 }
 0x189   : > { %v1093_v24 = vld [vmem:[#allocation6 + $0x15e8] sm:$0xff]  ;;  %1906 = vmatpush.msra.mxu0 %v965_v23  ;;  %1882 = vmatmul.f32.vlgmr.msrb.gmra.mxu2 %v3634_v57 }
 0x18a   : > { %v713_v26 = vld [vmem:[#allocation6 + $0xa08] sm:$0xff]  ;;  %1946 = vmatpush.msra.mxu2 %v1093_v24  ;;  %1842 = vmatmul.f32.vlgmr.msrb.gmra.mxu0 %v3635_v61 }
 0x18b   : > { %v841_v27 = vld [vmem:[#allocation6 + $0xe08] sm:$0xff]  ;;  %1861 = vmatpush.msrb.mxu1 %v713_v26 }
 0x18c   : > { %v961_v31 = vld [vmem:[#allocation6 + $0x11c8] sm:$0xff]  ;;  %1901 = vmatpush.msrb.mxu3 %v841_v27  ;;  %v1603_v27 = vpop.f32.mrf.mxu0 }
 0x18d   : > { %v1029_v32 = vld [vmem:[#allocation6 + $0x13e8] sm:$0xff]  ;;  %1907 = vmatpush.msra.mxu0 %v961_v31  ;;  %1902 = vmatmul.f32.vlgmr.msrb.gmra.mxu3 %v3636_v63  ;;  %v1604_v30 = vadd.f32 %v1603_v27, %v4167_v56 }
 0x18e   : > { %v1089_v34 = vld [vmem:[#allocation6 + $0x15c8] sm:$0xff] }
 0x18f   : > { %v1157_v35 = vld [vmem:[#allocation6 + $0x17e8] sm:$0xff]  ;;  %1947 = vmatpush.msra.mxu2 %v1089_v34 }
 0x190   : > { %v3632_v37 = vld [vmem:[%s4129_s13 + $0x8] sm:$0xff]  ;;  %1966 = vmatpush.msra.mxu3 %v1157_v35  ;;  %v1623_v35 = vpop.f32.mrf.mxu1 }
 0x191   : > { %1782 = vmatmul.f32.vlgmr.msra.gmra.mxu1 %v3632_v37  ;;  %v957_v39 = vld [vmem:[#allocation6 + $0x11a8] sm:$0xff]  ;;  %v1624_v38 = vadd.f32 %v1623_v35, %v1604_v30 }
 0x192   : > { %v1025_v40 = vld [vmem:[#allocation6 + $0x13c8] sm:$0xff]  ;;  %1926 = vmatpush.msra.mxu1 %v1029_v32  ;;  %1908 = vmatpush.msra.mxu0 %v957_v39 }
 0x193   : > { %v1085_v41 = vld [vmem:[#allocation6 + $0x15a8] sm:$0xff]  ;;  %v1644_v46 = vadd.f32 %v1643_v43, %v1624_v38 }
 0x194   : > { %v1153_v42 = vld [vmem:[#allocation6 + $0x17c8] sm:$0xff]  ;;  %1927 = vmatpush.msra.mxu1 %v1025_v40  ;;  %1948 = vmatpush.msra.mxu2 %v1085_v41 }
 0x195   : > { %v953_v44 = vld [vmem:[#allocation6 + $0x1188] sm:$0xff]  ;;  %1967 = vmatpush.msra.mxu3 %v1153_v42 }
 0x196   : > { %v1021_v45 = vld [vmem:[#allocation6 + $0x13a8] sm:$0xff]  ;;  %1909 = vmatpush.msra.mxu0 %v953_v44 }
 0x197   : > { %v1081_v48 = vld [vmem:[#allocation6 + $0x1588] sm:$0xff]  ;;  %1928 = vmatpush.msra.mxu1 %v1021_v45 }
 0x198   : > { %v1149_v49 = vld [vmem:[#allocation6 + $0x17a8] sm:$0xff]  ;;  %1949 = vmatpush.msra.mxu2 %v1081_v48 }
 0x199   : > { %v949_v50 = vld [vmem:[#allocation6 + $0x1168] sm:$0xff]  ;;  %1968 = vmatpush.msra.mxu3 %v1149_v49  ;;  %v1663_v49 = vpop.f32.mrf.mxu3 }
 0x19a   : > { %v1017_v52 = vld [vmem:[#allocation6 + $0x1388] sm:$0xff]  ;;  %1910 = vmatpush.msra.mxu0 %v949_v50 }
 0x19b   : > { %v1077_v53 = vld [vmem:[#allocation6 + $0x1568] sm:$0xff]  ;;  %1929 = vmatpush.msra.mxu1 %v1017_v52  ;;  %v4174_v52 = vadd.f32 %v1663_v49, %v1644_v46 }
 0x19c   : > { %v1145_v55 = vld [vmem:[#allocation6 + $0x1788] sm:$0xff]  ;;  %1950 = vmatpush.msra.mxu2 %v1077_v53  ;;  %v3638_v53 = vld [vmem:[%s4129_s13 + $0x40] sm:$0xff] }
 0x19d   : > { %v945_v58 = vld [vmem:[#allocation6 + $0x1148] sm:$0xff]  ;;  %1969 = vmatpush.msra.mxu3 %v1145_v55 }
 0x19e   : > { %v1013_v59 = vld [vmem:[#allocation6 + $0x1368] sm:$0xff]  ;;  %1911 = vmatpush.msra.mxu0 %v945_v58 }
 0x19f   : > { %v1073_v60 = vld [vmem:[#allocation6 + $0x1548] sm:$0xff]  ;;  %1930 = vmatpush.msra.mxu1 %v1013_v59 }
 0x1a0   : > { %v1141_v62 = vld [vmem:[#allocation6 + $0x1768] sm:$0xff]  ;;  %1951 = vmatpush.msra.mxu2 %v1073_v60  ;;  %v3641_v60 = vld [vmem:[%s4129_s13 + $0x58] sm:$0xff] }
 0x1a1   : > { %v941_v0 = vld [vmem:[#allocation6 + $0x1128] sm:$0xff]  ;;  %1970 = vmatpush.msra.mxu3 %v1141_v62 }
 0x1a2   : > { %v1009_v1 = vld [vmem:[#allocation6 + $0x1348] sm:$0xff]  ;;  %1912 = vmatpush.msra.mxu0 %v941_v0 }
 0x1a3   : > { %v1069_v2 = vld [vmem:[#allocation6 + $0x1528] sm:$0xff]  ;;  %1931 = vmatpush.msra.mxu1 %v1009_v1 }
 0x1a4   : > { %v1137_v3 = vld [vmem:[#allocation6 + $0x1748] sm:$0xff]  ;;  %1952 = vmatpush.msra.mxu2 %v1069_v2 }
 0x1a5   : > { %v3637_v4 = vld [vmem:[%s4129_s13 + $0x28] sm:$0xff]  ;;  %1971 = vmatpush.msra.mxu3 %v1137_v3 }
 0x1a6   : > { %1862 = vmatmul.f32.vlgmr.msrb.gmra.mxu1 %v3637_v4  ;;  %v937_v5 = vld [vmem:[#allocation6 + $0x1108] sm:$0xff] }
 0x1a7   : > { %v1005_v6 = vld [vmem:[#allocation6 + $0x1328] sm:$0xff]  ;;  %1913 = vmatpush.msra.mxu0 %v937_v5 }
 0x1a8   : > { %v1065_v7 = vld [vmem:[#allocation6 + $0x1508] sm:$0xff]  ;;  %1932 = vmatpush.msra.mxu1 %v1005_v6 }
 0x1a9   : > { %v1133_v8 = vld [vmem:[#allocation6 + $0x1728] sm:$0xff]  ;;  %1953 = vmatpush.msra.mxu2 %v1065_v7 }
 0x1aa   : > { %v933_v9 = vld [vmem:[#allocation6 + $0x10e8] sm:$0xff]  ;;  %1972 = vmatpush.msra.mxu3 %v1133_v8 }
 0x1ab   : > { %v1001_v10 = vld [vmem:[#allocation6 + $0x1308] sm:$0xff]  ;;  %1914 = vmatpush.msra.mxu0 %v933_v9 }
 0x1ac   : > { %v1061_v11 = vld [vmem:[#allocation6 + $0x14e8] sm:$0xff]  ;;  %1933 = vmatpush.msra.mxu1 %v1001_v10 }
 0x1ad   : > { %v1129_v12 = vld [vmem:[#allocation6 + $0x1708] sm:$0xff]  ;;  %1954 = vmatpush.msra.mxu2 %v1061_v11 }
 0x1ae   : > { %v929_v13 = vld [vmem:[#allocation6 + $0x10c8] sm:$0xff]  ;;  %1973 = vmatpush.msra.mxu3 %v1129_v12 }
 0x1af   : > { %v997_v14 = vld [vmem:[#allocation6 + $0x12e8] sm:$0xff]  ;;  %1915 = vmatpush.msra.mxu0 %v929_v13 }
 0x1b0   : > { %v1057_v15 = vld [vmem:[#allocation6 + $0x14c8] sm:$0xff]  ;;  %1934 = vmatpush.msra.mxu1 %v997_v14 }
 0x1b1   : > { %v1125_v16 = vld [vmem:[#allocation6 + $0x16e8] sm:$0xff]  ;;  %1955 = vmatpush.msra.mxu2 %v1057_v15 }
 0x1b2   : > { %v925_v17 = vld [vmem:[#allocation6 + $0x10a8] sm:$0xff]  ;;  %1974 = vmatpush.msra.mxu3 %v1125_v16 }
 0x1b3   : > { %v993_v18 = vld [vmem:[#allocation6 + $0x12c8] sm:$0xff]  ;;  %1916 = vmatpush.msra.mxu0 %v925_v17 }
 0x1b4   : > { %v1053_v19 = vld [vmem:[#allocation6 + $0x14a8] sm:$0xff]  ;;  %1935 = vmatpush.msra.mxu1 %v993_v18 }
 0x1b5   : > { %v1121_v20 = vld [vmem:[#allocation6 + $0x16c8] sm:$0xff]  ;;  %1956 = vmatpush.msra.mxu2 %v1053_v19 }
 0x1b6   : > { %v921_v21 = vld [vmem:[#allocation6 + $0x1088] sm:$0xff]  ;;  %1975 = vmatpush.msra.mxu3 %v1121_v20 }
 0x1b7   : > { %v989_v22 = vld [vmem:[#allocation6 + $0x12a8] sm:$0xff]  ;;  %1917 = vmatpush.msra.mxu0 %v921_v21 }
 0x1b8   : > { %v1049_v23 = vld [vmem:[#allocation6 + $0x1488] sm:$0xff]  ;;  %1936 = vmatpush.msra.mxu1 %v989_v22 }
 0x1b9   : > { %v1117_v24 = vld [vmem:[#allocation6 + $0x16a8] sm:$0xff]  ;;  %1957 = vmatpush.msra.mxu2 %v1049_v23 }
 0x1ba   : > { %v917_v25 = vld [vmem:[#allocation6 + $0x1068] sm:$0xff]  ;;  %1976 = vmatpush.msra.mxu3 %v1117_v24 }
 0x1bb   : > { %v985_v26 = vld [vmem:[#allocation6 + $0x1288] sm:$0xff]  ;;  %1918 = vmatpush.msra.mxu0 %v917_v25 }
 0x1bc   : > { %v1045_v28 = vld [vmem:[#allocation6 + $0x1468] sm:$0xff]  ;;  %1937 = vmatpush.msra.mxu1 %v985_v26 }
 0x1bd   : > { %v1113_v29 = vld [vmem:[#allocation6 + $0x1688] sm:$0xff]  ;;  %1958 = vmatpush.msra.mxu2 %v1045_v28 }
 0x1be   : > { %v913_v31 = vld [vmem:[#allocation6 + $0x1048] sm:$0xff]  ;;  %1977 = vmatpush.msra.mxu3 %v1113_v29 }
 0x1bf   : > { %v981_v32 = vld [vmem:[#allocation6 + $0x1268] sm:$0xff]  ;;  %1919 = vmatpush.msra.mxu0 %v913_v31 }
 0x1c0   : > { %v1041_v33 = vld [vmem:[#allocation6 + $0x1448] sm:$0xff]  ;;  %1938 = vmatpush.msra.mxu1 %v981_v32 }
 0x1c1   : > { %v1109_v34 = vld [vmem:[#allocation6 + $0x1668] sm:$0xff]  ;;  %1959 = vmatpush.msra.mxu2 %v1041_v33 }
 0x1c2   : > { %v909_v36 = vld [vmem:[#allocation6 + $0x1028] sm:$0xff]  ;;  %1978 = vmatpush.msra.mxu3 %v1109_v34 }
 0x1c3   : > { %v977_v37 = vld [vmem:[#allocation6 + $0x1248] sm:$0xff]  ;;  %1920 = vmatpush.msra.mxu0 %v909_v36 }
 0x1c4   : > { %v1037_v39 = vld [vmem:[#allocation6 + $0x1428] sm:$0xff]  ;;  %1939 = vmatpush.msra.mxu1 %v977_v37 }
 0x1c5   : > { %v1105_v40 = vld [vmem:[#allocation6 + $0x1648] sm:$0xff]  ;;  %1960 = vmatpush.msra.mxu2 %v1037_v39 }
 0x1c6   : > { %v905_v41 = vld [vmem:[#allocation6 + $0x1008] sm:$0xff]  ;;  %1979 = vmatpush.msra.mxu3 %v1105_v40 }
 0x1c7   : > { %v973_v42 = vld [vmem:[#allocation6 + $0x1228] sm:$0xff]  ;;  %1921 = vmatpush.msra.mxu0 %v905_v41 }
 0x1c8   : > { %v1033_v44 = vld [vmem:[#allocation6 + $0x1408] sm:$0xff]  ;;  %1940 = vmatpush.msra.mxu1 %v973_v42  ;;  %1922 = vmatmul.f32.vlgmr.msra.gmra.mxu0 %v3638_v53 }
 0x1c9   : > { %v1101_v45 = vld [vmem:[#allocation6 + $0x1628] sm:$0xff]  ;;  %1961 = vmatpush.msra.mxu2 %v1033_v44 }
 0x1ca   : > { %v1221_v47 = vld [vmem:[#allocation6 + $0x19e8] sm:$0xff]  ;;  %1980 = vmatpush.msra.mxu3 %v1101_v45  ;;  %1962 = vmatmul.f32.vlgmr.msra.gmra.mxu2 %v3639_v54  ;;  %v454_v54 = vld [vmem:[#allocation6 + $0x1f0] sm:$0xff] }
 0x1cb   : > { %v1349_v48 = vld [vmem:[#allocation6 + $0x1de8] sm:$0xff]  ;;  %1986 = vmatpush.msrb.mxu0 %v1221_v47 }
 0x1cc   : > { %v969_v50 = vld [vmem:[#allocation6 + $0x1208] sm:$0xff]  ;;  %2026 = vmatpush.msrb.mxu2 %v1349_v48 }
 0x1cd   : > { %v1097_v51 = vld [vmem:[#allocation6 + $0x1608] sm:$0xff]  ;;  %1941 = vmatpush.msra.mxu1 %v969_v50 }
 0x1ce   : > { %v1217_v55 = vld [vmem:[#allocation6 + $0x19c8] sm:$0xff]  ;;  %1981 = vmatpush.msra.mxu3 %v1097_v51 }
 0x1cf   : > { %v1285_v56 = vld [vmem:[#allocation6 + $0x1be8] sm:$0xff]  ;;  %1982 = vmatmul.f32.vlgmr.msra.gmra.mxu3 %v3641_v60  ;;  %1987 = vmatpush.msrb.mxu0 %v1217_v55  ;;  %v582_v55 = vld [vmem:[#allocation6 + $0x5f0] sm:$0xff] }
 0x1d0   : > { %v1345_v57 = vld [vmem:[#allocation6 + $0x1dc8] sm:$0xff]  ;;  %2006 = vmatpush.msrb.mxu1 %v1285_v56  ;;  %v450_v60 = vld [vmem:[#allocation6 + $0x1d0] sm:$0xff] }
 0x1d1   : > { %v1413_v58 = vld [vmem:[#allocation6 + $0x1fe8] sm:$0xff]  ;;  %2027 = vmatpush.msrb.mxu2 %v1345_v57 }
 0x1d2   : > { %v3640_v59 = vld [vmem:[%s4129_s13 + $0x48] sm:$0xff]  ;;  %2046 = vmatpush.msrb.mxu3 %v1413_v58  ;;  %v3642_v58 = vld [vmem:[%s4129_s13 + $0x60] sm:$0xff] }
 0x1d3   : > { %1942 = vmatmul.f32.vlgmr.msra.gmra.mxu1 %v3640_v59  ;;  %v1213_v61 = vld [vmem:[#allocation6 + $0x19a8] sm:$0xff]  ;;  %v3643_v59 = vld [vmem:[%s4129_s13 + $0x70] sm:$0xff] }
 0x1d4   : > { %v1281_v62 = vld [vmem:[#allocation6 + $0x1bc8] sm:$0xff]  ;;  %1988 = vmatpush.msrb.mxu0 %v1213_v61  ;;  %v518_v61 = vld [vmem:[#allocation6 + $0x3f0] sm:$0xff] }
 0x1d5   : > { %v1341_v63 = vld [vmem:[#allocation6 + $0x1da8] sm:$0xff]  ;;  %2007 = vmatpush.msrb.mxu1 %v1281_v62  ;;  %v578_v62 = vld [vmem:[#allocation6 + $0x5d0] sm:$0xff] }
 0x1d6   : > { %v1409_v0 = vld [vmem:[#allocation6 + $0x1fc8] sm:$0xff]  ;;  %2028 = vmatpush.msrb.mxu2 %v1341_v63  ;;  %v646_v63 = vld [vmem:[#allocation6 + $0x7f0] sm:$0xff] }
 0x1d7   : > { %v1209_v1 = vld [vmem:[#allocation6 + $0x1988] sm:$0xff]  ;;  %2047 = vmatpush.msrb.mxu3 %v1409_v0 }
 0x1d8   : > { %v1277_v2 = vld [vmem:[#allocation6 + $0x1ba8] sm:$0xff]  ;;  %1989 = vmatpush.msrb.mxu0 %v1209_v1  ;;  %v3645_v1 = vld [vmem:[%s4129_s13 + $0x78] sm:$0xff] }
 0x1d9   : > { %v1337_v3 = vld [vmem:[#allocation6 + $0x1d88] sm:$0xff]  ;;  %2008 = vmatpush.msrb.mxu1 %v1277_v2  ;;  %v446_v2 = vld [vmem:[#allocation6 + $0x1b0] sm:$0xff] }
 0x1da   : > { %v1405_v4 = vld [vmem:[#allocation6 + $0x1fa8] sm:$0xff]  ;;  %2029 = vmatpush.msrb.mxu2 %v1337_v3  ;;  %v514_v3 = vld [vmem:[#allocation6 + $0x3d0] sm:$0xff] }
 0x1db   : > { %v1205_v5 = vld [vmem:[#allocation6 + $0x1968] sm:$0xff]  ;;  %2048 = vmatpush.msrb.mxu3 %v1405_v4  ;;  %v574_v4 = vld [vmem:[#allocation6 + $0x5b0] sm:$0xff] }
 0x1dc   : > { %v1273_v6 = vld [vmem:[#allocation6 + $0x1b88] sm:$0xff]  ;;  %1990 = vmatpush.msrb.mxu0 %v1205_v5  ;;  %v642_v5 = vld [vmem:[#allocation6 + $0x7d0] sm:$0xff] }
 0x1dd   : > { %v1333_v7 = vld [vmem:[#allocation6 + $0x1d68] sm:$0xff]  ;;  %2009 = vmatpush.msrb.mxu1 %v1273_v6  ;;  %v442_v6 = vld [vmem:[#allocation6 + $0x190] sm:$0xff] }
 0x1de   : > { %v1401_v8 = vld [vmem:[#allocation6 + $0x1f88] sm:$0xff]  ;;  %2030 = vmatpush.msrb.mxu2 %v1333_v7  ;;  %v510_v7 = vld [vmem:[#allocation6 + $0x3b0] sm:$0xff] }
 0x1df   : > { %v1201_v9 = vld [vmem:[#allocation6 + $0x1948] sm:$0xff]  ;;  %2049 = vmatpush.msrb.mxu3 %v1401_v8  ;;  %v570_v8 = vld [vmem:[#allocation6 + $0x590] sm:$0xff] }
 0x1e0   : > { %v1269_v10 = vld [vmem:[#allocation6 + $0x1b68] sm:$0xff]  ;;  %1991 = vmatpush.msrb.mxu0 %v1201_v9  ;;  %v638_v9 = vld [vmem:[#allocation6 + $0x7b0] sm:$0xff] }
 0x1e1   : > { %v1329_v11 = vld [vmem:[#allocation6 + $0x1d48] sm:$0xff]  ;;  %2010 = vmatpush.msrb.mxu1 %v1269_v10  ;;  %v438_v10 = vld [vmem:[#allocation6 + $0x170] sm:$0xff] }
 0x1e2   : > { %v1397_v12 = vld [vmem:[#allocation6 + $0x1f68] sm:$0xff]  ;;  %2031 = vmatpush.msrb.mxu2 %v1329_v11  ;;  %v506_v11 = vld [vmem:[#allocation6 + $0x390] sm:$0xff] }
 0x1e3   : > { %v1197_v13 = vld [vmem:[#allocation6 + $0x1928] sm:$0xff]  ;;  %2050 = vmatpush.msrb.mxu3 %v1397_v12  ;;  %v566_v12 = vld [vmem:[#allocation6 + $0x570] sm:$0xff] }
 0x1e4   : > { %v1265_v14 = vld [vmem:[#allocation6 + $0x1b48] sm:$0xff]  ;;  %1992 = vmatpush.msrb.mxu0 %v1197_v13  ;;  %v634_v13 = vld [vmem:[#allocation6 + $0x790] sm:$0xff] }
 0x1e5   : > { %v1325_v15 = vld [vmem:[#allocation6 + $0x1d28] sm:$0xff]  ;;  %2011 = vmatpush.msrb.mxu1 %v1265_v14  ;;  %v434_v14 = vld [vmem:[#allocation6 + $0x150] sm:$0xff] }
 0x1e6   : > { %v1393_v16 = vld [vmem:[#allocation6 + $0x1f48] sm:$0xff]  ;;  %2032 = vmatpush.msrb.mxu2 %v1325_v15  ;;  %v502_v15 = vld [vmem:[#allocation6 + $0x370] sm:$0xff] }
 0x1e7   : > { %v1193_v17 = vld [vmem:[#allocation6 + $0x1908] sm:$0xff]  ;;  %2051 = vmatpush.msrb.mxu3 %v1393_v16  ;;  %v562_v16 = vld [vmem:[#allocation6 + $0x550] sm:$0xff] }
 0x1e8   : > { %v1261_v18 = vld [vmem:[#allocation6 + $0x1b28] sm:$0xff]  ;;  %1993 = vmatpush.msrb.mxu0 %v1193_v17  ;;  %v630_v17 = vld [vmem:[#allocation6 + $0x770] sm:$0xff] }
 0x1e9   : > { %v1321_v19 = vld [vmem:[#allocation6 + $0x1d08] sm:$0xff]  ;;  %2012 = vmatpush.msrb.mxu1 %v1261_v18  ;;  %v430_v18 = vld [vmem:[#allocation6 + $0x130] sm:$0xff] }
 0x1ea   : > { %v1389_v20 = vld [vmem:[#allocation6 + $0x1f28] sm:$0xff]  ;;  %2033 = vmatpush.msrb.mxu2 %v1321_v19  ;;  %v498_v19 = vld [vmem:[#allocation6 + $0x350] sm:$0xff] }
 0x1eb   : > { %v1189_v21 = vld [vmem:[#allocation6 + $0x18e8] sm:$0xff]  ;;  %2052 = vmatpush.msrb.mxu3 %v1389_v20  ;;  %v558_v20 = vld [vmem:[#allocation6 + $0x530] sm:$0xff] }
 0x1ec   : > { %v1257_v22 = vld [vmem:[#allocation6 + $0x1b08] sm:$0xff]  ;;  %1994 = vmatpush.msrb.mxu0 %v1189_v21  ;;  %v626_v21 = vld [vmem:[#allocation6 + $0x750] sm:$0xff] }
 0x1ed   : > { %v1317_v23 = vld [vmem:[#allocation6 + $0x1ce8] sm:$0xff]  ;;  %2013 = vmatpush.msrb.mxu1 %v1257_v22  ;;  %v426_v22 = vld [vmem:[#allocation6 + $0x110] sm:$0xff] }
 0x1ee   : > { %v1385_v24 = vld [vmem:[#allocation6 + $0x1f08] sm:$0xff]  ;;  %2034 = vmatpush.msrb.mxu2 %v1317_v23  ;;  %v494_v23 = vld [vmem:[#allocation6 + $0x330] sm:$0xff] }
 0x1ef   : > { %v1185_v25 = vld [vmem:[#allocation6 + $0x18c8] sm:$0xff]  ;;  %2053 = vmatpush.msrb.mxu3 %v1385_v24  ;;  %v554_v24 = vld [vmem:[#allocation6 + $0x510] sm:$0xff] }
 0x1f0   : > { %v1253_v26 = vld [vmem:[#allocation6 + $0x1ae8] sm:$0xff]  ;;  %1995 = vmatpush.msrb.mxu0 %v1185_v25  ;;  %v622_v25 = vld [vmem:[#allocation6 + $0x730] sm:$0xff] }
 0x1f1   : > { %v1313_v27 = vld [vmem:[#allocation6 + $0x1cc8] sm:$0xff]  ;;  %2014 = vmatpush.msrb.mxu1 %v1253_v26  ;;  %v422_v26 = vld [vmem:[#allocation6 + $0xf0] sm:$0xff] }
 0x1f2   : > { %v1381_v28 = vld [vmem:[#allocation6 + $0x1ee8] sm:$0xff]  ;;  %2035 = vmatpush.msrb.mxu2 %v1313_v27  ;;  %v490_v27 = vld [vmem:[#allocation6 + $0x310] sm:$0xff] }
 0x1f3   : > { %v1181_v29 = vld [vmem:[#allocation6 + $0x18a8] sm:$0xff]  ;;  %2054 = vmatpush.msrb.mxu3 %v1381_v28  ;;  %v550_v28 = vld [vmem:[#allocation6 + $0x4f0] sm:$0xff] }
 0x1f4   : > { %v1249_v30 = vld [vmem:[#allocation6 + $0x1ac8] sm:$0xff]  ;;  %1996 = vmatpush.msrb.mxu0 %v1181_v29  ;;  %v618_v29 = vld [vmem:[#allocation6 + $0x710] sm:$0xff] }
 0x1f5   : > { %v1309_v31 = vld [vmem:[#allocation6 + $0x1ca8] sm:$0xff]  ;;  %2015 = vmatpush.msrb.mxu1 %v1249_v30  ;;  %v418_v30 = vld [vmem:[#allocation6 + $0xd0] sm:$0xff] }
 0x1f6   : > { %v1377_v32 = vld [vmem:[#allocation6 + $0x1ec8] sm:$0xff]  ;;  %2036 = vmatpush.msrb.mxu2 %v1309_v31  ;;  %v486_v31 = vld [vmem:[#allocation6 + $0x2f0] sm:$0xff] }
 0x1f7   : > { %v1177_v33 = vld [vmem:[#allocation6 + $0x1888] sm:$0xff]  ;;  %2055 = vmatpush.msrb.mxu3 %v1377_v32  ;;  %v546_v32 = vld [vmem:[#allocation6 + $0x4d0] sm:$0xff] }
 0x1f8   : > { %v1245_v34 = vld [vmem:[#allocation6 + $0x1aa8] sm:$0xff]  ;;  %1997 = vmatpush.msrb.mxu0 %v1177_v33  ;;  %v614_v33 = vld [vmem:[#allocation6 + $0x6f0] sm:$0xff] }
 0x1f9   : > { %v1305_v35 = vld [vmem:[#allocation6 + $0x1c88] sm:$0xff]  ;;  %2016 = vmatpush.msrb.mxu1 %v1245_v34  ;;  %v414_v34 = vld [vmem:[#allocation6 + $0xb0] sm:$0xff] }
 0x1fa   : > { %v1373_v36 = vld [vmem:[#allocation6 + $0x1ea8] sm:$0xff]  ;;  %2037 = vmatpush.msrb.mxu2 %v1305_v35  ;;  %v482_v35 = vld [vmem:[#allocation6 + $0x2d0] sm:$0xff] }
 0x1fb   : > { %v1173_v37 = vld [vmem:[#allocation6 + $0x1868] sm:$0xff]  ;;  %2056 = vmatpush.msrb.mxu3 %v1373_v36  ;;  %v542_v36 = vld [vmem:[#allocation6 + $0x4b0] sm:$0xff] }
 0x1fc   : > { %v1241_v38 = vld [vmem:[#allocation6 + $0x1a88] sm:$0xff]  ;;  %1998 = vmatpush.msrb.mxu0 %v1173_v37  ;;  %v610_v37 = vld [vmem:[#allocation6 + $0x6d0] sm:$0xff] }
 0x1fd   : > { %v1301_v39 = vld [vmem:[#allocation6 + $0x1c68] sm:$0xff]  ;;  %2017 = vmatpush.msrb.mxu1 %v1241_v38  ;;  %v410_v38 = vld [vmem:[#allocation6 + $0x90] sm:$0xff] }
 0x1fe   : > { %v1369_v40 = vld [vmem:[#allocation6 + $0x1e88] sm:$0xff]  ;;  %2038 = vmatpush.msrb.mxu2 %v1301_v39  ;;  %v478_v39 = vld [vmem:[#allocation6 + $0x2b0] sm:$0xff] }
 0x1ff   : > { %v1169_v41 = vld [vmem:[#allocation6 + $0x1848] sm:$0xff]  ;;  %2057 = vmatpush.msrb.mxu3 %v1369_v40  ;;  %v538_v40 = vld [vmem:[#allocation6 + $0x490] sm:$0xff] }
 0x200   : > { %v1237_v42 = vld [vmem:[#allocation6 + $0x1a68] sm:$0xff]  ;;  %1999 = vmatpush.msrb.mxu0 %v1169_v41  ;;  %v606_v41 = vld [vmem:[#allocation6 + $0x6b0] sm:$0xff] }
 0x201   : > { %v1297_v43 = vld [vmem:[#allocation6 + $0x1c48] sm:$0xff]  ;;  %2018 = vmatpush.msrb.mxu1 %v1237_v42  ;;  %v406_v42 = vld [vmem:[#allocation6 + $0x70] sm:$0xff] }
 0x202   : > { %v1365_v44 = vld [vmem:[#allocation6 + $0x1e68] sm:$0xff]  ;;  %2039 = vmatpush.msrb.mxu2 %v1297_v43  ;;  %v474_v43 = vld [vmem:[#allocation6 + $0x290] sm:$0xff] }
 0x203   : > { %v1165_v45 = vld [vmem:[#allocation6 + $0x1828] sm:$0xff]  ;;  %2058 = vmatpush.msrb.mxu3 %v1365_v44  ;;  %v534_v44 = vld [vmem:[#allocation6 + $0x470] sm:$0xff] }
 0x204   : > { %v1233_v46 = vld [vmem:[#allocation6 + $0x1a48] sm:$0xff]  ;;  %2000 = vmatpush.msrb.mxu0 %v1165_v45  ;;  %v602_v45 = vld [vmem:[#allocation6 + $0x690] sm:$0xff] }
 0x205   : > { %v1293_v47 = vld [vmem:[#allocation6 + $0x1c28] sm:$0xff]  ;;  %2019 = vmatpush.msrb.mxu1 %v1233_v46  ;;  %v402_v46 = vld [vmem:[#allocation6 + $0x50] sm:$0xff] }
 0x206   : > { %v1361_v48 = vld [vmem:[#allocation6 + $0x1e48] sm:$0xff]  ;;  %2040 = vmatpush.msrb.mxu2 %v1293_v47  ;;  %v470_v47 = vld [vmem:[#allocation6 + $0x270] sm:$0xff] }
 0x207   : > { %v1161_v49 = vld [vmem:[#allocation6 + $0x1808] sm:$0xff]  ;;  %2059 = vmatpush.msrb.mxu3 %v1361_v48  ;;  %v530_v48 = vld [vmem:[#allocation6 + $0x450] sm:$0xff] }
 0x208   : > { %v1229_v50 = vld [vmem:[#allocation6 + $0x1a28] sm:$0xff]  ;;  %2001 = vmatpush.msrb.mxu0 %v1161_v49  ;;  %v598_v49 = vld [vmem:[#allocation6 + $0x670] sm:$0xff] }
 0x209   : > { %v1289_v51 = vld [vmem:[#allocation6 + $0x1c08] sm:$0xff]  ;;  %2020 = vmatpush.msrb.mxu1 %v1229_v50  ;;  %2002 = vmatmul.f32.vlgmr.msrb.gmra.mxu0 %v3642_v58  ;;  %v398_v50 = vld [vmem:[#allocation6 + $0x30] sm:$0xff] }
 0x20a   : > { %v1357_v53 = vld [vmem:[#allocation6 + $0x1e28] sm:$0xff]  ;;  %2041 = vmatpush.msrb.mxu2 %v1289_v51  ;;  %2066 = vmatpush.msra.mxu0 %v454_v54  ;;  %v466_v51 = vld [vmem:[#allocation6 + $0x250] sm:$0xff] }
 0x20b   : > { %2060 = vmatpush.msrb.mxu3 %v1357_v53  ;;  %v1225_v56 = vld [vmem:[#allocation6 + $0x1a08] sm:$0xff]  ;;  %2042 = vmatmul.f32.vlgmr.msrb.gmra.mxu2 %v3643_v59  ;;  %v526_v53 = vld [vmem:[#allocation6 + $0x430] sm:$0xff] }
 0x20c   : > { %v1353_v57 = vld [vmem:[#allocation6 + $0x1e08] sm:$0xff]  ;;  %2106 = vmatpush.msra.mxu2 %v582_v55  ;;  %2021 = vmatpush.msrb.mxu1 %v1225_v56  ;;  %v594_v54 = vld [vmem:[#allocation6 + $0x650] sm:$0xff] }
 0x20d   : > { %2061 = vmatpush.msrb.mxu3 %v1353_v57  ;;  %v3644_v0 = vld [vmem:[%s4129_s13 + $0x68] sm:$0xff]  ;;  %2067 = vmatpush.msra.mxu0 %v450_v60  ;;  %v394_v55 = vld [vmem:[#allocation6 + $0x10] sm:$0xff] }
 0x20e   : > { %2022 = vmatmul.f32.vlgmr.msrb.gmra.mxu1 %v3644_v0  ;;  %2062 = vmatmul.f32.vlgmr.msrb.gmra.mxu3 %v3645_v1  ;;  %v462_v56 = vld [vmem:[#allocation6 + $0x230] sm:$0xff] }
 0x20f   : > { %2086 = vmatpush.msra.mxu1 %v518_v61  ;;  %2107 = vmatpush.msra.mxu2 %v578_v62  ;;  %v522_v57 = vld [vmem:[#allocation6 + $0x410] sm:$0xff] }
 0x210   : > { %2126 = vmatpush.msra.mxu3 %v646_v63  ;;  %2068 = vmatpush.msra.mxu0 %v446_v2  ;;  %v590_v58 = vld [vmem:[#allocation6 + $0x630] sm:$0xff] }
 0x211   : > { %2087 = vmatpush.msra.mxu1 %v514_v3  ;;  %2108 = vmatpush.msra.mxu2 %v574_v4  ;;  %v710_v59 = vld [vmem:[#allocation6 + $0x9f0] sm:$0xff] }
 0x212   : > { %2127 = vmatpush.msra.mxu3 %v642_v5  ;;  %2069 = vmatpush.msra.mxu0 %v442_v6  ;;  %v838_v60 = vld [vmem:[#allocation6 + $0xdf0] sm:$0xff] }
 0x213   : > { %2088 = vmatpush.msra.mxu1 %v510_v7  ;;  %2109 = vmatpush.msra.mxu2 %v570_v8  ;;  %v458_v61 = vld [vmem:[#allocation6 + $0x210] sm:$0xff] }
 0x214   : > { %2128 = vmatpush.msra.mxu3 %v638_v9  ;;  %2070 = vmatpush.msra.mxu0 %v438_v10  ;;  %v586_v62 = vld [vmem:[#allocation6 + $0x610] sm:$0xff] }
 0x215   : > { %2089 = vmatpush.msra.mxu1 %v506_v11  ;;  %2110 = vmatpush.msra.mxu2 %v566_v12  ;;  %v706_v63 = vld [vmem:[#allocation6 + $0x9d0] sm:$0xff] }
 0x216   : > { %2129 = vmatpush.msra.mxu3 %v634_v13  ;;  %2071 = vmatpush.msra.mxu0 %v434_v14  ;;  %v774_v0 = vld [vmem:[#allocation6 + $0xbf0] sm:$0xff] }
 0x217   : > { %2090 = vmatpush.msra.mxu1 %v502_v15  ;;  %2111 = vmatpush.msra.mxu2 %v562_v16  ;;  %v834_v1 = vld [vmem:[#allocation6 + $0xdd0] sm:$0xff] }
 0x218   : > { %2130 = vmatpush.msra.mxu3 %v630_v17  ;;  %2072 = vmatpush.msra.mxu0 %v430_v18  ;;  %v902_v2 = vld [vmem:[#allocation6 + $0xff0] sm:$0xff] }
 0x219   : > { %2091 = vmatpush.msra.mxu1 %v498_v19  ;;  %2112 = vmatpush.msra.mxu2 %v558_v20  ;;  %v702_v3 = vld [vmem:[#allocation6 + $0x9b0] sm:$0xff] }
 0x21a   : > { %2131 = vmatpush.msra.mxu3 %v626_v21  ;;  %2073 = vmatpush.msra.mxu0 %v426_v22  ;;  %v770_v4 = vld [vmem:[#allocation6 + $0xbd0] sm:$0xff] }
 0x21b   : > { %2092 = vmatpush.msra.mxu1 %v494_v23  ;;  %2113 = vmatpush.msra.mxu2 %v554_v24  ;;  %v830_v5 = vld [vmem:[#allocation6 + $0xdb0] sm:$0xff] }
 0x21c   : > { %2132 = vmatpush.msra.mxu3 %v622_v25  ;;  %2074 = vmatpush.msra.mxu0 %v422_v26  ;;  %v898_v6 = vld [vmem:[#allocation6 + $0xfd0] sm:$0xff] }
 0x21d   : > { %2093 = vmatpush.msra.mxu1 %v490_v27  ;;  %2114 = vmatpush.msra.mxu2 %v550_v28  ;;  %v698_v7 = vld [vmem:[#allocation6 + $0x990] sm:$0xff] }
 0x21e   : > { %2133 = vmatpush.msra.mxu3 %v618_v29  ;;  %2075 = vmatpush.msra.mxu0 %v418_v30  ;;  %v766_v8 = vld [vmem:[#allocation6 + $0xbb0] sm:$0xff] }
 0x21f   : > { %2094 = vmatpush.msra.mxu1 %v486_v31  ;;  %2115 = vmatpush.msra.mxu2 %v546_v32  ;;  %v826_v9 = vld [vmem:[#allocation6 + $0xd90] sm:$0xff] }
 0x220   : > { %2134 = vmatpush.msra.mxu3 %v614_v33  ;;  %2076 = vmatpush.msra.mxu0 %v414_v34  ;;  %v894_v10 = vld [vmem:[#allocation6 + $0xfb0] sm:$0xff] }
 0x221   : > { %2095 = vmatpush.msra.mxu1 %v482_v35  ;;  %2116 = vmatpush.msra.mxu2 %v542_v36  ;;  %v694_v11 = vld [vmem:[#allocation6 + $0x970] sm:$0xff] }
 0x222   : > { %2135 = vmatpush.msra.mxu3 %v610_v37  ;;  %2077 = vmatpush.msra.mxu0 %v410_v38  ;;  %v762_v12 = vld [vmem:[#allocation6 + $0xb90] sm:$0xff] }
 0x223   : > { %2096 = vmatpush.msra.mxu1 %v478_v39  ;;  %2117 = vmatpush.msra.mxu2 %v538_v40  ;;  %v822_v13 = vld [vmem:[#allocation6 + $0xd70] sm:$0xff] }
 0x224   : > { %2136 = vmatpush.msra.mxu3 %v606_v41  ;;  %2078 = vmatpush.msra.mxu0 %v406_v42  ;;  %v890_v14 = vld [vmem:[#allocation6 + $0xf90] sm:$0xff] }
 0x225   : > { %2097 = vmatpush.msra.mxu1 %v474_v43  ;;  %2118 = vmatpush.msra.mxu2 %v534_v44  ;;  %v690_v15 = vld [vmem:[#allocation6 + $0x950] sm:$0xff] }
 0x226   : > { %2137 = vmatpush.msra.mxu3 %v602_v45  ;;  %2079 = vmatpush.msra.mxu0 %v402_v46  ;;  %v758_v16 = vld [vmem:[#allocation6 + $0xb70] sm:$0xff] }
 0x227   : > { %2098 = vmatpush.msra.mxu1 %v470_v47  ;;  %2119 = vmatpush.msra.mxu2 %v530_v48  ;;  %v818_v17 = vld [vmem:[#allocation6 + $0xd50] sm:$0xff] }
 0x228   : > { %2138 = vmatpush.msra.mxu3 %v598_v49  ;;  %2080 = vmatpush.msra.mxu0 %v398_v50  ;;  %v886_v18 = vld [vmem:[#allocation6 + $0xf70] sm:$0xff] }
 0x229   : > { %2099 = vmatpush.msra.mxu1 %v466_v51  ;;  %2120 = vmatpush.msra.mxu2 %v526_v53  ;;  %v686_v19 = vld [vmem:[#allocation6 + $0x930] sm:$0xff] }
 0x22a   : > { %2139 = vmatpush.msra.mxu3 %v594_v54  ;;  %2081 = vmatpush.msra.mxu0 %v394_v55  ;;  %v754_v20 = vld [vmem:[#allocation6 + $0xb50] sm:$0xff] }
 0x22b   : > { %2100 = vmatpush.msra.mxu1 %v462_v56  ;;  %2121 = vmatpush.msra.mxu2 %v522_v57  ;;  %v814_v21 = vld [vmem:[#allocation6 + $0xd30] sm:$0xff] }
 0x22c   : > { %2140 = vmatpush.msra.mxu3 %v590_v58  ;;  %2146 = vmatpush.msrb.mxu0 %v710_v59  ;;  %v882_v22 = vld [vmem:[#allocation6 + $0xf50] sm:$0xff] }
 0x22d   : > { %2186 = vmatpush.msrb.mxu2 %v838_v60  ;;  %2101 = vmatpush.msra.mxu1 %v458_v61  ;;  %v682_v23 = vld [vmem:[#allocation6 + $0x910] sm:$0xff] }
 0x22e   : > { %2141 = vmatpush.msra.mxu3 %v586_v62  ;;  %2147 = vmatpush.msrb.mxu0 %v706_v63  ;;  %v750_v24 = vld [vmem:[#allocation6 + $0xb30] sm:$0xff] }
 0x22f   : > { %2166 = vmatpush.msrb.mxu1 %v774_v0  ;;  %2187 = vmatpush.msrb.mxu2 %v834_v1  ;;  %v810_v25 = vld [vmem:[#allocation6 + $0xd10] sm:$0xff]  ;;  %v3646_v0 = vld [vmem:[%s4129_s13] sm:$0xff] }
 0x230   : > { %2206 = vmatpush.msrb.mxu3 %v902_v2  ;;  %2148 = vmatpush.msrb.mxu0 %v702_v3  ;;  %v878_v26 = vld [vmem:[#allocation6 + $0xf30] sm:$0xff] }
 0x231   : > { %2167 = vmatpush.msrb.mxu1 %v770_v4  ;;  %2188 = vmatpush.msrb.mxu2 %v830_v5  ;;  %v678_v27 = vld [vmem:[#allocation6 + $0x8f0] sm:$0xff] }
 0x232   : > { %2207 = vmatpush.msrb.mxu3 %v898_v6  ;;  %2149 = vmatpush.msrb.mxu0 %v698_v7  ;;  %v746_v28 = vld [vmem:[#allocation6 + $0xb10] sm:$0xff]  ;;  %v3648_v6 = vld [vmem:[%s4129_s13 + $0x8] sm:$0xff]  ;;  %v3649_v7 = vld [vmem:[%s4129_s13 + $0x18] sm:$0xff] }
 0x233   : > { %2168 = vmatpush.msrb.mxu1 %v766_v8  ;;  %2189 = vmatpush.msrb.mxu2 %v826_v9  ;;  %v806_v29 = vld [vmem:[#allocation6 + $0xcf0] sm:$0xff] }
 0x234   : > { %2208 = vmatpush.msrb.mxu3 %v894_v10  ;;  %2150 = vmatpush.msrb.mxu0 %v694_v11  ;;  %v874_v30 = vld [vmem:[#allocation6 + $0xf10] sm:$0xff] }
 0x235   : > { %2169 = vmatpush.msrb.mxu1 %v762_v12  ;;  %2190 = vmatpush.msrb.mxu2 %v822_v13  ;;  %v674_v31 = vld [vmem:[#allocation6 + $0x8d0] sm:$0xff] }
 0x236   : > { %2209 = vmatpush.msrb.mxu3 %v890_v14  ;;  %2151 = vmatpush.msrb.mxu0 %v690_v15  ;;  %v742_v32 = vld [vmem:[#allocation6 + $0xaf0] sm:$0xff] }
 0x237   : > { %2170 = vmatpush.msrb.mxu1 %v758_v16  ;;  %2191 = vmatpush.msrb.mxu2 %v818_v17  ;;  %v802_v33 = vld [vmem:[#allocation6 + $0xcd0] sm:$0xff] }
 0x238   : > { %2210 = vmatpush.msrb.mxu3 %v886_v18  ;;  %2152 = vmatpush.msrb.mxu0 %v686_v19  ;;  %v870_v34 = vld [vmem:[#allocation6 + $0xef0] sm:$0xff] }
 0x239   : > { %2171 = vmatpush.msrb.mxu1 %v754_v20  ;;  %2192 = vmatpush.msrb.mxu2 %v814_v21  ;;  %v670_v35 = vld [vmem:[#allocation6 + $0x8b0] sm:$0xff] }
 0x23a   : > { %2211 = vmatpush.msrb.mxu3 %v882_v22  ;;  %2153 = vmatpush.msrb.mxu0 %v682_v23  ;;  %v738_v36 = vld [vmem:[#allocation6 + $0xad0] sm:$0xff] }
 0x23b   : > { %2172 = vmatpush.msrb.mxu1 %v750_v24  ;;  %2193 = vmatpush.msrb.mxu2 %v810_v25  ;;  %v798_v37 = vld [vmem:[#allocation6 + $0xcb0] sm:$0xff]  ;;  %v3651_v24 = vld [vmem:[%s4129_s13 + $0x20] sm:$0xff] }
 0x23c   : > { %2212 = vmatpush.msrb.mxu3 %v878_v26  ;;  %2154 = vmatpush.msrb.mxu0 %v678_v27  ;;  %v866_v38 = vld [vmem:[#allocation6 + $0xed0] sm:$0xff]  ;;  %v3652_v26 = vld [vmem:[%s4129_s13 + $0x38] sm:$0xff] }
 0x23d   : > { %2173 = vmatpush.msrb.mxu1 %v746_v28  ;;  %2194 = vmatpush.msrb.mxu2 %v806_v29  ;;  %v666_v39 = vld [vmem:[#allocation6 + $0x890] sm:$0xff] }
 0x23e   : > { %2213 = vmatpush.msrb.mxu3 %v874_v30  ;;  %2155 = vmatpush.msrb.mxu0 %v674_v31  ;;  %v734_v40 = vld [vmem:[#allocation6 + $0xab0] sm:$0xff]  ;;  %v3653_v31 = vld [vmem:[%s4129_s13 + $0x28] sm:$0xff] }
 0x23f   : > { %2174 = vmatpush.msrb.mxu1 %v742_v32  ;;  %2195 = vmatpush.msrb.mxu2 %v802_v33  ;;  %v794_v41 = vld [vmem:[#allocation6 + $0xc90] sm:$0xff] }
 0x240   : > { %2214 = vmatpush.msrb.mxu3 %v870_v34  ;;  %2156 = vmatpush.msrb.mxu0 %v670_v35  ;;  %v862_v42 = vld [vmem:[#allocation6 + $0xeb0] sm:$0xff] }
 0x241   : > { %2175 = vmatpush.msrb.mxu1 %v738_v36  ;;  %2196 = vmatpush.msrb.mxu2 %v798_v37  ;;  %v662_v43 = vld [vmem:[#allocation6 + $0x870] sm:$0xff] }
 0x242   : > { %2215 = vmatpush.msrb.mxu3 %v866_v38  ;;  %v730_v44 = vld [vmem:[#allocation6 + $0xa90] sm:$0xff]  ;;  %2157 = vmatpush.msrb.mxu0 %v666_v39 }
 0x243   : > { %2176 = vmatpush.msrb.mxu1 %v734_v40  ;;  %v790_v45 = vld [vmem:[#allocation6 + $0xc70] sm:$0xff]  ;;  %2197 = vmatpush.msrb.mxu2 %v794_v41 }
 0x244   : > { %v858_v46 = vld [vmem:[#allocation6 + $0xe90] sm:$0xff]  ;;  %2216 = vmatpush.msrb.mxu3 %v862_v42  ;;  %2158 = vmatpush.msrb.mxu0 %v662_v43 }
 0x245   : > { %v658_v47 = vld [vmem:[#allocation6 + $0x850] sm:$0xff]  ;;  %2177 = vmatpush.msrb.mxu1 %v730_v44  ;;  %2198 = vmatpush.msrb.mxu2 %v790_v45 }
 0x246   : > { %v726_v48 = vld [vmem:[#allocation6 + $0xa70] sm:$0xff]  ;;  %2217 = vmatpush.msrb.mxu3 %v858_v46  ;;  %2159 = vmatpush.msrb.mxu0 %v658_v47 }
 0x247   : > { %v786_v49 = vld [vmem:[#allocation6 + $0xc50] sm:$0xff]  ;;  %2178 = vmatpush.msrb.mxu1 %v726_v48  ;;  %2082 = vmatmul.f32.vlgmr.msra.gmra.mxu0 %v3646_v0 }
 0x248   : > { %v854_v50 = vld [vmem:[#allocation6 + $0xe70] sm:$0xff]  ;;  %2199 = vmatpush.msrb.mxu2 %v786_v49  ;;  %2102 = vmatmul.f32.vlgmr.msra.gmra.mxu1 %v3648_v6 }
 0x249   : > { %v654_v51 = vld [vmem:[#allocation6 + $0x830] sm:$0xff]  ;;  %2218 = vmatpush.msrb.mxu3 %v854_v50 }
 0x24a   : > { %v722_v53 = vld [vmem:[#allocation6 + $0xa50] sm:$0xff]  ;;  %2160 = vmatpush.msrb.mxu0 %v654_v51  ;;  %2142 = vmatmul.f32.vlgmr.msra.gmra.mxu3 %v3649_v7 }
 0x24b   : > { %v782_v54 = vld [vmem:[#allocation6 + $0xc30] sm:$0xff]  ;;  %2179 = vmatpush.msrb.mxu1 %v722_v53 }
 0x24c   : > { %v850_v55 = vld [vmem:[#allocation6 + $0xe50] sm:$0xff]  ;;  %2200 = vmatpush.msrb.mxu2 %v782_v54 }
 0x24d   : > { %v650_v56 = vld [vmem:[#allocation6 + $0x810] sm:$0xff]  ;;  %2219 = vmatpush.msrb.mxu3 %v850_v55 }
 0x24e   : > { %v718_v57 = vld [vmem:[#allocation6 + $0xa30] sm:$0xff]  ;;  %2161 = vmatpush.msrb.mxu0 %v650_v56 }
 0x24f   : > { %v778_v58 = vld [vmem:[#allocation6 + $0xc10] sm:$0xff]  ;;  %2180 = vmatpush.msrb.mxu1 %v718_v57  ;;  %2162 = vmatmul.f32.vlgmr.msrb.gmra.mxu0 %v3651_v24 }
 0x250   : > { %v846_v59 = vld [vmem:[#allocation6 + $0xe30] sm:$0xff]  ;;  %2201 = vmatpush.msrb.mxu2 %v778_v58 }
 0x251   : > { %v966_v60 = vld [vmem:[#allocation6 + $0x11f0] sm:$0xff]  ;;  %2220 = vmatpush.msrb.mxu3 %v846_v59 }
 0x252   : > { %v1094_v61 = vld [vmem:[#allocation6 + $0x15f0] sm:$0xff]  ;;  %2226 = vmatpush.msra.mxu0 %v966_v60 }
 0x253   : > { %v714_v62 = vld [vmem:[#allocation6 + $0xa10] sm:$0xff] }
 0x254   : > { %v842_v63 = vld [vmem:[#allocation6 + $0xe10] sm:$0xff]  ;;  %2181 = vmatpush.msrb.mxu1 %v714_v62 }
 0x255   : > { %v3647_v1 = vld [vmem:[%s4129_s13 + $0x10] sm:$0xff]  ;;  %2221 = vmatpush.msrb.mxu3 %v842_v63  ;;  %2182 = vmatmul.f32.vlgmr.msrb.gmra.mxu1 %v3653_v31 }
 0x256   : > { %2122 = vmatmul.f32.vlgmr.msra.gmra.mxu2 %v3647_v1  ;;  %v962_v2 = vld [vmem:[#allocation6 + $0x11d0] sm:$0xff]  ;;  %2222 = vmatmul.f32.vlgmr.msrb.gmra.mxu3 %v3652_v26 }
 0x257   : > { %2266 = vmatpush.msra.mxu2 %v1094_v61  ;;  %v1030_v3 = vld [vmem:[#allocation6 + $0x13f0] sm:$0xff]  ;;  %2227 = vmatpush.msra.mxu0 %v962_v2 }
 0x258   : > { %v1090_v4 = vld [vmem:[#allocation6 + $0x15d0] sm:$0xff]  ;;  %2246 = vmatpush.msra.mxu1 %v1030_v3 }
 0x259   : > { %v1158_v5 = vld [vmem:[#allocation6 + $0x17f0] sm:$0xff]  ;;  %2267 = vmatpush.msra.mxu2 %v1090_v4 }
 0x25a   : > { %v958_v8 = vld [vmem:[#allocation6 + $0x11b0] sm:$0xff]  ;;  %2286 = vmatpush.msra.mxu3 %v1158_v5 }
 0x25b   : > { %v1026_v9 = vld [vmem:[#allocation6 + $0x13d0] sm:$0xff]  ;;  %2228 = vmatpush.msra.mxu0 %v958_v8 }
 0x25c   : > { %v1086_v10 = vld [vmem:[#allocation6 + $0x15b0] sm:$0xff]  ;;  %2247 = vmatpush.msra.mxu1 %v1026_v9  ;;  %v3654_v9 = vld [vmem:[%s4129_s13 + $0x40] sm:$0xff] }
 0x25d   : > { %v1154_v11 = vld [vmem:[#allocation6 + $0x17d0] sm:$0xff]  ;;  %2268 = vmatpush.msra.mxu2 %v1086_v10 }
 0x25e   : > { %v954_v12 = vld [vmem:[#allocation6 + $0x1190] sm:$0xff]  ;;  %2287 = vmatpush.msra.mxu3 %v1154_v11 }
 0x25f   : > { %v1022_v13 = vld [vmem:[#allocation6 + $0x13b0] sm:$0xff]  ;;  %2229 = vmatpush.msra.mxu0 %v954_v12 }
 0x260   : > { %v1082_v14 = vld [vmem:[#allocation6 + $0x1590] sm:$0xff]  ;;  %2248 = vmatpush.msra.mxu1 %v1022_v13 }
 0x261   : > { %v1150_v15 = vld [vmem:[#allocation6 + $0x17b0] sm:$0xff]  ;;  %2269 = vmatpush.msra.mxu2 %v1082_v14 }
 0x262   : > { %v950_v16 = vld [vmem:[#allocation6 + $0x1170] sm:$0xff]  ;;  %2288 = vmatpush.msra.mxu3 %v1150_v15  ;;  %v3656_v15 = vld [vmem:[%s4129_s13 + $0x48] sm:$0xff] }
 0x263   : > { %v1018_v17 = vld [vmem:[#allocation6 + $0x1390] sm:$0xff]  ;;  %2230 = vmatpush.msra.mxu0 %v950_v16  ;;  %v3657_v16 = vld [vmem:[%s4129_s13 + $0x58] sm:$0xff] }
 0x264   : > { %v1078_v18 = vld [vmem:[#allocation6 + $0x1570] sm:$0xff]  ;;  %2249 = vmatpush.msra.mxu1 %v1018_v17 }
 0x265   : > { %v1146_v19 = vld [vmem:[#allocation6 + $0x1790] sm:$0xff]  ;;  %2270 = vmatpush.msra.mxu2 %v1078_v18 }
 0x266   : > { %v3650_v20 = vld [vmem:[%s4129_s13 + $0x30] sm:$0xff]  ;;  %2289 = vmatpush.msra.mxu3 %v1146_v19 }
 0x267   : > { %2202 = vmatmul.f32.vlgmr.msrb.gmra.mxu2 %v3650_v20  ;;  %v946_v21 = vld [vmem:[#allocation6 + $0x1150] sm:$0xff] }
 0x268   : > { %v1014_v22 = vld [vmem:[#allocation6 + $0x1370] sm:$0xff]  ;;  %2231 = vmatpush.msra.mxu0 %v946_v21 }
 0x269   : > { %v1074_v23 = vld [vmem:[#allocation6 + $0x1550] sm:$0xff]  ;;  %2250 = vmatpush.msra.mxu1 %v1014_v22 }
 0x26a   : > { %v1142_v25 = vld [vmem:[#allocation6 + $0x1770] sm:$0xff]  ;;  %2271 = vmatpush.msra.mxu2 %v1074_v23 }
 0x26b   : > { %v942_v27 = vld [vmem:[#allocation6 + $0x1130] sm:$0xff]  ;;  %2290 = vmatpush.msra.mxu3 %v1142_v25 }
 0x26c   : > { %v1010_v28 = vld [vmem:[#allocation6 + $0x1350] sm:$0xff]  ;;  %2232 = vmatpush.msra.mxu0 %v942_v27 }
 0x26d   : > { %v1070_v29 = vld [vmem:[#allocation6 + $0x1530] sm:$0xff]  ;;  %2251 = vmatpush.msra.mxu1 %v1010_v28 }
 0x26e   : > { %v1138_v30 = vld [vmem:[#allocation6 + $0x1750] sm:$0xff]  ;;  %2272 = vmatpush.msra.mxu2 %v1070_v29 }
 0x26f   : > { %v938_v32 = vld [vmem:[#allocation6 + $0x1110] sm:$0xff]  ;;  %2291 = vmatpush.msra.mxu3 %v1138_v30 }
 0x270   : > { %v1006_v33 = vld [vmem:[#allocation6 + $0x1330] sm:$0xff]  ;;  %2233 = vmatpush.msra.mxu0 %v938_v32 }
 0x271   : > { %v1066_v34 = vld [vmem:[#allocation6 + $0x1510] sm:$0xff]  ;;  %2252 = vmatpush.msra.mxu1 %v1006_v33 }
 0x272   : > { %v1134_v35 = vld [vmem:[#allocation6 + $0x1730] sm:$0xff]  ;;  %2273 = vmatpush.msra.mxu2 %v1066_v34 }
 0x273   : > { %v934_v36 = vld [vmem:[#allocation6 + $0x10f0] sm:$0xff]  ;;  %2292 = vmatpush.msra.mxu3 %v1134_v35 }
 0x274   : > { %v1002_v37 = vld [vmem:[#allocation6 + $0x1310] sm:$0xff]  ;;  %2234 = vmatpush.msra.mxu0 %v934_v36 }
 0x275   : > { %v1062_v38 = vld [vmem:[#allocation6 + $0x14f0] sm:$0xff]  ;;  %2253 = vmatpush.msra.mxu1 %v1002_v37 }
 0x276   : > { %v1130_v39 = vld [vmem:[#allocation6 + $0x1710] sm:$0xff]  ;;  %2274 = vmatpush.msra.mxu2 %v1062_v38 }
 0x277   : > { %v930_v40 = vld [vmem:[#allocation6 + $0x10d0] sm:$0xff]  ;;  %2293 = vmatpush.msra.mxu3 %v1130_v39 }
 0x278   : > { %v998_v41 = vld [vmem:[#allocation6 + $0x12f0] sm:$0xff]  ;;  %2235 = vmatpush.msra.mxu0 %v930_v40 }
 0x279   : > { %v1058_v42 = vld [vmem:[#allocation6 + $0x14d0] sm:$0xff]  ;;  %2254 = vmatpush.msra.mxu1 %v998_v41 }
 0x27a   : > { %v1126_v43 = vld [vmem:[#allocation6 + $0x16f0] sm:$0xff]  ;;  %2275 = vmatpush.msra.mxu2 %v1058_v42 }
 0x27b   : > { %v926_v44 = vld [vmem:[#allocation6 + $0x10b0] sm:$0xff]  ;;  %2294 = vmatpush.msra.mxu3 %v1126_v43 }
 0x27c   : > { %v994_v45 = vld [vmem:[#allocation6 + $0x12d0] sm:$0xff]  ;;  %2236 = vmatpush.msra.mxu0 %v926_v44 }
 0x27d   : > { %v1054_v46 = vld [vmem:[#allocation6 + $0x14b0] sm:$0xff]  ;;  %2255 = vmatpush.msra.mxu1 %v994_v45 }
 0x27e   : > { %v1122_v47 = vld [vmem:[#allocation6 + $0x16d0] sm:$0xff]  ;;  %2276 = vmatpush.msra.mxu2 %v1054_v46 }
 0x27f   : > { %v922_v48 = vld [vmem:[#allocation6 + $0x1090] sm:$0xff]  ;;  %2295 = vmatpush.msra.mxu3 %v1122_v47 }
 0x280   : > { %v990_v49 = vld [vmem:[#allocation6 + $0x12b0] sm:$0xff]  ;;  %2237 = vmatpush.msra.mxu0 %v922_v48 }
 0x281   : > { %v1050_v50 = vld [vmem:[#allocation6 + $0x1490] sm:$0xff]  ;;  %2256 = vmatpush.msra.mxu1 %v990_v49 }
 0x282   : > { %v1118_v51 = vld [vmem:[#allocation6 + $0x16b0] sm:$0xff]  ;;  %2277 = vmatpush.msra.mxu2 %v1050_v50 }
 0x283   : > { %v918_v53 = vld [vmem:[#allocation6 + $0x1070] sm:$0xff]  ;;  %2296 = vmatpush.msra.mxu3 %v1118_v51 }
 0x284   : > { %v986_v54 = vld [vmem:[#allocation6 + $0x1290] sm:$0xff]  ;;  %2238 = vmatpush.msra.mxu0 %v918_v53 }
 0x285   : > { %v1046_v55 = vld [vmem:[#allocation6 + $0x1470] sm:$0xff]  ;;  %2257 = vmatpush.msra.mxu1 %v986_v54 }
 0x286   : > { %v1114_v56 = vld [vmem:[#allocation6 + $0x1690] sm:$0xff]  ;;  %2278 = vmatpush.msra.mxu2 %v1046_v55 }
 0x287   : > { %v914_v57 = vld [vmem:[#allocation6 + $0x1050] sm:$0xff]  ;;  %2297 = vmatpush.msra.mxu3 %v1114_v56 }
 0x288   : > { %v982_v58 = vld [vmem:[#allocation6 + $0x1270] sm:$0xff]  ;;  %2239 = vmatpush.msra.mxu0 %v914_v57 }
 0x289   : > { %v1042_v59 = vld [vmem:[#allocation6 + $0x1450] sm:$0xff]  ;;  %2258 = vmatpush.msra.mxu1 %v982_v58 }
 0x28a   : > { %v1110_v60 = vld [vmem:[#allocation6 + $0x1670] sm:$0xff]  ;;  %2279 = vmatpush.msra.mxu2 %v1042_v59 }
 0x28b   : > { %v910_v61 = vld [vmem:[#allocation6 + $0x1030] sm:$0xff]  ;;  %2298 = vmatpush.msra.mxu3 %v1110_v60 }
 0x28c   : > { %v978_v62 = vld [vmem:[#allocation6 + $0x1250] sm:$0xff]  ;;  %2240 = vmatpush.msra.mxu0 %v910_v61 }
 0x28d   : > { %v1038_v63 = vld [vmem:[#allocation6 + $0x1430] sm:$0xff]  ;;  %2259 = vmatpush.msra.mxu1 %v978_v62 }
 0x28e   : > { %v1106_v0 = vld [vmem:[#allocation6 + $0x1650] sm:$0xff]  ;;  %2280 = vmatpush.msra.mxu2 %v1038_v63 }
 0x28f   : > { %v906_v1 = vld [vmem:[#allocation6 + $0x1010] sm:$0xff]  ;;  %2299 = vmatpush.msra.mxu3 %v1106_v0 }
 0x290   : > { %v974_v2 = vld [vmem:[#allocation6 + $0x1230] sm:$0xff]  ;;  %2241 = vmatpush.msra.mxu0 %v906_v1 }
 0x291   : > { %v1034_v3 = vld [vmem:[#allocation6 + $0x1410] sm:$0xff]  ;;  %2260 = vmatpush.msra.mxu1 %v974_v2  ;;  %2242 = vmatmul.f32.vlgmr.msra.gmra.mxu0 %v3654_v9 }
 0x292   : > { %v1102_v4 = vld [vmem:[#allocation6 + $0x1630] sm:$0xff]  ;;  %2281 = vmatpush.msra.mxu2 %v1034_v3 }
 0x293   : > { %v1222_v5 = vld [vmem:[#allocation6 + $0x19f0] sm:$0xff]  ;;  %2300 = vmatpush.msra.mxu3 %v1102_v4 }
 0x294   : > { %v1350_v6 = vld [vmem:[#allocation6 + $0x1df0] sm:$0xff]  ;;  %2306 = vmatpush.msrb.mxu0 %v1222_v5 }
 0x295   : > { %v970_v7 = vld [vmem:[#allocation6 + $0x1210] sm:$0xff]  ;;  %2346 = vmatpush.msrb.mxu2 %v1350_v6 }
 0x296   : > { %v1098_v8 = vld [vmem:[#allocation6 + $0x1610] sm:$0xff]  ;;  %2261 = vmatpush.msra.mxu1 %v970_v7 }
 0x297   : > { %v3655_v10 = vld [vmem:[%s4129_s13 + $0x50] sm:$0xff]  ;;  %2301 = vmatpush.msra.mxu3 %v1098_v8  ;;  %2262 = vmatmul.f32.vlgmr.msra.gmra.mxu1 %v3656_v15 }
 0x298   : > { %2282 = vmatmul.f32.vlgmr.msra.gmra.mxu2 %v3655_v10  ;;  %v1218_v11 = vld [vmem:[#allocation6 + $0x19d0] sm:$0xff]  ;;  %2302 = vmatmul.f32.vlgmr.msra.gmra.mxu3 %v3657_v16  ;;  %v455_v10 = vld [vmem:[#allocation6 + $0x1f8] sm:$0xff] }
 0x299   : > { %v1286_v12 = vld [vmem:[#allocation6 + $0x1bf0] sm:$0xff]  ;;  %2307 = vmatpush.msrb.mxu0 %v1218_v11  ;;  %v583_v11 = vld [vmem:[#allocation6 + $0x5f8] sm:$0xff] }
 0x29a   : > { %v1346_v13 = vld [vmem:[#allocation6 + $0x1dd0] sm:$0xff]  ;;  %2326 = vmatpush.msrb.mxu1 %v1286_v12  ;;  %v451_v16 = vld [vmem:[#allocation6 + $0x1d8] sm:$0xff] }
 0x29b   : > { %v1414_v14 = vld [vmem:[#allocation6 + $0x1ff0] sm:$0xff]  ;;  %2347 = vmatpush.msrb.mxu2 %v1346_v13 }
 0x29c   : > { %v1214_v17 = vld [vmem:[#allocation6 + $0x19b0] sm:$0xff]  ;;  %2366 = vmatpush.msrb.mxu3 %v1414_v14  ;;  %v3658_v14 = vld [vmem:[%s4129_s13 + $0x60] sm:$0xff] }
 0x29d   : > { %v1282_v18 = vld [vmem:[#allocation6 + $0x1bd0] sm:$0xff]  ;;  %2308 = vmatpush.msrb.mxu0 %v1214_v17  ;;  %v519_v17 = vld [vmem:[#allocation6 + $0x3f8] sm:$0xff] }
 0x29e   : > { %v1342_v19 = vld [vmem:[#allocation6 + $0x1db0] sm:$0xff]  ;;  %2327 = vmatpush.msrb.mxu1 %v1282_v18  ;;  %v579_v18 = vld [vmem:[#allocation6 + $0x5d8] sm:$0xff] }
 0x29f   : > { %v1410_v20 = vld [vmem:[#allocation6 + $0x1fd0] sm:$0xff]  ;;  %2348 = vmatpush.msrb.mxu2 %v1342_v19  ;;  %v647_v19 = vld [vmem:[#allocation6 + $0x7f8] sm:$0xff] }
 0x2a0   : > { %v1210_v21 = vld [vmem:[#allocation6 + $0x1990] sm:$0xff]  ;;  %2367 = vmatpush.msrb.mxu3 %v1410_v20  ;;  %v3660_v20 = vld [vmem:[%s4129_s13 + $0x68] sm:$0xff] }
 0x2a1   : > { %v1278_v22 = vld [vmem:[#allocation6 + $0x1bb0] sm:$0xff]  ;;  %2309 = vmatpush.msrb.mxu0 %v1210_v21  ;;  %v3661_v21 = vld [vmem:[%s4129_s13 + $0x78] sm:$0xff] }
 0x2a2   : > { %v1338_v23 = vld [vmem:[#allocation6 + $0x1d90] sm:$0xff]  ;;  %2328 = vmatpush.msrb.mxu1 %v1278_v22  ;;  %v447_v22 = vld [vmem:[#allocation6 + $0x1b8] sm:$0xff] }
 0x2a3   : > { %v1406_v24 = vld [vmem:[#allocation6 + $0x1fb0] sm:$0xff]  ;;  %2349 = vmatpush.msrb.mxu2 %v1338_v23  ;;  %v515_v23 = vld [vmem:[#allocation6 + $0x3d8] sm:$0xff] }
 0x2a4   : > { %v1206_v25 = vld [vmem:[#allocation6 + $0x1970] sm:$0xff]  ;;  %2368 = vmatpush.msrb.mxu3 %v1406_v24  ;;  %v575_v24 = vld [vmem:[#allocation6 + $0x5b8] sm:$0xff] }
 0x2a5   : > { %v1274_v26 = vld [vmem:[#allocation6 + $0x1b90] sm:$0xff]  ;;  %2310 = vmatpush.msrb.mxu0 %v1206_v25  ;;  %v643_v25 = vld [vmem:[#allocation6 + $0x7d8] sm:$0xff] }
 0x2a6   : > { %v1334_v27 = vld [vmem:[#allocation6 + $0x1d70] sm:$0xff]  ;;  %2329 = vmatpush.msrb.mxu1 %v1274_v26  ;;  %v443_v26 = vld [vmem:[#allocation6 + $0x198] sm:$0xff] }
 0x2a7   : > { %v1402_v28 = vld [vmem:[#allocation6 + $0x1f90] sm:$0xff]  ;;  %2350 = vmatpush.msrb.mxu2 %v1334_v27  ;;  %v511_v27 = vld [vmem:[#allocation6 + $0x3b8] sm:$0xff] }
 0x2a8   : > { %v1202_v29 = vld [vmem:[#allocation6 + $0x1950] sm:$0xff]  ;;  %2369 = vmatpush.msrb.mxu3 %v1402_v28  ;;  %v571_v28 = vld [vmem:[#allocation6 + $0x598] sm:$0xff] }
 0x2a9   : > { %v1270_v30 = vld [vmem:[#allocation6 + $0x1b70] sm:$0xff]  ;;  %2311 = vmatpush.msrb.mxu0 %v1202_v29  ;;  %v639_v29 = vld [vmem:[#allocation6 + $0x7b8] sm:$0xff] }
 0x2aa   : > { %v1330_v31 = vld [vmem:[#allocation6 + $0x1d50] sm:$0xff]  ;;  %2330 = vmatpush.msrb.mxu1 %v1270_v30  ;;  %v439_v30 = vld [vmem:[#allocation6 + $0x178] sm:$0xff] }
 0x2ab   : > { %v1398_v32 = vld [vmem:[#allocation6 + $0x1f70] sm:$0xff]  ;;  %2351 = vmatpush.msrb.mxu2 %v1330_v31  ;;  %v507_v31 = vld [vmem:[#allocation6 + $0x398] sm:$0xff] }
 0x2ac   : > { %v1198_v33 = vld [vmem:[#allocation6 + $0x1930] sm:$0xff]  ;;  %2370 = vmatpush.msrb.mxu3 %v1398_v32  ;;  %v567_v32 = vld [vmem:[#allocation6 + $0x578] sm:$0xff] }
 0x2ad   : > { %v1266_v34 = vld [vmem:[#allocation6 + $0x1b50] sm:$0xff]  ;;  %2312 = vmatpush.msrb.mxu0 %v1198_v33  ;;  %v635_v33 = vld [vmem:[#allocation6 + $0x798] sm:$0xff] }
 0x2ae   : > { %v1326_v35 = vld [vmem:[#allocation6 + $0x1d30] sm:$0xff]  ;;  %2331 = vmatpush.msrb.mxu1 %v1266_v34  ;;  %v435_v34 = vld [vmem:[#allocation6 + $0x158] sm:$0xff] }
 0x2af   : > { %v1394_v36 = vld [vmem:[#allocation6 + $0x1f50] sm:$0xff]  ;;  %2352 = vmatpush.msrb.mxu2 %v1326_v35  ;;  %v503_v35 = vld [vmem:[#allocation6 + $0x378] sm:$0xff] }
 0x2b0   : > { %v1194_v37 = vld [vmem:[#allocation6 + $0x1910] sm:$0xff]  ;;  %2371 = vmatpush.msrb.mxu3 %v1394_v36  ;;  %v563_v36 = vld [vmem:[#allocation6 + $0x558] sm:$0xff] }
 0x2b1   : > { %v1262_v38 = vld [vmem:[#allocation6 + $0x1b30] sm:$0xff]  ;;  %2313 = vmatpush.msrb.mxu0 %v1194_v37  ;;  %v631_v37 = vld [vmem:[#allocation6 + $0x778] sm:$0xff] }
 0x2b2   : > { %v1322_v39 = vld [vmem:[#allocation6 + $0x1d10] sm:$0xff]  ;;  %2332 = vmatpush.msrb.mxu1 %v1262_v38  ;;  %v431_v38 = vld [vmem:[#allocation6 + $0x138] sm:$0xff] }
 0x2b3   : > { %v1390_v40 = vld [vmem:[#allocation6 + $0x1f30] sm:$0xff]  ;;  %2353 = vmatpush.msrb.mxu2 %v1322_v39  ;;  %v499_v39 = vld [vmem:[#allocation6 + $0x358] sm:$0xff] }
 0x2b4   : > { %v1190_v41 = vld [vmem:[#allocation6 + $0x18f0] sm:$0xff]  ;;  %2372 = vmatpush.msrb.mxu3 %v1390_v40  ;;  %v559_v40 = vld [vmem:[#allocation6 + $0x538] sm:$0xff] }
 0x2b5   : > { %v1258_v42 = vld [vmem:[#allocation6 + $0x1b10] sm:$0xff]  ;;  %2314 = vmatpush.msrb.mxu0 %v1190_v41  ;;  %v627_v41 = vld [vmem:[#allocation6 + $0x758] sm:$0xff] }
 0x2b6   : > { %v1318_v43 = vld [vmem:[#allocation6 + $0x1cf0] sm:$0xff]  ;;  %2333 = vmatpush.msrb.mxu1 %v1258_v42  ;;  %v427_v42 = vld [vmem:[#allocation6 + $0x118] sm:$0xff] }
 0x2b7   : > { %v1386_v44 = vld [vmem:[#allocation6 + $0x1f10] sm:$0xff]  ;;  %2354 = vmatpush.msrb.mxu2 %v1318_v43  ;;  %v495_v43 = vld [vmem:[#allocation6 + $0x338] sm:$0xff] }
 0x2b8   : > { %v1186_v45 = vld [vmem:[#allocation6 + $0x18d0] sm:$0xff]  ;;  %2373 = vmatpush.msrb.mxu3 %v1386_v44  ;;  %v555_v44 = vld [vmem:[#allocation6 + $0x518] sm:$0xff] }
 0x2b9   : > { %v1254_v46 = vld [vmem:[#allocation6 + $0x1af0] sm:$0xff]  ;;  %2315 = vmatpush.msrb.mxu0 %v1186_v45  ;;  %v623_v45 = vld [vmem:[#allocation6 + $0x738] sm:$0xff] }
 0x2ba   : > { %v1314_v47 = vld [vmem:[#allocation6 + $0x1cd0] sm:$0xff]  ;;  %2334 = vmatpush.msrb.mxu1 %v1254_v46  ;;  %v423_v46 = vld [vmem:[#allocation6 + $0xf8] sm:$0xff] }
 0x2bb   : > { %v1382_v48 = vld [vmem:[#allocation6 + $0x1ef0] sm:$0xff]  ;;  %2355 = vmatpush.msrb.mxu2 %v1314_v47  ;;  %v491_v47 = vld [vmem:[#allocation6 + $0x318] sm:$0xff] }
 0x2bc   : > { %v1182_v49 = vld [vmem:[#allocation6 + $0x18b0] sm:$0xff]  ;;  %2374 = vmatpush.msrb.mxu3 %v1382_v48  ;;  %v551_v48 = vld [vmem:[#allocation6 + $0x4f8] sm:$0xff] }
 0x2bd   : > { %v1250_v50 = vld [vmem:[#allocation6 + $0x1ad0] sm:$0xff]  ;;  %2316 = vmatpush.msrb.mxu0 %v1182_v49  ;;  %v619_v49 = vld [vmem:[#allocation6 + $0x718] sm:$0xff] }
 0x2be   : > { %v1310_v51 = vld [vmem:[#allocation6 + $0x1cb0] sm:$0xff]  ;;  %2335 = vmatpush.msrb.mxu1 %v1250_v50  ;;  %v419_v50 = vld [vmem:[#allocation6 + $0xd8] sm:$0xff] }
 0x2bf   : > { %v1378_v53 = vld [vmem:[#allocation6 + $0x1ed0] sm:$0xff]  ;;  %2356 = vmatpush.msrb.mxu2 %v1310_v51  ;;  %v487_v51 = vld [vmem:[#allocation6 + $0x2f8] sm:$0xff] }
 0x2c0   : > { %v1178_v54 = vld [vmem:[#allocation6 + $0x1890] sm:$0xff]  ;;  %2375 = vmatpush.msrb.mxu3 %v1378_v53  ;;  %v547_v53 = vld [vmem:[#allocation6 + $0x4d8] sm:$0xff] }
 0x2c1   : > { %v1246_v55 = vld [vmem:[#allocation6 + $0x1ab0] sm:$0xff]  ;;  %2317 = vmatpush.msrb.mxu0 %v1178_v54  ;;  %v615_v54 = vld [vmem:[#allocation6 + $0x6f8] sm:$0xff] }
 0x2c2   : > { %v1306_v56 = vld [vmem:[#allocation6 + $0x1c90] sm:$0xff]  ;;  %2336 = vmatpush.msrb.mxu1 %v1246_v55  ;;  %v415_v55 = vld [vmem:[#allocation6 + $0xb8] sm:$0xff] }
 0x2c3   : > { %v1374_v57 = vld [vmem:[#allocation6 + $0x1eb0] sm:$0xff]  ;;  %2357 = vmatpush.msrb.mxu2 %v1306_v56  ;;  %v483_v56 = vld [vmem:[#allocation6 + $0x2d8] sm:$0xff] }
 0x2c4   : > { %v1174_v58 = vld [vmem:[#allocation6 + $0x1870] sm:$0xff]  ;;  %2376 = vmatpush.msrb.mxu3 %v1374_v57  ;;  %v543_v57 = vld [vmem:[#allocation6 + $0x4b8] sm:$0xff] }
 0x2c5   : > { %v1242_v59 = vld [vmem:[#allocation6 + $0x1a90] sm:$0xff]  ;;  %2318 = vmatpush.msrb.mxu0 %v1174_v58  ;;  %v611_v58 = vld [vmem:[#allocation6 + $0x6d8] sm:$0xff] }
 0x2c6   : > { %v1302_v60 = vld [vmem:[#allocation6 + $0x1c70] sm:$0xff]  ;;  %2337 = vmatpush.msrb.mxu1 %v1242_v59  ;;  %v411_v59 = vld [vmem:[#allocation6 + $0x98] sm:$0xff] }
 0x2c7   : > { %v1370_v61 = vld [vmem:[#allocation6 + $0x1e90] sm:$0xff]  ;;  %2358 = vmatpush.msrb.mxu2 %v1302_v60  ;;  %v479_v60 = vld [vmem:[#allocation6 + $0x2b8] sm:$0xff] }
 0x2c8   : > { %v1170_v62 = vld [vmem:[#allocation6 + $0x1850] sm:$0xff]  ;;  %2377 = vmatpush.msrb.mxu3 %v1370_v61  ;;  %v539_v61 = vld [vmem:[#allocation6 + $0x498] sm:$0xff] }
 0x2c9   : > { %v1238_v63 = vld [vmem:[#allocation6 + $0x1a70] sm:$0xff]  ;;  %2319 = vmatpush.msrb.mxu0 %v1170_v62  ;;  %v607_v62 = vld [vmem:[#allocation6 + $0x6b8] sm:$0xff] }
 0x2ca   : > { %v1298_v0 = vld [vmem:[#allocation6 + $0x1c50] sm:$0xff]  ;;  %2338 = vmatpush.msrb.mxu1 %v1238_v63  ;;  %v407_v63 = vld [vmem:[#allocation6 + $0x78] sm:$0xff] }
 0x2cb   : > { %v1366_v1 = vld [vmem:[#allocation6 + $0x1e70] sm:$0xff]  ;;  %2359 = vmatpush.msrb.mxu2 %v1298_v0  ;;  %v475_v0 = vld [vmem:[#allocation6 + $0x298] sm:$0xff] }
 0x2cc   : > { %v1166_v2 = vld [vmem:[#allocation6 + $0x1830] sm:$0xff]  ;;  %2378 = vmatpush.msrb.mxu3 %v1366_v1  ;;  %v535_v1 = vld [vmem:[#allocation6 + $0x478] sm:$0xff] }
 0x2cd   : > { %v1234_v3 = vld [vmem:[#allocation6 + $0x1a50] sm:$0xff]  ;;  %2320 = vmatpush.msrb.mxu0 %v1166_v2  ;;  %v603_v2 = vld [vmem:[#allocation6 + $0x698] sm:$0xff] }
 0x2ce   : > { %v1294_v4 = vld [vmem:[#allocation6 + $0x1c30] sm:$0xff]  ;;  %2339 = vmatpush.msrb.mxu1 %v1234_v3  ;;  %v403_v3 = vld [vmem:[#allocation6 + $0x58] sm:$0xff] }
 0x2cf   : > { %v1362_v5 = vld [vmem:[#allocation6 + $0x1e50] sm:$0xff]  ;;  %2360 = vmatpush.msrb.mxu2 %v1294_v4  ;;  %v471_v4 = vld [vmem:[#allocation6 + $0x278] sm:$0xff] }
 0x2d0   : > { %v1162_v6 = vld [vmem:[#allocation6 + $0x1810] sm:$0xff]  ;;  %2379 = vmatpush.msrb.mxu3 %v1362_v5  ;;  %v531_v5 = vld [vmem:[#allocation6 + $0x458] sm:$0xff] }
 0x2d1   : > { %v1230_v7 = vld [vmem:[#allocation6 + $0x1a30] sm:$0xff]  ;;  %2321 = vmatpush.msrb.mxu0 %v1162_v6  ;;  %v599_v6 = vld [vmem:[#allocation6 + $0x678] sm:$0xff] }
 0x2d2   : > { %v1290_v8 = vld [vmem:[#allocation6 + $0x1c10] sm:$0xff]  ;;  %2340 = vmatpush.msrb.mxu1 %v1230_v7  ;;  %2322 = vmatmul.f32.vlgmr.msrb.gmra.mxu0 %v3658_v14  ;;  %v399_v7 = vld [vmem:[#allocation6 + $0x38] sm:$0xff] }
 0x2d3   : > { %v1358_v9 = vld [vmem:[#allocation6 + $0x1e30] sm:$0xff]  ;;  %2361 = vmatpush.msrb.mxu2 %v1290_v8  ;;  %2386 = vmatpush.msra.mxu0 %v455_v10  ;;  %v467_v8 = vld [vmem:[#allocation6 + $0x258] sm:$0xff] }
 0x2d4   : > { %2380 = vmatpush.msrb.mxu3 %v1358_v9  ;;  %v1226_v12 = vld [vmem:[#allocation6 + $0x1a10] sm:$0xff]  ;;  %v527_v9 = vld [vmem:[#allocation6 + $0x438] sm:$0xff] }
 0x2d5   : > { %v1354_v13 = vld [vmem:[#allocation6 + $0x1e10] sm:$0xff]  ;;  %2426 = vmatpush.msra.mxu2 %v583_v11  ;;  %2341 = vmatpush.msrb.mxu1 %v1226_v12  ;;  %v595_v10 = vld [vmem:[#allocation6 + $0x658] sm:$0xff] }
 0x2d6   : > { %v3659_v15 = vld [vmem:[%s4129_s13 + $0x70] sm:$0xff]  ;;  %2381 = vmatpush.msrb.mxu3 %v1354_v13  ;;  %2342 = vmatmul.f32.vlgmr.msrb.gmra.mxu1 %v3660_v20  ;;  %v395_v11 = vld [vmem:[#allocation6 + $0x18] sm:$0xff] }
 0x2d7   : > { %2362 = vmatmul.f32.vlgmr.msrb.gmra.mxu2 %v3659_v15  ;;  %2382 = vmatmul.f32.vlgmr.msrb.gmra.mxu3 %v3661_v21  ;;  %v463_v12 = vld [vmem:[#allocation6 + $0x238] sm:$0xff] }
 0x2d8   : > { %2387 = vmatpush.msra.mxu0 %v451_v16  ;;  %2406 = vmatpush.msra.mxu1 %v519_v17  ;;  %v523_v13 = vld [vmem:[#allocation6 + $0x418] sm:$0xff] }
 0x2d9   : > { %2427 = vmatpush.msra.mxu2 %v579_v18  ;;  %2446 = vmatpush.msra.mxu3 %v647_v19  ;;  %v591_v14 = vld [vmem:[#allocation6 + $0x638] sm:$0xff] }
 0x2da   : > { %2388 = vmatpush.msra.mxu0 %v447_v22  ;;  %2407 = vmatpush.msra.mxu1 %v515_v23  ;;  %v711_v15 = vld [vmem:[#allocation6 + $0x9f8] sm:$0xff] }
 0x2db   : > { %2428 = vmatpush.msra.mxu2 %v575_v24  ;;  %2447 = vmatpush.msra.mxu3 %v643_v25  ;;  %v839_v16 = vld [vmem:[#allocation6 + $0xdf8] sm:$0xff] }
 0x2dc   : > { %2389 = vmatpush.msra.mxu0 %v443_v26  ;;  %2408 = vmatpush.msra.mxu1 %v511_v27  ;;  %v459_v17 = vld [vmem:[#allocation6 + $0x218] sm:$0xff] }
 0x2dd   : > { %2429 = vmatpush.msra.mxu2 %v571_v28  ;;  %2448 = vmatpush.msra.mxu3 %v639_v29  ;;  %v587_v18 = vld [vmem:[#allocation6 + $0x618] sm:$0xff] }
 0x2de   : > { %2390 = vmatpush.msra.mxu0 %v439_v30  ;;  %2409 = vmatpush.msra.mxu1 %v507_v31  ;;  %v707_v19 = vld [vmem:[#allocation6 + $0x9d8] sm:$0xff] }
 0x2df   : > { %2430 = vmatpush.msra.mxu2 %v567_v32  ;;  %2449 = vmatpush.msra.mxu3 %v635_v33  ;;  %v775_v20 = vld [vmem:[#allocation6 + $0xbf8] sm:$0xff] }
 0x2e0   : > { %2391 = vmatpush.msra.mxu0 %v435_v34  ;;  %2410 = vmatpush.msra.mxu1 %v503_v35  ;;  %v835_v21 = vld [vmem:[#allocation6 + $0xdd8] sm:$0xff] }
 0x2e1   : > { %2431 = vmatpush.msra.mxu2 %v563_v36  ;;  %2450 = vmatpush.msra.mxu3 %v631_v37  ;;  %v903_v22 = vld [vmem:[#allocation6 + $0xff8] sm:$0xff] }
 0x2e2   : > { %2392 = vmatpush.msra.mxu0 %v431_v38  ;;  %2411 = vmatpush.msra.mxu1 %v499_v39  ;;  %v703_v23 = vld [vmem:[#allocation6 + $0x9b8] sm:$0xff] }
 0x2e3   : > { %2432 = vmatpush.msra.mxu2 %v559_v40  ;;  %2451 = vmatpush.msra.mxu3 %v627_v41  ;;  %v771_v24 = vld [vmem:[#allocation6 + $0xbd8] sm:$0xff] }
 0x2e4   : > { %2393 = vmatpush.msra.mxu0 %v427_v42  ;;  %2412 = vmatpush.msra.mxu1 %v495_v43  ;;  %v831_v25 = vld [vmem:[#allocation6 + $0xdb8] sm:$0xff] }
 0x2e5   : > { %2433 = vmatpush.msra.mxu2 %v555_v44  ;;  %2452 = vmatpush.msra.mxu3 %v623_v45  ;;  %v899_v26 = vld [vmem:[#allocation6 + $0xfd8] sm:$0xff] }
 0x2e6   : > { %2394 = vmatpush.msra.mxu0 %v423_v46  ;;  %2413 = vmatpush.msra.mxu1 %v491_v47  ;;  %v699_v27 = vld [vmem:[#allocation6 + $0x998] sm:$0xff] }
 0x2e7   : > { %2434 = vmatpush.msra.mxu2 %v551_v48  ;;  %2453 = vmatpush.msra.mxu3 %v619_v49  ;;  %v767_v28 = vld [vmem:[#allocation6 + $0xbb8] sm:$0xff] }
 0x2e8   : > { %2395 = vmatpush.msra.mxu0 %v419_v50  ;;  %2414 = vmatpush.msra.mxu1 %v487_v51  ;;  %v827_v29 = vld [vmem:[#allocation6 + $0xd98] sm:$0xff] }
 0x2e9   : > { %2435 = vmatpush.msra.mxu2 %v547_v53  ;;  %2454 = vmatpush.msra.mxu3 %v615_v54  ;;  %v895_v30 = vld [vmem:[#allocation6 + $0xfb8] sm:$0xff] }
 0x2ea   : > { %2396 = vmatpush.msra.mxu0 %v415_v55  ;;  %2415 = vmatpush.msra.mxu1 %v483_v56  ;;  %v695_v31 = vld [vmem:[#allocation6 + $0x978] sm:$0xff] }
 0x2eb   : > { %2436 = vmatpush.msra.mxu2 %v543_v57  ;;  %2455 = vmatpush.msra.mxu3 %v611_v58  ;;  %v763_v32 = vld [vmem:[#allocation6 + $0xb98] sm:$0xff] }
 0x2ec   : > { %2397 = vmatpush.msra.mxu0 %v411_v59  ;;  %2416 = vmatpush.msra.mxu1 %v479_v60  ;;  %v823_v33 = vld [vmem:[#allocation6 + $0xd78] sm:$0xff] }
 0x2ed   : > { %2437 = vmatpush.msra.mxu2 %v539_v61  ;;  %2456 = vmatpush.msra.mxu3 %v607_v62  ;;  %v891_v34 = vld [vmem:[#allocation6 + $0xf98] sm:$0xff] }
 0x2ee   : > { %2398 = vmatpush.msra.mxu0 %v407_v63  ;;  %2417 = vmatpush.msra.mxu1 %v475_v0  ;;  %v691_v35 = vld [vmem:[#allocation6 + $0x958] sm:$0xff] }
 0x2ef   : > { %2438 = vmatpush.msra.mxu2 %v535_v1  ;;  %2457 = vmatpush.msra.mxu3 %v603_v2  ;;  %v759_v36 = vld [vmem:[#allocation6 + $0xb78] sm:$0xff] }
 0x2f0   : > { %2399 = vmatpush.msra.mxu0 %v403_v3  ;;  %2418 = vmatpush.msra.mxu1 %v471_v4  ;;  %v819_v37 = vld [vmem:[#allocation6 + $0xd58] sm:$0xff] }
 0x2f1   : > { %2439 = vmatpush.msra.mxu2 %v531_v5  ;;  %2458 = vmatpush.msra.mxu3 %v599_v6  ;;  %v887_v38 = vld [vmem:[#allocation6 + $0xf78] sm:$0xff] }
 0x2f2   : > { %2400 = vmatpush.msra.mxu0 %v399_v7  ;;  %2419 = vmatpush.msra.mxu1 %v467_v8  ;;  %v687_v39 = vld [vmem:[#allocation6 + $0x938] sm:$0xff] }
 0x2f3   : > { %2440 = vmatpush.msra.mxu2 %v527_v9  ;;  %2459 = vmatpush.msra.mxu3 %v595_v10  ;;  %v755_v40 = vld [vmem:[#allocation6 + $0xb58] sm:$0xff] }
 0x2f4   : > { %2401 = vmatpush.msra.mxu0 %v395_v11  ;;  %2420 = vmatpush.msra.mxu1 %v463_v12  ;;  %v815_v41 = vld [vmem:[#allocation6 + $0xd38] sm:$0xff] }
 0x2f5   : > { %2441 = vmatpush.msra.mxu2 %v523_v13  ;;  %2460 = vmatpush.msra.mxu3 %v591_v14  ;;  %v883_v42 = vld [vmem:[#allocation6 + $0xf58] sm:$0xff] }
 0x2f6   : > { %2466 = vmatpush.msrb.mxu0 %v711_v15  ;;  %2421 = vmatpush.msra.mxu1 %v459_v17  ;;  %v683_v43 = vld [vmem:[#allocation6 + $0x918] sm:$0xff] }
 0x2f7   : > { %2506 = vmatpush.msrb.mxu2 %v839_v16  ;;  %2461 = vmatpush.msra.mxu3 %v587_v18  ;;  %v751_v44 = vld [vmem:[#allocation6 + $0xb38] sm:$0xff] }
 0x2f8   : > { %2467 = vmatpush.msrb.mxu0 %v707_v19  ;;  %2486 = vmatpush.msrb.mxu1 %v775_v20  ;;  %v811_v45 = vld [vmem:[#allocation6 + $0xd18] sm:$0xff]  ;;  %v3662_v20 = vld [vmem:[%s4129_s13] sm:$0xff] }
 0x2f9   : > { %2507 = vmatpush.msrb.mxu2 %v835_v21  ;;  %2526 = vmatpush.msrb.mxu3 %v903_v22  ;;  %v879_v46 = vld [vmem:[#allocation6 + $0xf38] sm:$0xff]  ;;  %v3663_v21 = vld [vmem:[%s4129_s13 + $0x10] sm:$0xff] }
 0x2fa   : > { %2468 = vmatpush.msrb.mxu0 %v703_v23  ;;  %2487 = vmatpush.msrb.mxu1 %v771_v24  ;;  %v679_v47 = vld [vmem:[#allocation6 + $0x8f8] sm:$0xff] }
 0x2fb   : > { %2508 = vmatpush.msrb.mxu2 %v831_v25  ;;  %2527 = vmatpush.msrb.mxu3 %v899_v26  ;;  %v747_v48 = vld [vmem:[#allocation6 + $0xb18] sm:$0xff]  ;;  %v3664_v26 = vld [vmem:[%s4129_s13 + $0x8] sm:$0xff] }
 0x2fc   : > { %2469 = vmatpush.msrb.mxu0 %v699_v27  ;;  %2488 = vmatpush.msrb.mxu1 %v767_v28  ;;  %v807_v49 = vld [vmem:[#allocation6 + $0xcf8] sm:$0xff] }
 0x2fd   : > { %2509 = vmatpush.msrb.mxu2 %v827_v29  ;;  %2528 = vmatpush.msrb.mxu3 %v895_v30  ;;  %v875_v50 = vld [vmem:[#allocation6 + $0xf18] sm:$0xff] }
 0x2fe   : > { %2470 = vmatpush.msrb.mxu0 %v695_v31  ;;  %2489 = vmatpush.msrb.mxu1 %v763_v32  ;;  %v675_v51 = vld [vmem:[#allocation6 + $0x8d8] sm:$0xff] }
 0x2ff   : > { %2510 = vmatpush.msrb.mxu2 %v823_v33  ;;  %2529 = vmatpush.msrb.mxu3 %v891_v34  ;;  %v743_v53 = vld [vmem:[#allocation6 + $0xaf8] sm:$0xff] }
 0x300   : > { %2471 = vmatpush.msrb.mxu0 %v691_v35  ;;  %2490 = vmatpush.msrb.mxu1 %v759_v36  ;;  %v803_v54 = vld [vmem:[#allocation6 + $0xcd8] sm:$0xff] }
 0x301   : > { %2511 = vmatpush.msrb.mxu2 %v819_v37  ;;  %2530 = vmatpush.msrb.mxu3 %v887_v38  ;;  %v871_v55 = vld [vmem:[#allocation6 + $0xef8] sm:$0xff] }
 0x302   : > { %2472 = vmatpush.msrb.mxu0 %v687_v39  ;;  %2491 = vmatpush.msrb.mxu1 %v755_v40  ;;  %v671_v56 = vld [vmem:[#allocation6 + $0x8b8] sm:$0xff]  ;;  %v3666_v40 = vld [vmem:[%s4129_s13 + $0x30] sm:$0xff] }
 0x303   : > { %2512 = vmatpush.msrb.mxu2 %v815_v41  ;;  %2531 = vmatpush.msrb.mxu3 %v883_v42  ;;  %v739_v57 = vld [vmem:[#allocation6 + $0xad8] sm:$0xff] }
 0x304   : > { %2473 = vmatpush.msrb.mxu0 %v683_v43  ;;  %2492 = vmatpush.msrb.mxu1 %v751_v44  ;;  %v799_v58 = vld [vmem:[#allocation6 + $0xcb8] sm:$0xff]  ;;  %v3667_v44 = vld [vmem:[%s4129_s13 + $0x20] sm:$0xff] }
 0x305   : > { %2513 = vmatpush.msrb.mxu2 %v811_v45  ;;  %2532 = vmatpush.msrb.mxu3 %v879_v46  ;;  %v867_v59 = vld [vmem:[#allocation6 + $0xed8] sm:$0xff] }
 0x306   : > { %2474 = vmatpush.msrb.mxu0 %v679_v47  ;;  %2493 = vmatpush.msrb.mxu1 %v747_v48  ;;  %v667_v60 = vld [vmem:[#allocation6 + $0x898] sm:$0xff] }
 0x307   : > { %2514 = vmatpush.msrb.mxu2 %v807_v49  ;;  %2533 = vmatpush.msrb.mxu3 %v875_v50  ;;  %v735_v61 = vld [vmem:[#allocation6 + $0xab8] sm:$0xff] }
 0x308   : > { %2475 = vmatpush.msrb.mxu0 %v675_v51  ;;  %2494 = vmatpush.msrb.mxu1 %v743_v53  ;;  %v795_v62 = vld [vmem:[#allocation6 + $0xc98] sm:$0xff]  ;;  %v3669_v51 = vld [vmem:[%s4129_s13 + $0x28] sm:$0xff] }
 0x309   : > { %2515 = vmatpush.msrb.mxu2 %v803_v54  ;;  %2534 = vmatpush.msrb.mxu3 %v871_v55  ;;  %v863_v63 = vld [vmem:[#allocation6 + $0xeb8] sm:$0xff] }
 0x30a   : > { %2476 = vmatpush.msrb.mxu0 %v671_v56  ;;  %2495 = vmatpush.msrb.mxu1 %v739_v57  ;;  %v663_v0 = vld [vmem:[#allocation6 + $0x878] sm:$0xff] }
 0x30b   : > { %2516 = vmatpush.msrb.mxu2 %v799_v58  ;;  %2535 = vmatpush.msrb.mxu3 %v867_v59  ;;  %v731_v1 = vld [vmem:[#allocation6 + $0xa98] sm:$0xff] }
 0x30c   : > { %2477 = vmatpush.msrb.mxu0 %v667_v60  ;;  %2496 = vmatpush.msrb.mxu1 %v735_v61  ;;  %v791_v2 = vld [vmem:[#allocation6 + $0xc78] sm:$0xff] }
 0x30d   : > { %v859_v3 = vld [vmem:[#allocation6 + $0xe98] sm:$0xff]  ;;  %2517 = vmatpush.msrb.mxu2 %v795_v62  ;;  %2536 = vmatpush.msrb.mxu3 %v863_v63 }
 0x30e   : > { %v659_v4 = vld [vmem:[#allocation6 + $0x858] sm:$0xff]  ;;  %2478 = vmatpush.msrb.mxu0 %v663_v0  ;;  %2497 = vmatpush.msrb.mxu1 %v731_v1 }
 0x30f   : > { %v727_v5 = vld [vmem:[#allocation6 + $0xa78] sm:$0xff]  ;;  %2518 = vmatpush.msrb.mxu2 %v791_v2  ;;  %2537 = vmatpush.msrb.mxu3 %v859_v3 }
 0x310   : > { %v787_v6 = vld [vmem:[#allocation6 + $0xc58] sm:$0xff]  ;;  %2479 = vmatpush.msrb.mxu0 %v659_v4  ;;  %2498 = vmatpush.msrb.mxu1 %v727_v5 }
 0x311   : > { %v855_v7 = vld [vmem:[#allocation6 + $0xe78] sm:$0xff]  ;;  %2519 = vmatpush.msrb.mxu2 %v787_v6  ;;  %2402 = vmatmul.f32.vlgmr.msra.gmra.mxu0 %v3662_v20 }
 0x312   : > { %v655_v8 = vld [vmem:[#allocation6 + $0x838] sm:$0xff]  ;;  %2538 = vmatpush.msrb.mxu3 %v855_v7  ;;  %2442 = vmatmul.f32.vlgmr.msra.gmra.mxu2 %v3663_v21 }
 0x313   : > { %v723_v9 = vld [vmem:[#allocation6 + $0xa58] sm:$0xff]  ;;  %2480 = vmatpush.msrb.mxu0 %v655_v8  ;;  %2422 = vmatmul.f32.vlgmr.msra.gmra.mxu1 %v3664_v26 }
 0x314   : > { %v783_v10 = vld [vmem:[#allocation6 + $0xc38] sm:$0xff]  ;;  %2499 = vmatpush.msrb.mxu1 %v723_v9 }
 0x315   : > { %v851_v11 = vld [vmem:[#allocation6 + $0xe58] sm:$0xff]  ;;  %2520 = vmatpush.msrb.mxu2 %v783_v10 }
 0x316   : > { %v651_v12 = vld [vmem:[#allocation6 + $0x818] sm:$0xff]  ;;  %2539 = vmatpush.msrb.mxu3 %v851_v11 }
 0x317   : > { %v719_v13 = vld [vmem:[#allocation6 + $0xa38] sm:$0xff]  ;;  %2481 = vmatpush.msrb.mxu0 %v651_v12 }
 0x318   : > { %v779_v14 = vld [vmem:[#allocation6 + $0xc18] sm:$0xff]  ;;  %2500 = vmatpush.msrb.mxu1 %v719_v13 }
 0x319   : > { %v847_v15 = vld [vmem:[#allocation6 + $0xe38] sm:$0xff]  ;;  %2521 = vmatpush.msrb.mxu2 %v779_v14  ;;  %2482 = vmatmul.f32.vlgmr.msrb.gmra.mxu0 %v3667_v44 }
 0x31a   : > { %v967_v16 = vld [vmem:[#allocation6 + $0x11f8] sm:$0xff]  ;;  %2540 = vmatpush.msrb.mxu3 %v847_v15  ;;  %2522 = vmatmul.f32.vlgmr.msrb.gmra.mxu2 %v3666_v40 }
 0x31b   : > { %v1095_v17 = vld [vmem:[#allocation6 + $0x15f8] sm:$0xff]  ;;  %2546 = vmatpush.msra.mxu0 %v967_v16 }
 0x31c   : > { %v715_v18 = vld [vmem:[#allocation6 + $0xa18] sm:$0xff]  ;;  %2586 = vmatpush.msra.mxu2 %v1095_v17 }
 0x31d   : > { %v843_v19 = vld [vmem:[#allocation6 + $0xe18] sm:$0xff]  ;;  %2501 = vmatpush.msrb.mxu1 %v715_v18 }
 0x31e   : > { %v963_v22 = vld [vmem:[#allocation6 + $0x11d8] sm:$0xff]  ;;  %2541 = vmatpush.msrb.mxu3 %v843_v19  ;;  %2502 = vmatmul.f32.vlgmr.msrb.gmra.mxu1 %v3669_v51 }
 0x31f   : > { %v1031_v23 = vld [vmem:[#allocation6 + $0x13f8] sm:$0xff]  ;;  %2547 = vmatpush.msra.mxu0 %v963_v22 }
 0x320   : > { %v1091_v24 = vld [vmem:[#allocation6 + $0x15d8] sm:$0xff]  ;;  %2566 = vmatpush.msra.mxu1 %v1031_v23 }
 0x321   : > { %v1159_v25 = vld [vmem:[#allocation6 + $0x17f8] sm:$0xff]  ;;  %2587 = vmatpush.msra.mxu2 %v1091_v24 }
 0x322   : > { %v3665_v27 = vld [vmem:[%s4129_s13 + $0x18] sm:$0xff] }
 0x323   : > { %2462 = vmatmul.f32.vlgmr.msra.gmra.mxu3 %v3665_v27  ;;  %v959_v28 = vld [vmem:[#allocation6 + $0x11b8] sm:$0xff] }
 0x324   : > { %v1027_v29 = vld [vmem:[#allocation6 + $0x13d8] sm:$0xff]  ;;  %2606 = vmatpush.msra.mxu3 %v1159_v25  ;;  %2548 = vmatpush.msra.mxu0 %v959_v28 }
 0x325   : > { %v1087_v30 = vld [vmem:[#allocation6 + $0x15b8] sm:$0xff]  ;;  %2567 = vmatpush.msra.mxu1 %v1027_v29  ;;  %v3670_v29 = vld [vmem:[%s4129_s13 + $0x40] sm:$0xff] }
 0x326   : > { %v1155_v31 = vld [vmem:[#allocation6 + $0x17d8] sm:$0xff]  ;;  %2588 = vmatpush.msra.mxu2 %v1087_v30  ;;  %v3671_v30 = vld [vmem:[%s4129_s13 + $0x50] sm:$0xff] }
 0x327   : > { %v955_v32 = vld [vmem:[#allocation6 + $0x1198] sm:$0xff]  ;;  %2607 = vmatpush.msra.mxu3 %v1155_v31 }
 0x328   : > { %v1023_v33 = vld [vmem:[#allocation6 + $0x13b8] sm:$0xff]  ;;  %2549 = vmatpush.msra.mxu0 %v955_v32 }
 0x329   : > { %v1083_v34 = vld [vmem:[#allocation6 + $0x1598] sm:$0xff]  ;;  %2568 = vmatpush.msra.mxu1 %v1023_v33 }
 0x32a   : > { %v1151_v35 = vld [vmem:[#allocation6 + $0x17b8] sm:$0xff]  ;;  %2589 = vmatpush.msra.mxu2 %v1083_v34 }
 0x32b   : > { %v951_v36 = vld [vmem:[#allocation6 + $0x1178] sm:$0xff]  ;;  %2608 = vmatpush.msra.mxu3 %v1151_v35  ;;  %v3672_v35 = vld [vmem:[%s4129_s13 + $0x48] sm:$0xff] }
 0x32c   : > { %v1019_v37 = vld [vmem:[#allocation6 + $0x1398] sm:$0xff]  ;;  %2550 = vmatpush.msra.mxu0 %v951_v36 }
 0x32d   : > { %v1079_v38 = vld [vmem:[#allocation6 + $0x1578] sm:$0xff]  ;;  %2569 = vmatpush.msra.mxu1 %v1019_v37 }
 0x32e   : > { %v1147_v39 = vld [vmem:[#allocation6 + $0x1798] sm:$0xff]  ;;  %2590 = vmatpush.msra.mxu2 %v1079_v38 }
 0x32f   : > { %v947_v41 = vld [vmem:[#allocation6 + $0x1158] sm:$0xff]  ;;  %2609 = vmatpush.msra.mxu3 %v1147_v39 }
 0x330   : > { %v1015_v42 = vld [vmem:[#allocation6 + $0x1378] sm:$0xff]  ;;  %2551 = vmatpush.msra.mxu0 %v947_v41 }
 0x331   : > { %v1075_v43 = vld [vmem:[#allocation6 + $0x1558] sm:$0xff]  ;;  %2570 = vmatpush.msra.mxu1 %v1015_v42 }
 0x332   : > { %v1143_v45 = vld [vmem:[#allocation6 + $0x1778] sm:$0xff]  ;;  %2591 = vmatpush.msra.mxu2 %v1075_v43 }
 0x333   : > { %v3668_v46 = vld [vmem:[%s4129_s13 + $0x38] sm:$0xff]  ;;  %2610 = vmatpush.msra.mxu3 %v1143_v45 }
 0x334   : > { %2542 = vmatmul.f32.vlgmr.msrb.gmra.mxu3 %v3668_v46  ;;  %v943_v47 = vld [vmem:[#allocation6 + $0x1138] sm:$0xff] }
 0x335   : > { %v1011_v48 = vld [vmem:[#allocation6 + $0x1358] sm:$0xff]  ;;  %2552 = vmatpush.msra.mxu0 %v943_v47 }
 0x336   : > { %v1071_v49 = vld [vmem:[#allocation6 + $0x1538] sm:$0xff]  ;;  %2571 = vmatpush.msra.mxu1 %v1011_v48 }
 0x337   : > { %v1139_v50 = vld [vmem:[#allocation6 + $0x1758] sm:$0xff]  ;;  %2592 = vmatpush.msra.mxu2 %v1071_v49 }
 0x338   : > { %v939_v53 = vld [vmem:[#allocation6 + $0x1118] sm:$0xff]  ;;  %2611 = vmatpush.msra.mxu3 %v1139_v50 }
 0x339   : > { %v1007_v54 = vld [vmem:[#allocation6 + $0x1338] sm:$0xff]  ;;  %2553 = vmatpush.msra.mxu0 %v939_v53 }
 0x33a   : > { %v1067_v55 = vld [vmem:[#allocation6 + $0x1518] sm:$0xff]  ;;  %2572 = vmatpush.msra.mxu1 %v1007_v54 }
 0x33b   : > { %v1135_v56 = vld [vmem:[#allocation6 + $0x1738] sm:$0xff]  ;;  %2593 = vmatpush.msra.mxu2 %v1067_v55 }
 0x33c   : > { %v935_v57 = vld [vmem:[#allocation6 + $0x10f8] sm:$0xff]  ;;  %2612 = vmatpush.msra.mxu3 %v1135_v56 }
 0x33d   : > { %v1003_v58 = vld [vmem:[#allocation6 + $0x1318] sm:$0xff]  ;;  %2554 = vmatpush.msra.mxu0 %v935_v57 }
 0x33e   : > { %v1063_v59 = vld [vmem:[#allocation6 + $0x14f8] sm:$0xff]  ;;  %2573 = vmatpush.msra.mxu1 %v1003_v58 }
 0x33f   : > { %v1131_v60 = vld [vmem:[#allocation6 + $0x1718] sm:$0xff]  ;;  %2594 = vmatpush.msra.mxu2 %v1063_v59 }
 0x340   : > { %v931_v61 = vld [vmem:[#allocation6 + $0x10d8] sm:$0xff]  ;;  %2613 = vmatpush.msra.mxu3 %v1131_v60 }
 0x341   : > { %v999_v62 = vld [vmem:[#allocation6 + $0x12f8] sm:$0xff]  ;;  %2555 = vmatpush.msra.mxu0 %v931_v61 }
 0x342   : > { %v1059_v63 = vld [vmem:[#allocation6 + $0x14d8] sm:$0xff]  ;;  %2574 = vmatpush.msra.mxu1 %v999_v62 }
 0x343   : > { %v1127_v0 = vld [vmem:[#allocation6 + $0x16f8] sm:$0xff]  ;;  %2595 = vmatpush.msra.mxu2 %v1059_v63 }
 0x344   : > { %v927_v1 = vld [vmem:[#allocation6 + $0x10b8] sm:$0xff]  ;;  %2614 = vmatpush.msra.mxu3 %v1127_v0 }
 0x345   : > { %v995_v2 = vld [vmem:[#allocation6 + $0x12d8] sm:$0xff]  ;;  %2556 = vmatpush.msra.mxu0 %v927_v1 }
 0x346   : > { %v1055_v3 = vld [vmem:[#allocation6 + $0x14b8] sm:$0xff]  ;;  %2575 = vmatpush.msra.mxu1 %v995_v2 }
 0x347   : > { %v1123_v4 = vld [vmem:[#allocation6 + $0x16d8] sm:$0xff]  ;;  %2596 = vmatpush.msra.mxu2 %v1055_v3 }
 0x348   : > { %v923_v5 = vld [vmem:[#allocation6 + $0x1098] sm:$0xff]  ;;  %2615 = vmatpush.msra.mxu3 %v1123_v4 }
 0x349   : > { %v991_v6 = vld [vmem:[#allocation6 + $0x12b8] sm:$0xff]  ;;  %2557 = vmatpush.msra.mxu0 %v923_v5 }
 0x34a   : > { %v1051_v7 = vld [vmem:[#allocation6 + $0x1498] sm:$0xff]  ;;  %2576 = vmatpush.msra.mxu1 %v991_v6 }
 0x34b   : > { %v1119_v8 = vld [vmem:[#allocation6 + $0x16b8] sm:$0xff]  ;;  %2597 = vmatpush.msra.mxu2 %v1051_v7 }
 0x34c   : > { %v919_v9 = vld [vmem:[#allocation6 + $0x1078] sm:$0xff]  ;;  %2616 = vmatpush.msra.mxu3 %v1119_v8 }
 0x34d   : > { %v987_v10 = vld [vmem:[#allocation6 + $0x1298] sm:$0xff]  ;;  %2558 = vmatpush.msra.mxu0 %v919_v9 }
 0x34e   : > { %v1047_v11 = vld [vmem:[#allocation6 + $0x1478] sm:$0xff]  ;;  %2577 = vmatpush.msra.mxu1 %v987_v10 }
 0x34f   : > { %v1115_v12 = vld [vmem:[#allocation6 + $0x1698] sm:$0xff]  ;;  %2598 = vmatpush.msra.mxu2 %v1047_v11 }
 0x350   : > { %v915_v13 = vld [vmem:[#allocation6 + $0x1058] sm:$0xff]  ;;  %2617 = vmatpush.msra.mxu3 %v1115_v12 }
 0x351   : > { %v983_v14 = vld [vmem:[#allocation6 + $0x1278] sm:$0xff]  ;;  %2559 = vmatpush.msra.mxu0 %v915_v13 }
 0x352   : > { %v1043_v15 = vld [vmem:[#allocation6 + $0x1458] sm:$0xff]  ;;  %2578 = vmatpush.msra.mxu1 %v983_v14 }
 0x353   : > { %v1111_v16 = vld [vmem:[#allocation6 + $0x1678] sm:$0xff]  ;;  %2599 = vmatpush.msra.mxu2 %v1043_v15 }
 0x354   : > { %v911_v17 = vld [vmem:[#allocation6 + $0x1038] sm:$0xff]  ;;  %2618 = vmatpush.msra.mxu3 %v1111_v16 }
 0x355   : > { %v979_v18 = vld [vmem:[#allocation6 + $0x1258] sm:$0xff]  ;;  %2560 = vmatpush.msra.mxu0 %v911_v17 }
 0x356   : > { %v1039_v19 = vld [vmem:[#allocation6 + $0x1438] sm:$0xff]  ;;  %2579 = vmatpush.msra.mxu1 %v979_v18 }
 0x357   : > { %v1107_v20 = vld [vmem:[#allocation6 + $0x1658] sm:$0xff]  ;;  %2600 = vmatpush.msra.mxu2 %v1039_v19 }
 0x358   : > { %v907_v21 = vld [vmem:[#allocation6 + $0x1018] sm:$0xff]  ;;  %2619 = vmatpush.msra.mxu3 %v1107_v20 }
 0x359   : > { %v975_v22 = vld [vmem:[#allocation6 + $0x1238] sm:$0xff]  ;;  %2561 = vmatpush.msra.mxu0 %v907_v21 }
 0x35a   : > { %v1035_v23 = vld [vmem:[#allocation6 + $0x1418] sm:$0xff]  ;;  %2580 = vmatpush.msra.mxu1 %v975_v22  ;;  %2562 = vmatmul.f32.vlgmr.msra.gmra.mxu0 %v3670_v29 }
 0x35b   : > { %v1103_v24 = vld [vmem:[#allocation6 + $0x1638] sm:$0xff]  ;;  %2601 = vmatpush.msra.mxu2 %v1035_v23 }
 0x35c   : > { %v1223_v25 = vld [vmem:[#allocation6 + $0x19f8] sm:$0xff]  ;;  %2620 = vmatpush.msra.mxu3 %v1103_v24  ;;  %2602 = vmatmul.f32.vlgmr.msra.gmra.mxu2 %v3671_v30 }
 0x35d   : > { %v1351_v26 = vld [vmem:[#allocation6 + $0x1df8] sm:$0xff]  ;;  %2626 = vmatpush.msrb.mxu0 %v1223_v25 }
 0x35e   : > { %v971_v27 = vld [vmem:[#allocation6 + $0x1218] sm:$0xff]  ;;  %2666 = vmatpush.msrb.mxu2 %v1351_v26 }
 0x35f   : > { %v1099_v28 = vld [vmem:[#allocation6 + $0x1618] sm:$0xff]  ;;  %2581 = vmatpush.msra.mxu1 %v971_v27 }
 0x360   : > { %v1219_v31 = vld [vmem:[#allocation6 + $0x19d8] sm:$0xff]  ;;  %2621 = vmatpush.msra.mxu3 %v1099_v28  ;;  %2582 = vmatmul.f32.vlgmr.msra.gmra.mxu1 %v3672_v35 }
 0x361   : > { %v1287_v32 = vld [vmem:[#allocation6 + $0x1bf8] sm:$0xff]  ;;  %2627 = vmatpush.msrb.mxu0 %v1219_v31 }
 0x362   : > { %v1347_v33 = vld [vmem:[#allocation6 + $0x1dd8] sm:$0xff]  ;;  %2646 = vmatpush.msrb.mxu1 %v1287_v32  ;;  %v3674_v32 = vld [vmem:[%s4129_s13 + $0x60] sm:$0xff] }
 0x363   : > { %v1415_v34 = vld [vmem:[#allocation6 + $0x1ff8] sm:$0xff]  ;;  %2667 = vmatpush.msrb.mxu2 %v1347_v33  ;;  %v3675_v33 = vld [vmem:[%s4129_s13 + $0x70] sm:$0xff] }
 0x364   : > { %v3673_v36 = vld [vmem:[%s4129_s13 + $0x58] sm:$0xff]  ;;  %2686 = vmatpush.msrb.mxu3 %v1415_v34  ;;  %v3676_v34 = vld [vmem:[%s4129_s13 + $0x68] sm:$0xff] }
 0x365   : > { %2622 = vmatmul.f32.vlgmr.msra.gmra.mxu3 %v3673_v36  ;;  %v1215_v37 = vld [vmem:[#allocation6 + $0x19b8] sm:$0xff]  ;;  %v4216_v36 = vpop.f32.mrf.mxu0 }
 0x366   : > { %v1283_v38 = vld [vmem:[#allocation6 + $0x1bd8] sm:$0xff]  ;;  %2628 = vmatpush.msrb.mxu0 %v1215_v37  ;;  %v4218_v37 = vpop.f32.mrf.mxu1 }
 0x367   : > { %v1343_v39 = vld [vmem:[#allocation6 + $0x1db8] sm:$0xff]  ;;  %2647 = vmatpush.msrb.mxu1 %v1283_v38  ;;  %v4220_v38 = vpop.f32.mrf.mxu2 }
 0x368   : > { %v1411_v40 = vld [vmem:[#allocation6 + $0x1fd8] sm:$0xff]  ;;  %2668 = vmatpush.msrb.mxu2 %v1343_v39 }
 0x369   : > { %v1211_v41 = vld [vmem:[#allocation6 + $0x1998] sm:$0xff]  ;;  %2687 = vmatpush.msrb.mxu3 %v1411_v40  ;;  %v4222_v40 = vpop.f32.mrf.mxu3 }
 0x36a   : > { %v1279_v42 = vld [vmem:[#allocation6 + $0x1bb8] sm:$0xff]  ;;  %2629 = vmatpush.msrb.mxu0 %v1211_v41 }
 0x36b   : > { %v1339_v43 = vld [vmem:[#allocation6 + $0x1d98] sm:$0xff]  ;;  %2648 = vmatpush.msrb.mxu1 %v1279_v42 }
 0x36c   : > { %v1407_v44 = vld [vmem:[#allocation6 + $0x1fb8] sm:$0xff]  ;;  %2669 = vmatpush.msrb.mxu2 %v1339_v43 }
 0x36d   : > { %v1207_v45 = vld [vmem:[#allocation6 + $0x1978] sm:$0xff]  ;;  %2688 = vmatpush.msrb.mxu3 %v1407_v44  ;;  %v1763_v39 = vpop.f32.mrf.mxu0 }
 0x36e   : > { %v1275_v46 = vld [vmem:[#allocation6 + $0x1b98] sm:$0xff]  ;;  %2630 = vmatpush.msrb.mxu0 %v1207_v45  ;;  %v1783_v41 = vpop.f32.mrf.mxu1 }
 0x36f   : > { %v1335_v47 = vld [vmem:[#allocation6 + $0x1d78] sm:$0xff]  ;;  %2649 = vmatpush.msrb.mxu1 %v1275_v46  ;;  %v1803_v42 = vpop.f32.mrf.mxu2 }
 0x370   : > { %v1403_v48 = vld [vmem:[#allocation6 + $0x1f98] sm:$0xff]  ;;  %2670 = vmatpush.msrb.mxu2 %v1335_v47 }
 0x371   : > { %v1203_v49 = vld [vmem:[#allocation6 + $0x1958] sm:$0xff]  ;;  %2689 = vmatpush.msrb.mxu3 %v1403_v48  ;;  %v1823_v44 = vpop.f32.mrf.mxu3 }
 0x372   : > { %v1271_v50 = vld [vmem:[#allocation6 + $0x1b78] sm:$0xff]  ;;  %2631 = vmatpush.msrb.mxu0 %v1203_v49 }
 0x373   : > { %v1331_v51 = vld [vmem:[#allocation6 + $0x1d58] sm:$0xff]  ;;  %2650 = vmatpush.msrb.mxu1 %v1271_v50 }
 0x374   : > { %v1399_v53 = vld [vmem:[#allocation6 + $0x1f78] sm:$0xff]  ;;  %2671 = vmatpush.msrb.mxu2 %v1331_v51 }
 0x375   : > { %v1199_v54 = vld [vmem:[#allocation6 + $0x1938] sm:$0xff]  ;;  %2690 = vmatpush.msrb.mxu3 %v1399_v53  ;;  %v1843_v43 = vpop.f32.mrf.mxu0 }
 0x376   : > { %v1267_v55 = vld [vmem:[#allocation6 + $0x1b58] sm:$0xff]  ;;  %2632 = vmatpush.msrb.mxu0 %v1199_v54  ;;  %v1863_v45 = vpop.f32.mrf.mxu1 }
 0x377   : > { %v1327_v56 = vld [vmem:[#allocation6 + $0x1d38] sm:$0xff]  ;;  %2651 = vmatpush.msrb.mxu1 %v1267_v55  ;;  %v1883_v46 = vpop.f32.mrf.mxu2 }
 0x378   : > { %v1395_v57 = vld [vmem:[#allocation6 + $0x1f58] sm:$0xff]  ;;  %2672 = vmatpush.msrb.mxu2 %v1327_v56 }
 0x379   : > { %v1195_v58 = vld [vmem:[#allocation6 + $0x1918] sm:$0xff]  ;;  %2691 = vmatpush.msrb.mxu3 %v1395_v57  ;;  %v1903_v48 = vpop.f32.mrf.mxu3 }
 0x37a   : > { %v1263_v59 = vld [vmem:[#allocation6 + $0x1b38] sm:$0xff]  ;;  %2633 = vmatpush.msrb.mxu0 %v1195_v58 }
 0x37b   : > { %v1323_v60 = vld [vmem:[#allocation6 + $0x1d18] sm:$0xff]  ;;  %2652 = vmatpush.msrb.mxu1 %v1263_v59 }
 0x37c   : > { %v1391_v61 = vld [vmem:[#allocation6 + $0x1f38] sm:$0xff]  ;;  %2673 = vmatpush.msrb.mxu2 %v1323_v60 }
 0x37d   : > { %v1191_v62 = vld [vmem:[#allocation6 + $0x18f8] sm:$0xff]  ;;  %2692 = vmatpush.msrb.mxu3 %v1391_v61  ;;  %v1923_v47 = vpop.f32.mrf.mxu0 }
 0x37e   : > { %v1259_v63 = vld [vmem:[#allocation6 + $0x1b18] sm:$0xff]  ;;  %2634 = vmatpush.msrb.mxu0 %v1191_v62  ;;  %v1943_v49 = vpop.f32.mrf.mxu1 }
 0x37f   : > { %v1319_v0 = vld [vmem:[#allocation6 + $0x1cf8] sm:$0xff]  ;;  %2653 = vmatpush.msrb.mxu1 %v1259_v63  ;;  %v1963_v50 = vpop.f32.mrf.mxu2 }
 0x380   : > { %v1387_v1 = vld [vmem:[#allocation6 + $0x1f18] sm:$0xff]  ;;  %2674 = vmatpush.msrb.mxu2 %v1319_v0 }
 0x381   : > { %v1187_v2 = vld [vmem:[#allocation6 + $0x18d8] sm:$0xff]  ;;  %2693 = vmatpush.msrb.mxu3 %v1387_v1  ;;  %v1983_v53 = vpop.f32.mrf.mxu3  ;;  %v3678_v1 = vld [vmem:[#allocation8] sm:$0xf] }
 0x382   : > { %v1255_v3 = vld [vmem:[#allocation6 + $0x1af8] sm:$0xff]  ;;  %2635 = vmatpush.msrb.mxu0 %v1187_v2  ;;  %v1419_v2 = vperm.slane %v3678_v1, 1 }
 0x383   : > { %v1315_v4 = vld [vmem:[#allocation6 + $0x1cd8] sm:$0xff]  ;;  %2654 = vmatpush.msrb.mxu1 %v1255_v3 }
 0x384   : > { %v1383_v5 = vld [vmem:[#allocation6 + $0x1ef8] sm:$0xff]  ;;  %2675 = vmatpush.msrb.mxu2 %v1315_v4 }
 0x385   : > { %v1183_v6 = vld [vmem:[#allocation6 + $0x18b8] sm:$0xff]  ;;  %2694 = vmatpush.msrb.mxu3 %v1383_v5  ;;  %v4224_v51 = vpop.f32.mrf.mxu0  ;;  %v1420_v5 = vperm.slane %v3678_v1, 2 }
 0x386   : > { %v1251_v7 = vld [vmem:[#allocation6 + $0x1ad8] sm:$0xff]  ;;  %2636 = vmatpush.msrb.mxu0 %v1183_v6  ;;  %v4226_v54 = vpop.f32.mrf.mxu1  ;;  %v1764_v6 = vadd.f32 %v1763_v39, %v1419_v2 }
 0x387   : > { %v1311_v8 = vld [vmem:[#allocation6 + $0x1cb8] sm:$0xff]  ;;  %2655 = vmatpush.msrb.mxu1 %v1251_v7  ;;  %v4228_v55 = vpop.f32.mrf.mxu2 }
 0x388   : > { %v1379_v9 = vld [vmem:[#allocation6 + $0x1ed8] sm:$0xff]  ;;  %2676 = vmatpush.msrb.mxu2 %v1311_v8 }
 0x389   : > { %v1179_v10 = vld [vmem:[#allocation6 + $0x1898] sm:$0xff]  ;;  %2695 = vmatpush.msrb.mxu3 %v1379_v9  ;;  %v4230_v57 = vpop.f32.mrf.mxu3 }
 0x38a   : > { %v1247_v11 = vld [vmem:[#allocation6 + $0x1ab8] sm:$0xff]  ;;  %2637 = vmatpush.msrb.mxu0 %v1179_v10  ;;  %v1784_v10 = vadd.f32 %v1783_v41, %v1764_v6 }
 0x38b   : > { %v1307_v12 = vld [vmem:[#allocation6 + $0x1c98] sm:$0xff]  ;;  %2656 = vmatpush.msrb.mxu1 %v1247_v11 }
 0x38c   : > { %v1375_v13 = vld [vmem:[#allocation6 + $0x1eb8] sm:$0xff]  ;;  %2677 = vmatpush.msrb.mxu2 %v1307_v12 }
 0x38d   : > { %v1175_v14 = vld [vmem:[#allocation6 + $0x1878] sm:$0xff]  ;;  %2696 = vmatpush.msrb.mxu3 %v1375_v13  ;;  %v2083_v56 = vpop.f32.mrf.mxu0 }
 0x38e   : > { %v1243_v15 = vld [vmem:[#allocation6 + $0x1a98] sm:$0xff]  ;;  %2638 = vmatpush.msrb.mxu0 %v1175_v14  ;;  %v2103_v58 = vpop.f32.mrf.mxu1  ;;  %v2084_v9 = vadd.f32 %v2083_v56, %v1420_v5  ;;  %v1804_v14 = vadd.f32 %v1803_v42, %v1784_v10 }
 0x38f   : > { %v1303_v16 = vld [vmem:[#allocation6 + $0x1c78] sm:$0xff]  ;;  %2657 = vmatpush.msrb.mxu1 %v1243_v15  ;;  %v2123_v59 = vpop.f32.mrf.mxu2  ;;  %v1421_v15 = vperm.slane %v3678_v1, 3 }
 0x390   : > { %v1371_v17 = vld [vmem:[#allocation6 + $0x1e98] sm:$0xff]  ;;  %2678 = vmatpush.msrb.mxu2 %v1303_v16  ;;  %v2104_v13 = vadd.f32 %v2103_v58, %v2084_v9 }
 0x391   : > { %v1171_v18 = vld [vmem:[#allocation6 + $0x1858] sm:$0xff]  ;;  %2697 = vmatpush.msrb.mxu3 %v1371_v17  ;;  %v2143_v61 = vpop.f32.mrf.mxu3 }
 0x392   : > { %v1239_v19 = vld [vmem:[#allocation6 + $0x1a78] sm:$0xff]  ;;  %2639 = vmatpush.msrb.mxu0 %v1171_v18  ;;  %v2124_v18 = vadd.f32 %v2123_v59, %v2104_v13 }
 0x393   : > { %v1299_v20 = vld [vmem:[#allocation6 + $0x1c58] sm:$0xff]  ;;  %2658 = vmatpush.msrb.mxu1 %v1239_v19  ;;  %v1824_v19 = vadd.f32 %v1823_v44, %v1804_v14 }
 0x394   : > { %v1367_v21 = vld [vmem:[#allocation6 + $0x1e78] sm:$0xff]  ;;  %2679 = vmatpush.msrb.mxu2 %v1299_v20 }
 0x395   : > { %v1167_v22 = vld [vmem:[#allocation6 + $0x1838] sm:$0xff]  ;;  %2698 = vmatpush.msrb.mxu3 %v1367_v21  ;;  %v2163_v60 = vpop.f32.mrf.mxu0 }
 0x396   : > { %v1235_v23 = vld [vmem:[#allocation6 + $0x1a58] sm:$0xff]  ;;  %2640 = vmatpush.msrb.mxu0 %v1167_v22  ;;  %v2183_v62 = vpop.f32.mrf.mxu1 }
 0x397   : > { %v1295_v24 = vld [vmem:[#allocation6 + $0x1c38] sm:$0xff]  ;;  %2659 = vmatpush.msrb.mxu1 %v1235_v23  ;;  %v2203_v63 = vpop.f32.mrf.mxu2  ;;  %v2144_v23 = vadd.f32 %v2143_v61, %v2124_v18 }
 0x398   : > { %v1363_v25 = vld [vmem:[#allocation6 + $0x1e58] sm:$0xff]  ;;  %2680 = vmatpush.msrb.mxu2 %v1295_v24  ;;  %v1844_v24 = vadd.f32 %v1843_v43, %v1824_v19  ;;  %v2710_v19 = vld [vmem:[#allocation9] sm:$0xf] }
 0x399   : > { %v1163_v26 = vld [vmem:[#allocation6 + $0x1818] sm:$0xff]  ;;  %2699 = vmatpush.msrb.mxu3 %v1363_v25  ;;  %v2223_v3 = vpop.f32.mrf.mxu3 }
 0x39a   : > { %v1231_v27 = vld [vmem:[#allocation6 + $0x1a38] sm:$0xff]  ;;  %2641 = vmatpush.msrb.mxu0 %v1163_v26 }
 0x39b   : > { %v1291_v28 = vld [vmem:[#allocation6 + $0x1c18] sm:$0xff]  ;;  %2660 = vmatpush.msrb.mxu1 %v1231_v27  ;;  %2642 = vmatmul.f32.vlgmr.msrb.gmra.mxu0 %v3674_v32  ;;  %v2164_v27 = vadd.f32 %v2163_v60, %v2144_v23 }
 0x39c   : > { %v1359_v29 = vld [vmem:[#allocation6 + $0x1e38] sm:$0xff]  ;;  %2681 = vmatpush.msrb.mxu2 %v1291_v28  ;;  %v1864_v28 = vadd.f32 %v1863_v45, %v1844_v24  ;;  %v2714_v24 = vperm.slane %v2710_v19, 2 }
 0x39d   : > { %v1227_v30 = vld [vmem:[#allocation6 + $0x1a18] sm:$0xff]  ;;  %2700 = vmatpush.msrb.mxu3 %v1359_v29  ;;  %2682 = vmatmul.f32.vlgmr.msrb.gmra.mxu2 %v3675_v33  ;;  %v2243_v0 = vpop.f32.mrf.mxu0 }
 0x39e   : > { %v1355_v31 = vld [vmem:[#allocation6 + $0x1e18] sm:$0xff]  ;;  %2661 = vmatpush.msrb.mxu1 %v1227_v30  ;;  %v2263_v4 = vpop.f32.mrf.mxu1  ;;  %v1884_v32 = vadd.f32 %v1883_v46, %v1864_v28 }
 0x39f   : > { %2701 = vmatpush.msrb.mxu3 %v1355_v31  ;;  %2662 = vmatmul.f32.vlgmr.msrb.gmra.mxu1 %v3676_v34  ;;  %v3677_v35 = vld [vmem:[%s4129_s13 + $0x78] sm:$0xff]  ;;  %v2283_v7 = vpop.f32.mrf.mxu2  ;;  %v2184_v31 = vadd.f32 %v2183_v62, %v2164_v27 }
 0x3a0   : > { %2702 = vmatmul.f32.vlgmr.msrb.gmra.mxu3 %v3677_v35  ;;  %v1904_v39 = vadd.f32 %v1903_v48, %v1884_v32 }
 0x3a1   : > { %v2303_v11 = vpop.f32.mrf.mxu3  ;;  %v2204_v35 = vadd.f32 %v2203_v63, %v2184_v31 }
 0x3a2   : > { %v1924_v44 = vadd.f32 %v1923_v47, %v1904_v39  ;;  %v1684_v47 = vadd.f32 %v4216_v36, %v4174_v52 }
 0x3a3   : > { %v2224_v56 = vadd.f32 %v2223_v3, %v2204_v35 }
 0x3a4   : > { %v1944_v43 = vadd.f32 %v1943_v49, %v1924_v44  ;;  %v2821_v44 = vld [vmem:[#allocation11 + $0x178] sm:$0xff] }
 0x3a5   : > { %v2323_v8 = vpop.f32.mrf.mxu0  ;;  %v2244_v58 = vadd.f32 %v2243_v0, %v2224_v56  ;;  %v2837_v56 = vld [vmem:[#allocation11 + $0x1f8] sm:$0xff]  ;;  %3074 = vmatpush.msra.mxu2 %v2821_v44  ;;  %v2775_v44 = vld [vmem:[#allocation11 + $0x8] sm:$0xff] }
 0x3a6   : > { %v2343_v12 = vpop.f32.mrf.mxu1  ;;  %v1964_v1 = vadd.f32 %v1963_v50, %v1944_v43  ;;  %3094 = vmatpush.msra.mxu3 %v2837_v56  ;;  %v2820_v43 = vld [vmem:[#allocation11 + $0x170] sm:$0xff]  ;;  %v2791_v56 = vld [vmem:[#allocation11 + $0x88] sm:$0xff] }
 0x3a7   : > { %v2363_v16 = vpop.f32.mrf.mxu2  ;;  %v2264_v2 = vadd.f32 %v2263_v4, %v2244_v58  ;;  %v1704_v4 = vadd.f32 %v4218_v37, %v1684_v47  ;;  %v2788_v58 = vld [vmem:[#allocation11 + $0x70] sm:$0xff]  ;;  %3075 = vmatpush.msra.mxu2 %v2820_v43  ;;  %v2801_v47 = vld [vmem:[#allocation11 + $0xd8] sm:$0xff] }
 0x3a8   : > { %v1984_v62 = vadd.f32 %v1983_v53, %v1964_v1  ;;  %v2836_v1 = vld [vmem:[#allocation11 + $0x1f0] sm:$0xff] }
 0x3a9   : > { %v2383_v21 = vpop.f32.mrf.mxu3  ;;  %v2284_v5 = vadd.f32 %v2283_v7, %v2264_v2  ;;  %v1724_v14 = vadd.f32 %v4220_v38, %v1704_v4  ;;  %v2713_v38 = vperm.slane %v2710_v19, 1  ;;  %v2787_v2 = vld [vmem:[#allocation11 + $0x68] sm:$0xff]  ;;  %3095 = vmatpush.msra.mxu3 %v2836_v1  ;;  %v2832_v4 = vld [vmem:[#allocation11 + $0x1d0] sm:$0xff]  ;;  %v2774_v1 = vld [vmem:[#allocation11] sm:$0xff] }
 0x3aa   : > { %v2004_v9 = vadd.f32 %v4224_v51, %v1984_v62  ;;  %v2786_v62 = vld [vmem:[#allocation11 + $0x60] sm:$0xff] }
 0x3ab   : > { %v2304_v63 = vadd.f32 %v2303_v11, %v2284_v5  ;;  %v1744_v52 = vadd.f32 %v4222_v40, %v1724_v14  ;;  %v2835_v5 = vld [vmem:[#allocation11 + $0x1e8] sm:$0xff] }
 0x3ac   : > { %v2024_v49 = vadd.f32 %v4226_v54, %v2004_v9  ;;  %v2818_v9 = vld [vmem:[#allocation11 + $0x160] sm:$0xff]  ;;  %3096 = vmatpush.msra.mxu3 %v2835_v5  ;;  %v2831_v14 = vld [vmem:[#allocation11 + $0x1c8] sm:$0xff] }
 0x3ad   : > { %v2403_v17 = vpop.f32.mrf.mxu0  ;;  %v2324_v0 = vadd.f32 %v2323_v8, %v2304_v63  ;;  %v2834_v63 = vld [vmem:[#allocation11 + $0x1e0] sm:$0xff] }
 0x3ae   : > { %v2404_v20 = vadd.f32 %v2403_v17, %v1421_v15  ;;  %v2423_v22 = vpop.f32.mrf.mxu1  ;;  %v2044_v7 = vadd.f32 %v4228_v55, %v2024_v49  ;;  %3097 = vmatpush.msra.mxu3 %v2834_v63  ;;  %v2800_v49 = vld [vmem:[#allocation11 + $0xd0] sm:$0xff]  ;;  %v2901_v63 = vld [vmem:[#allocation11 + $0x3f8] sm:$0xff] }
 0x3af   : > { %v2443_v26 = vpop.f32.mrf.mxu2  ;;  %v2344_v13 = vadd.f32 %v2343_v12, %v2324_v0  ;;  %v2833_v0 = vld [vmem:[#allocation11 + $0x1d8] sm:$0xff] }
 0x3b0   : > { %v2424_v25 = vadd.f32 %v2423_v22, %v2404_v20  ;;  %v2064_v15 = vadd.f32 %v4230_v57, %v2044_v7  ;;  %v2712_v57 = vperm.slane %v2710_v19, 0  ;;  %3098 = vmatpush.msra.mxu3 %v2833_v0  ;;  %v2783_v7 = vld [vmem:[#allocation11 + $0x48] sm:$0xff]  ;;  %v2900_v0 = vld [vmem:[#allocation11 + $0x3f0] sm:$0xff] }
 0x3b1   : > { %v2463_v30 = vpop.f32.mrf.mxu3  ;;  %v2364_v11 = vadd.f32 %v2363_v16, %v2344_v13  ;;  %v2799_v13 = vld [vmem:[#allocation11 + $0xc8] sm:$0xff] }
 0x3b2   : > { %v2444_v29 = vadd.f32 %v2443_v26, %v2424_v25  ;;  %3618 = vtanh.f32 %v2064_v15  ;;  %3099 = vmatpush.msra.mxu3 %v2832_v4  ;;  %v2798_v15 = vld [vmem:[#allocation11 + $0xc0] sm:$0xff]  ;;  %v2899_v4 = vld [vmem:[#allocation11 + $0x3e8] sm:$0xff] }
 0x3b3   : > { %v2384_v8 = vadd.f32 %v2383_v21, %v2364_v11  ;;  %3620 = vtanh.f32 %v1744_v52  ;;  %v2715_v21 = vperm.slane %v2710_v19, 3  ;;  %v2782_v11 = vld [vmem:[#allocation11 + $0x40] sm:$0xff]  ;;  %v2828_v19 = vld [vmem:[#allocation11 + $0x1b0] sm:$0xff] }
 0x3b4   : > { %v2464_v33 = vadd.f32 %v2463_v30, %v2444_v29  ;;  %v2830_v52 = vld [vmem:[#allocation11 + $0x1c0] sm:$0xff]  ;;  %3100 = vmatpush.msra.mxu3 %v2831_v14 }
 0x3b5   : > { %v2483_v34 = vpop.f32.mrf.mxu0  ;;  %3622 = vtanh.f32 %v2384_v8  ;;  %v2797_v8 = vld [vmem:[#allocation11 + $0xb8] sm:$0xff]  ;;  %v2898_v14 = vld [vmem:[#allocation11 + $0x3e0] sm:$0xff] }
 0x3b6   : > { %v2484_v41 = vadd.f32 %v2483_v34, %v2464_v33  ;;  %v2503_v42 = vpop.f32.mrf.mxu1  ;;  %v3964_v33 = vmov 0   ;;  %v3616_v34 = vld [vmem:[#allocation2] ss:$0 sm:$0xff]  ;;  %3101 = vmatpush.msra.mxu3 %v2830_v52 }
 0x3b7   : > { %v2523_v61 = vpop.f32.mrf.mxu2  ;;  %3615 = vset.pattern.permute.xlu0 %v3964_v33  ;;  %v2848_v52 = vld [vmem:[#allocation11 + $0x250] sm:$0xff] }
 0x3b8   : > { %v2504_v59 = vadd.f32 %v2503_v42, %v2484_v41  ;;  %v3619_v22 = vpop.eup %3618  ;;  %v2789_v41 = vld [vmem:[#allocation11 + $0x78] sm:$0xff] }
 0x3b9   : > { %v2543_v45 = vpop.f32.mrf.mxu3  ;;  %v3621_v23 = vpop.eup %3620  ;;  %v2721_v40 = vmul.f32 %v3619_v22, %v2713_v38  ;;  %v2805_v42 = vld [vmem:[#allocation11 + $0xf8] sm:$0xff]  ;;  %3034 = vmatpush.msra.mxu0 %v2789_v41  ;;  %v2795_v38 = vld [vmem:[#allocation11 + $0xa8] sm:$0xff]  ;;  %v2824_v41 = vld [vmem:[#allocation11 + $0x190] sm:$0xff] }
 0x3ba   : > { %v2524_v60 = vadd.f32 %v2523_v61, %v2504_v59  ;;  %v2720_v26 = vmul.f32 %v3621_v23, %v2712_v57  ;;  %3054 = vmatpush.msra.mxu1 %v2805_v42  ;;  %v2804_v59 = vld [vmem:[#allocation11 + $0xf0] sm:$0xff]  ;;  %v2827_v23 = vld [vmem:[#allocation11 + $0x1a8] sm:$0xff] }
 0x3bb   : > { %v3623_v25 = vpop.eup %3622  ;;  %3035 = vmatpush.msra.mxu0 %v2788_v58 }
 0x3bc   : > { %v2544_v46 = vadd.f32 %v2543_v45, %v2524_v60  ;;  %v2722_v27 = vmul.f32 %v3623_v25, %v2714_v24  ;;  %v2724_v28 = vadd.f32 %v2721_v40, %v2720_v26  ;;  %3055 = vmatpush.msra.mxu1 %v2804_v59  ;;  %v2803_v60 = vld [vmem:[#allocation11 + $0xe8] sm:$0xff]  ;;  %v2778_v24 = vld [vmem:[#allocation11 + $0x20] sm:$0xff] }
 0x3bd   : > { %v2819_v45 = vld [vmem:[#allocation11 + $0x168] sm:$0xff]  ;;  %3036 = vmatpush.msra.mxu0 %v2787_v2  ;;  %v2794_v25 = vld [vmem:[#allocation11 + $0xa0] sm:$0xff] }
 0x3be   : > { %v2725_v31 = vadd.f32 %v2724_v28, %v2722_v27  ;;  %3056 = vmatpush.msra.mxu1 %v2803_v60  ;;  %3076 = vmatpush.msra.mxu2 %v2819_v45  ;;  %v2810_v40 = vld [vmem:[#allocation11 + $0x120] sm:$0xff]  ;;  %v2777_v27 = vld [vmem:[#allocation11 + $0x18] sm:$0xff]  ;;  %v2807_v59 = vld [vmem:[#allocation11 + $0x108] sm:$0xff] }
 0x3bf   : > { %3037 = vmatpush.msra.mxu0 %v2786_v62  ;;  %v2793_v28 = vld [vmem:[#allocation11 + $0x98] sm:$0xff]  ;;  %v2790_v2 = vld [vmem:[#allocation11 + $0x80] sm:$0xff] }
 0x3c0   : > { %3077 = vmatpush.msra.mxu2 %v2818_v9  ;;  %v2806_v45 = vld [vmem:[#allocation11 + $0x100] sm:$0xff]  ;;  %v2853_v62 = vld [vmem:[#allocation11 + $0x278] sm:$0xff] }
 0x3c1   : > { %v2885_v9 = vld [vmem:[#allocation11 + $0x378] sm:$0xff] }
 0x3d7   : > { %v2563_v6 = vpop.f32.mrf.mxu0 }
 0x3d8   : > { %v2564_v48 = vadd.f32 %v2563_v6, %v2544_v46  ;;  %v2802_v46 = vld [vmem:[#allocation11 + $0xe0] sm:$0xff] }
 0x3d9   : > { %3057 = vmatpush.msra.mxu1 %v2802_v46  ;;  %v2869_v46 = vld [vmem:[#allocation11 + $0x2f8] sm:$0xff] }
 0x3db   : > { %3058 = vmatpush.msra.mxu1 %v2801_v47  ;;  %v2868_v47 = vld [vmem:[#allocation11 + $0x2f0] sm:$0xff] }
 0x3dd   : > { %v2583_v3 = vpop.f32.mrf.mxu1  ;;  %3059 = vmatpush.msra.mxu1 %v2800_v49  ;;  %v2867_v49 = vld [vmem:[#allocation11 + $0x2e8] sm:$0xff] }
 0x3de   : > { %v2584_v50 = vadd.f32 %v2583_v3, %v2564_v48  ;;  %v2785_v48 = vld [vmem:[#allocation11 + $0x58] sm:$0xff] }
 0x3df   : > { %v2603_v10 = vpop.f32.mrf.mxu2  ;;  %v2817_v3 = vld [vmem:[#allocation11 + $0x158] sm:$0xff]  ;;  %3038 = vmatpush.msra.mxu0 %v2785_v48  ;;  %3060 = vmatpush.msra.mxu1 %v2799_v13  ;;  %v2852_v48 = vld [vmem:[#allocation11 + $0x270] sm:$0xff]  ;;  %v2866_v13 = vld [vmem:[#allocation11 + $0x2e0] sm:$0xff] }
 0x3e0   : > { %v2604_v53 = vadd.f32 %v2603_v10, %v2584_v50  ;;  %v2784_v10 = vld [vmem:[#allocation11 + $0x50] sm:$0xff]  ;;  %3078 = vmatpush.msra.mxu2 %v2817_v3 }
 0x3e1   : > { %v2816_v50 = vld [vmem:[#allocation11 + $0x150] sm:$0xff]  ;;  %3039 = vmatpush.msra.mxu0 %v2784_v10  ;;  %3061 = vmatpush.msra.mxu1 %v2798_v15  ;;  %v2851_v10 = vld [vmem:[#allocation11 + $0x268] sm:$0xff]  ;;  %v2881_v15 = vld [vmem:[#allocation11 + $0x358] sm:$0xff] }
 0x3e2   : > { %3079 = vmatpush.msra.mxu2 %v2816_v50  ;;  %v2884_v3 = vld [vmem:[#allocation11 + $0x370] sm:$0xff]  ;;  %v2883_v50 = vld [vmem:[#allocation11 + $0x368] sm:$0xff] }
 0x3e3   : > { %3040 = vmatpush.msra.mxu0 %v2783_v7  ;;  %3062 = vmatpush.msra.mxu1 %v2797_v8  ;;  %v2850_v7 = vld [vmem:[#allocation11 + $0x260] sm:$0xff]  ;;  %v2880_v8 = vld [vmem:[#allocation11 + $0x350] sm:$0xff] }
 0x3e5   : > { %3041 = vmatpush.msra.mxu0 %v2782_v11  ;;  %v2865_v11 = vld [vmem:[#allocation11 + $0x2d8] sm:$0xff] }
 0x3e8   : > { %v2623_v51 = vpop.f32.mrf.mxu3 }
 0x3e9   : > { %v2624_v17 = vadd.f32 %v2623_v51, %v2604_v53  ;;  %v2815_v53 = vld [vmem:[#allocation11 + $0x148] sm:$0xff] }
 0x3ea   : > { %3080 = vmatpush.msra.mxu2 %v2815_v53  ;;  %v2882_v53 = vld [vmem:[#allocation11 + $0x360] sm:$0xff] }
 0x418   : > { %v2643_v36 = vpop.f32.mrf.mxu0 }
 0x419   : > { %v2644_v18 = vadd.f32 %v2643_v36, %v2624_v17  ;;  %v2814_v17 = vld [vmem:[#allocation11 + $0x140] sm:$0xff]  ;;  %v2781_v36 = vld [vmem:[#allocation11 + $0x38] sm:$0xff] }
 0x41a   : > { %3081 = vmatpush.msra.mxu2 %v2814_v17  ;;  %3042 = vmatpush.msra.mxu0 %v2781_v36  ;;  %v2897_v17 = vld [vmem:[#allocation11 + $0x3d8] sm:$0xff]  ;;  %v2864_v36 = vld [vmem:[#allocation11 + $0x2d0] sm:$0xff] }
 0x41c   : > { %v2663_v54 = vpop.f32.mrf.mxu1 }
 0x41d   : > { %v2664_v37 = vadd.f32 %v2663_v54, %v2644_v18  ;;  %v2813_v18 = vld [vmem:[#allocation11 + $0x138] sm:$0xff] }
 0x41e   : > { %v2829_v54 = vld [vmem:[#allocation11 + $0x1b8] sm:$0xff]  ;;  %3082 = vmatpush.msra.mxu2 %v2813_v18  ;;  %v2896_v18 = vld [vmem:[#allocation11 + $0x3d0] sm:$0xff] }
 0x41f   : > { %3102 = vmatpush.msra.mxu3 %v2829_v54  ;;  %v2847_v54 = vld [vmem:[#allocation11 + $0x248] sm:$0xff] }
 0x420   : > { %v2683_v55 = vpop.f32.mrf.mxu2 }
 0x421   : > { %v2684_v12 = vadd.f32 %v2683_v55, %v2664_v37  ;;  %v2780_v37 = vld [vmem:[#allocation11 + $0x30] sm:$0xff]  ;;  %3103 = vmatpush.msra.mxu3 %v2828_v19  ;;  %v2846_v19 = vld [vmem:[#allocation11 + $0x240] sm:$0xff] }
 0x422   : > { %v2796_v55 = vld [vmem:[#allocation11 + $0xb0] sm:$0xff]  ;;  %3043 = vmatpush.msra.mxu0 %v2780_v37  ;;  %v2863_v37 = vld [vmem:[#allocation11 + $0x2c8] sm:$0xff] }
 0x423   : > { %v2703_v20 = vpop.f32.mrf.mxu3  ;;  %3063 = vmatpush.msra.mxu1 %v2796_v55  ;;  %3104 = vmatpush.msra.mxu3 %v2827_v23  ;;  %v2879_v55 = vld [vmem:[#allocation11 + $0x348] sm:$0xff]  ;;  %v2861_v23 = vld [vmem:[#allocation11 + $0x2b8] sm:$0xff] }
 0x424   : > { %v2704_v16 = vadd.f32 %v2703_v20, %v2684_v12  ;;  %v2812_v12 = vld [vmem:[#allocation11 + $0x130] sm:$0xff]  ;;  %v2779_v20 = vld [vmem:[#allocation11 + $0x28] sm:$0xff] }
 0x425   : > { %3083 = vmatpush.msra.mxu2 %v2812_v12  ;;  %3044 = vmatpush.msra.mxu0 %v2779_v20  ;;  %v2895_v12 = vld [vmem:[#allocation11 + $0x3c8] sm:$0xff]  ;;  %v2862_v20 = vld [vmem:[#allocation11 + $0x2c0] sm:$0xff] }
 0x426   : > { %3624 = vtanh.f32 %v2704_v16  ;;  %v2811_v16 = vld [vmem:[#allocation11 + $0x128] sm:$0xff]  ;;  %3064 = vmatpush.msra.mxu1 %v2795_v38  ;;  %v2878_v38 = vld [vmem:[#allocation11 + $0x340] sm:$0xff] }
 0x427   : > { %3084 = vmatpush.msra.mxu2 %v2811_v16  ;;  %3045 = vmatpush.msra.mxu0 %v2778_v24  ;;  %v2845_v16 = vld [vmem:[#allocation11 + $0x238] sm:$0xff] }
 0x428   : > { %3065 = vmatpush.msra.mxu1 %v2794_v25  ;;  %v2893_v24 = vld [vmem:[#allocation11 + $0x3b8] sm:$0xff]  ;;  %v2844_v25 = vld [vmem:[#allocation11 + $0x230] sm:$0xff] }
 0x429   : > { %3085 = vmatpush.msra.mxu2 %v2810_v40  ;;  %3046 = vmatpush.msra.mxu0 %v2777_v27  ;;  %v2860_v40 = vld [vmem:[#allocation11 + $0x2b0] sm:$0xff]  ;;  %v2843_v27 = vld [vmem:[#allocation11 + $0x228] sm:$0xff] }
 0x42a   : > { %3066 = vmatpush.msra.mxu1 %v2793_v28  ;;  %v2859_v28 = vld [vmem:[#allocation11 + $0x2a8] sm:$0xff] }
 0x42c   : > { %v3625_v29 = vpop.eup %3624 }
 0x42d   : > { %v2723_v30 = vmul.f32 %v3625_v29, %v2715_v21  ;;  %v2826_v21 = vld [vmem:[#allocation11 + $0x1a0] sm:$0xff] }
 0x42e   : > { %3105 = vmatpush.msra.mxu3 %v2826_v21  ;;  %v2876_v21 = vld [vmem:[#allocation11 + $0x330] sm:$0xff] }
 0x42f   : > { %v2726_v32 = vadd.f32 %v2725_v31, %v2723_v30  ;;  %v2809_v30 = vld [vmem:[#allocation11 + $0x118] sm:$0xff] }
 0x430   : > { %v2825_v31 = vld [vmem:[#allocation11 + $0x198] sm:$0xff]  ;;  %3086 = vmatpush.msra.mxu2 %v2809_v30  ;;  %v2891_v30 = vld [vmem:[#allocation11 + $0x3a8] sm:$0xff] }
 0x431   : > { %2727 = vadd.xlane.f32.xlu0 %v2726_v32  ;;  %3106 = vmatpush.msra.mxu3 %v2825_v31  ;;  %v2842_v31 = vld [vmem:[#allocation11 + $0x220] sm:$0xff] }
 0x433   : > { %3107 = vmatpush.msra.mxu3 %v2824_v41  ;;  %v2873_v41 = vld [vmem:[#allocation11 + $0x318] sm:$0xff] }
 0x4a4   : > { %v2728_v35 = vpop.xlane.xlu0 %2727 }
 0x4a5   : > { %v2733_v39 = vadd.f32 %v3616_v34, %v2728_v35  ;;  %v2776_v34 = vld [vmem:[#allocation11 + $0x10] sm:$0xff] }
 0x4a6   : > { %v2792_v35 = vld [vmem:[#allocation11 + $0x90] sm:$0xff]  ;;  %3047 = vmatpush.msra.mxu0 %v2776_v34  ;;  %v2890_v34 = vld [vmem:[#allocation11 + $0x3a0] sm:$0xff] }
 0x4a7   : > { %v2734_v61 = vsub.f32 %v2733_v39, %v2733_v39  ;;  %v2808_v39 = vld [vmem:[#allocation11 + $0x110] sm:$0xff]  ;;  %3067 = vmatpush.msra.mxu1 %v2792_v35  ;;  %v2841_v35 = vld [vmem:[#allocation11 + $0x218] sm:$0xff] }
 0x4a8   : > { %3087 = vmatpush.msra.mxu2 %v2808_v39  ;;  %3048 = vmatpush.msra.mxu0 %v2775_v44  ;;  %v2857_v39 = vld [vmem:[#allocation11 + $0x298] sm:$0xff]  ;;  %v2840_v44 = vld [vmem:[#allocation11 + $0x210] sm:$0xff] }
 0x4a9   : > { %v2735_v6 = vmul.f32 1.442695, %v2734_v61  ;;  %v2823_v61 = vld [vmem:[#allocation11 + $0x188] sm:$0xff]  ;;  %3068 = vmatpush.msra.mxu1 %v2791_v56  ;;  %v2856_v56 = vld [vmem:[#allocation11 + $0x290] sm:$0xff] }
 0x4aa   : > { %3088 = vmatpush.msra.mxu2 %v2807_v59  ;;  %3108 = vmatpush.msra.mxu3 %v2823_v61  ;;  %v2888_v59 = vld [vmem:[#allocation11 + $0x390] sm:$0xff]  ;;  %v2839_v61 = vld [vmem:[#allocation11 + $0x208] sm:$0xff] }
 0x4ab   : > { %3626 = vpow2.f32 %v2735_v6  ;;  %v2822_v6 = vld [vmem:[#allocation11 + $0x180] sm:$0xff]  ;;  %3049 = vmatpush.msra.mxu0 %v2774_v1  ;;  %3069 = vmatpush.msra.mxu1 %v2790_v2  ;;  %v2871_v1 = vld [vmem:[#allocation11 + $0x308] sm:$0xff] }
 0x4ac   : > { %3089 = vmatpush.msra.mxu2 %v2806_v45  ;;  %3109 = vmatpush.msra.mxu3 %v2822_v6  ;;  %v2887_v2 = vld [vmem:[#allocation11 + $0x388] sm:$0xff]  ;;  %v2854_v45 = vld [vmem:[#allocation11 + $0x280] sm:$0xff] }
 0x4ad   : > { %3114 = vmatpush.msrb.mxu0 %v2853_v62  ;;  %3134 = vmatpush.msrb.mxu1 %v2869_v46  ;;  %v2886_v6 = vld [vmem:[#allocation11 + $0x380] sm:$0xff]  ;;  %v3679_v46 = vld [vmem:[%s4129_s13] sm:$0xff] }
 0x4ae   : > { %3154 = vmatpush.msrb.mxu2 %v2885_v9  ;;  %3174 = vmatpush.msrb.mxu3 %v2901_v63  ;;  %v3680_v63 = vld [vmem:[%s4129_s13 + $0x8] sm:$0xff] }
 0x4af   : > { %3115 = vmatpush.msrb.mxu0 %v2852_v48  ;;  %3135 = vmatpush.msrb.mxu1 %v2868_v47  ;;  %v3681_v47 = vld [vmem:[%s4129_s13 + $0x10] sm:$0xff] }
 0x4b0   : > { %3155 = vmatpush.msrb.mxu2 %v2884_v3  ;;  %3175 = vmatpush.msrb.mxu3 %v2900_v0  ;;  %v3682_v0 = vld [vmem:[%s4129_s13 + $0x18] sm:$0xff] }
 0x4b1   : > { %v4241_v51 = vpop.eup %3626  ;;  %3116 = vmatpush.msrb.mxu0 %v2851_v10  ;;  %3136 = vmatpush.msrb.mxu1 %v2867_v49  ;;  %v2917_v49 = vld [vmem:[#allocation11 + $0x478] sm:$0xff] }
 0x4b2   : > { %3628 = vrcp.f32 %v4241_v51  ;;  %v2749_v29 = vand.u32 2147483648, %v4241_v51  ;;  %v2747_v33 = vand.u32 2147483647, %v4241_v51  ;;  %vm2743_vm1 = vweird.f32 %v4241_v51  ;;  %3156 = vmatpush.msrb.mxu2 %v2883_v50  ;;  %3176 = vmatpush.msrb.mxu3 %v2899_v4  ;;  %v2933_v50 = vld [vmem:[#allocation11 + $0x4f8] sm:$0xff] }
 0x4b3   : > { %3117 = vmatpush.msrb.mxu0 %v2850_v7  ;;  %3137 = vmatpush.msrb.mxu1 %v2866_v13  ;;  %v2949_v4 = vld [vmem:[#allocation11 + $0x578] sm:$0xff]  ;;  %v2916_v13 = vld [vmem:[#allocation11 + $0x470] sm:$0xff] }
 0x4b4   : > { %v2750_v58 = vor.u32 1.1754944e-38, %v2749_v29  ;;  %vm2748_vm3 = vcmp.eq.f32.partialorder %v2747_v33, 8.507059e+37  ;;  %3157 = vmatpush.msrb.mxu2 %v2882_v53  ;;  %3177 = vmatpush.msrb.mxu3 %v2898_v14  ;;  %v2875_v29 = vld [vmem:[#allocation11 + $0x328] sm:$0xff]  ;;  %v2874_v33 = vld [vmem:[#allocation11 + $0x320] sm:$0xff]  ;;  %v2965_v7 = vld [vmem:[#allocation11 + $0x5f8] sm:$0xff] }
 0x4b5   : > { %3138 = vmatpush.msrb.mxu1 %v2865_v11  ;;  %v2932_v53 = vld [vmem:[#allocation11 + $0x4f0] sm:$0xff]  ;;  %v2915_v11 = vld [vmem:[#allocation11 + $0x468] sm:$0xff] }
 0x4b6   : > { %3158 = vmatpush.msrb.mxu2 %v2881_v15  ;;  %3178 = vmatpush.msrb.mxu3 %v2897_v17  ;;  %v2948_v14 = vld [vmem:[#allocation11 + $0x570] sm:$0xff]  ;;  %v2931_v15 = vld [vmem:[#allocation11 + $0x4e8] sm:$0xff] }
 0x4b7   : > { %3139 = vmatpush.msrb.mxu1 %v2864_v36  ;;  %v2947_v17 = vld [vmem:[#allocation11 + $0x568] sm:$0xff]  ;;  %v2914_v36 = vld [vmem:[#allocation11 + $0x460] sm:$0xff] }
 0x4b8   : > { %v3629_v22 = vpop.eup %3628  ;;  %3159 = vmatpush.msrb.mxu2 %v2880_v8  ;;  %3179 = vmatpush.msrb.mxu3 %v2896_v18  ;;  %v2930_v8 = vld [vmem:[#allocation11 + $0x4e0] sm:$0xff] }
 0x4b9   : > { %v2739_v57 = vmul.f32 %v3629_v22, %v4241_v51  ;;  %vm2744_vm0 = vweird.f32 %v3629_v22  ;;  %3140 = vmatpush.msrb.mxu1 %v2863_v37  ;;  %v2946_v18 = vld [vmem:[#allocation11 + $0x560] sm:$0xff]  ;;  %v3683_v37 = vld [vmem:[%s4129_s13 + $0x20] sm:$0xff] }
 0x4ba   : > { %vm2745_vm2 = vmor %vm2743_vm1, %vm2744_vm0  ;;  %3160 = vmatpush.msrb.mxu2 %v2879_v55  ;;  %3180 = vmatpush.msrb.mxu3 %v2895_v12  ;;  %v3684_v12 = vld [vmem:[%s4129_s13 + $0x28] sm:$0xff] }
 0x4bb   : > { %v2740_v26 = vsub.f32 1.0, %v2739_v57  ;;  %v2877_v57 = vld [vmem:[#allocation11 + $0x338] sm:$0xff]  ;;  %3141 = vmatpush.msrb.mxu1 %v2862_v20  ;;  %v3685_v20 = vld [vmem:[%s4129_s13 + $0x30] sm:$0xff] }
 0x4bc   : > { %3161 = vmatpush.msrb.mxu2 %v2878_v38 }
 0x4bd   : > { %v2741_v32 = vmul.f32 %v3629_v22, %v2740_v26  ;;  %3142 = vmatpush.msrb.mxu1 %v2861_v23  ;;  %v2892_v26 = vld [vmem:[#allocation11 + $0x3b0] sm:$0xff]  ;;  %v2913_v23 = vld [vmem:[#allocation11 + $0x458] sm:$0xff] }
 0x4be   : > { %3162 = vmatpush.msrb.mxu2 %v2877_v57  ;;  %v2929_v57 = vld [vmem:[#allocation11 + $0x4d8] sm:$0xff] }
 0x4bf   : > { %v2742_v42 = vadd.f32 %v3629_v22, %v2741_v32  ;;  %3143 = vmatpush.msrb.mxu1 %v2860_v40  ;;  %v2858_v32 = vld [vmem:[#allocation11 + $0x2a0] sm:$0xff]  ;;  %v2912_v40 = vld [vmem:[#allocation11 + $0x450] sm:$0xff] }
 0x4c0   : > { %3163 = vmatpush.msrb.mxu2 %v2876_v21  ;;  %v2928_v21 = vld [vmem:[#allocation11 + $0x4d0] sm:$0xff] }
 0x4c1   : > { %v2746_v43 = vsel %vm2745_vm2, %v3629_v22, %v2742_v42  ;;  %v2894_v22 = vld [vmem:[#allocation11 + $0x3c0] sm:$0xff]  ;;  %3144 = vmatpush.msrb.mxu1 %v2859_v28  ;;  %v2889_v42 = vld [vmem:[#allocation11 + $0x398] sm:$0xff]  ;;  %v2911_v28 = vld [vmem:[#allocation11 + $0x448] sm:$0xff] }
 0x4c2   : > { %v2751_v60 = vsel %vm2748_vm3, %v2750_v58, %v2746_v43  ;;  %3181 = vmatpush.msrb.mxu3 %v2894_v22  ;;  %3164 = vmatpush.msrb.mxu2 %v2875_v29  ;;  %v2872_v58 = vld [vmem:[#allocation11 + $0x310] sm:$0xff]  ;;  %v2855_v43 = vld [vmem:[#allocation11 + $0x288] sm:$0xff] }
 0x4c3   : > { %v2752_v5 = vmul.f32 %v4241_v51, %v2751_v60  ;;  %v2849_v51 = vld [vmem:[#allocation11 + $0x258] sm:$0xff]  ;;  %3145 = vmatpush.msrb.mxu1 %v2858_v32  ;;  %v2838_v60 = vld [vmem:[#allocation11 + $0x200] sm:$0xff]  ;;  %v3686_v22 = vld [vmem:[%s4129_s13 + $0x38] sm:$0xff] }
 0x4c4   : > { %3118 = vmatpush.msrb.mxu0 %v2849_v51  ;;  %3182 = vmatpush.msrb.mxu3 %v2893_v24  ;;  %v2964_v51 = vld [vmem:[#allocation11 + $0x5f0] sm:$0xff]  ;;  %v2945_v24 = vld [vmem:[#allocation11 + $0x558] sm:$0xff]  ;;  %v2927_v29 = vld [vmem:[#allocation11 + $0x4c8] sm:$0xff] }
 0x4c5   : > { %2755 = vperm.xlu0 %3615, %v2752_v5   ;;  %3165 = vmatpush.msrb.mxu2 %v2874_v33  ;;  %v2870_v5 = vld [vmem:[#allocation11 + $0x300] sm:$0xff] }
 0x4c6   : > { %3119 = vmatpush.msrb.mxu0 %v2848_v52  ;;  %3183 = vmatpush.msrb.mxu3 %v2892_v26  ;;  %v2963_v52 = vld [vmem:[#allocation11 + $0x5e8] sm:$0xff]  ;;  %v2944_v26 = vld [vmem:[#allocation11 + $0x550] sm:$0xff]  ;;  %v2910_v32 = vld [vmem:[#allocation11 + $0x440] sm:$0xff] }
 0x4c7   : > { %3146 = vmatpush.msrb.mxu1 %v2857_v39  ;;  %3166 = vmatpush.msrb.mxu2 %v2873_v41  ;;  %v2926_v33 = vld [vmem:[#allocation11 + $0x4c0] sm:$0xff]  ;;  %v2909_v39 = vld [vmem:[#allocation11 + $0x438] sm:$0xff] }
 0x4c8   : > { %3120 = vmatpush.msrb.mxu0 %v2847_v54  ;;  %3184 = vmatpush.msrb.mxu3 %v2891_v30  ;;  %v2962_v54 = vld [vmem:[#allocation11 + $0x5e0] sm:$0xff]  ;;  %v2943_v30 = vld [vmem:[#allocation11 + $0x548] sm:$0xff]  ;;  %v2925_v41 = vld [vmem:[#allocation11 + $0x4b8] sm:$0xff] }
 0x4c9   : > { %3147 = vmatpush.msrb.mxu1 %v2856_v56  ;;  %3167 = vmatpush.msrb.mxu2 %v2872_v58  ;;  %v2908_v56 = vld [vmem:[#allocation11 + $0x430] sm:$0xff] }
 0x4ca   : > { %3121 = vmatpush.msrb.mxu0 %v2846_v19  ;;  %3185 = vmatpush.msrb.mxu3 %v2890_v34  ;;  %v2942_v34 = vld [vmem:[#allocation11 + $0x540] sm:$0xff]  ;;  %v2924_v58 = vld [vmem:[#allocation11 + $0x4b0] sm:$0xff] }
 0x4cb   : > { %3148 = vmatpush.msrb.mxu1 %v2855_v43  ;;  %3168 = vmatpush.msrb.mxu2 %v2871_v1  ;;  %v2907_v43 = vld [vmem:[#allocation11 + $0x428] sm:$0xff] }
 0x4cc   : > { %3122 = vmatpush.msrb.mxu0 %v2845_v16  ;;  %3186 = vmatpush.msrb.mxu3 %v2889_v42  ;;  %v2941_v42 = vld [vmem:[#allocation11 + $0x538] sm:$0xff]  ;;  %v2923_v1 = vld [vmem:[#allocation11 + $0x4a8] sm:$0xff] }
 0x4cd   : > { %3149 = vmatpush.msrb.mxu1 %v2854_v45  ;;  %3169 = vmatpush.msrb.mxu2 %v2870_v5  ;;  %v2906_v45 = vld [vmem:[#allocation11 + $0x420] sm:$0xff] }
 0x4ce   : > { %3123 = vmatpush.msrb.mxu0 %v2844_v25  ;;  %3187 = vmatpush.msrb.mxu3 %v2888_v59  ;;  %v2961_v25 = vld [vmem:[#allocation11 + $0x5d8] sm:$0xff]  ;;  %v2940_v59 = vld [vmem:[#allocation11 + $0x530] sm:$0xff]  ;;  %v2922_v5 = vld [vmem:[#allocation11 + $0x4a0] sm:$0xff] }
 0x4d0   : > { %3124 = vmatpush.msrb.mxu0 %v2843_v27  ;;  %3188 = vmatpush.msrb.mxu3 %v2887_v2  ;;  %v2960_v27 = vld [vmem:[#allocation11 + $0x5d0] sm:$0xff]  ;;  %v2939_v2 = vld [vmem:[#allocation11 + $0x528] sm:$0xff] }
 0x4d2   : > { %3125 = vmatpush.msrb.mxu0 %v2842_v31  ;;  %3189 = vmatpush.msrb.mxu3 %v2886_v6  ;;  %v2959_v31 = vld [vmem:[#allocation11 + $0x5c8] sm:$0xff]  ;;  %v2938_v6 = vld [vmem:[#allocation11 + $0x520] sm:$0xff] }
 0x4d4   : > { %3126 = vmatpush.msrb.mxu0 %v2841_v35  ;;  %v2958_v35 = vld [vmem:[#allocation11 + $0x5c0] sm:$0xff] }
 0x4d6   : > { %3127 = vmatpush.msrb.mxu0 %v2840_v44  ;;  %v2957_v44 = vld [vmem:[#allocation11 + $0x5b8] sm:$0xff] }
 0x4d8   : > { %3128 = vmatpush.msrb.mxu0 %v2839_v61  ;;  %v2956_v61 = vld [vmem:[#allocation11 + $0x5b0] sm:$0xff] }
 0x4da   : > { %3129 = vmatpush.msrb.mxu0 %v2838_v60  ;;  %v2955_v60 = vld [vmem:[#allocation11 + $0x5a8] sm:$0xff] }
 0x537   : > { %v4250_v62 = vpop.permute.xlu0 %2755 }
 0x538   : > { %v2758_v9 = vmul.f32 %v3679_v46, %v4250_v62  ;;  %v2759_v48 = vmul.f32 %v3680_v63, %v4250_v62  ;;  %v2760_v3 = vmul.f32 %v3681_v47, %v4250_v62  ;;  %v2761_v10 = vmul.f32 %v3682_v0, %v4250_v62  ;;  %v2954_v46 = vld [vmem:[#allocation11 + $0x5a0] sm:$0xff]  ;;  %v2921_v63 = vld [vmem:[#allocation11 + $0x498] sm:$0xff]  ;;  %v2920_v0 = vld [vmem:[#allocation11 + $0x490] sm:$0xff] }
 0x539   : > { %v2762_v55 = vmul.f32 %v3683_v37, %v4250_v62  ;;  %v2763_v19 = vmul.f32 %v3684_v12, %v4250_v62  ;;  %v2764_v38 = vmul.f32 %v3685_v20, %v4250_v62  ;;  %v2765_v16 = vmul.f32 %v3686_v22, %v4250_v62  ;;  %v2953_v47 = vld [vmem:[#allocation11 + $0x598] sm:$0xff]  ;;  %v2996_v22 = vld [vmem:[#allocation11 + $0x6f0] sm:$0xff] }
 0x53a   : > { %3050 = vmatmul.f32.vlgmr.msra.gmra.mxu0 %v2758_v9  ;;  %3070 = vmatmul.f32.vlgmr.msra.gmra.mxu1 %v2759_v48  ;;  %v2905_v9 = vld [vmem:[#allocation11 + $0x418] sm:$0xff] }
 0x53b   : > { %3090 = vmatmul.f32.vlgmr.msra.gmra.mxu2 %v2760_v3  ;;  %3110 = vmatmul.f32.vlgmr.msra.gmra.mxu3 %v2761_v10  ;;  %v2937_v48 = vld [vmem:[#allocation11 + $0x518] sm:$0xff]  ;;  %v2904_v3 = vld [vmem:[#allocation11 + $0x410] sm:$0xff] }
 0x53c   : > { %3194 = vmatpush.msra.mxu0 %v2917_v49  ;;  %3214 = vmatpush.msra.mxu1 %v2933_v50  ;;  %v2936_v10 = vld [vmem:[#allocation11 + $0x510] sm:$0xff]  ;;  %v2903_v50 = vld [vmem:[#allocation11 + $0x408] sm:$0xff]  ;;  %v2997_v12 = vld [vmem:[#allocation11 + $0x6f8] sm:$0xff] }
 0x53d   : > { %3234 = vmatpush.msra.mxu2 %v2949_v4  ;;  %3254 = vmatpush.msra.mxu3 %v2965_v7  ;;  %v2952_v49 = vld [vmem:[#allocation11 + $0x590] sm:$0xff]  ;;  %v2919_v4 = vld [vmem:[#allocation11 + $0x488] sm:$0xff]  ;;  %v3029_v20 = vld [vmem:[#allocation11 + $0x7f8] sm:$0xff] }
 0x53e   : > { %3195 = vmatpush.msra.mxu0 %v2916_v13  ;;  %3215 = vmatpush.msra.mxu1 %v2932_v53  ;;  %v2935_v7 = vld [vmem:[#allocation11 + $0x508] sm:$0xff]  ;;  %v2902_v53 = vld [vmem:[#allocation11 + $0x400] sm:$0xff] }
 0x53f   : > { %3235 = vmatpush.msra.mxu2 %v2948_v14  ;;  %3255 = vmatpush.msra.mxu3 %v2964_v51  ;;  %v2951_v13 = vld [vmem:[#allocation11 + $0x588] sm:$0xff]  ;;  %v2918_v14 = vld [vmem:[#allocation11 + $0x480] sm:$0xff] }
 0x540   : > { %3196 = vmatpush.msra.mxu0 %v2915_v11  ;;  %3216 = vmatpush.msra.mxu1 %v2931_v15  ;;  %v2934_v51 = vld [vmem:[#allocation11 + $0x500] sm:$0xff]  ;;  %v3687_v15 = vld [vmem:[%s4129_s13 + $0x40] sm:$0xff] }
 0x541   : > { %3236 = vmatpush.msra.mxu2 %v2947_v17  ;;  %3256 = vmatpush.msra.mxu3 %v2963_v52  ;;  %v2950_v11 = vld [vmem:[#allocation11 + $0x580] sm:$0xff]  ;;  %v2766_v17 = vmul.f32 %v3687_v15, %v4250_v62  ;;  %v3016_v15 = vld [vmem:[#allocation11 + $0x790] sm:$0xff] }
 0x542   : > { %3197 = vmatpush.msra.mxu0 %v2914_v36  ;;  %3217 = vmatpush.msra.mxu1 %v2930_v8  ;;  %v3688_v52 = vld [vmem:[%s4129_s13 + $0x48] sm:$0xff]  ;;  %v3689_v8 = vld [vmem:[%s4129_s13 + $0x50] sm:$0xff] }
 0x543   : > { %3237 = vmatpush.msra.mxu2 %v2946_v18  ;;  %3257 = vmatpush.msra.mxu3 %v2962_v54  ;;  %v2767_v36 = vmul.f32 %v3688_v52, %v4250_v62  ;;  %v2768_v18 = vmul.f32 %v3689_v8, %v4250_v62  ;;  %v3690_v54 = vld [vmem:[%s4129_s13 + $0x58] sm:$0xff]  ;;  %v2983_v52 = vld [vmem:[#allocation11 + $0x688] sm:$0xff] }
 0x544   : > { %3130 = vmatmul.f32.vlgmr.msrb.gmra.mxu0 %v2762_v55  ;;  %3150 = vmatmul.f32.vlgmr.msrb.gmra.mxu1 %v2763_v19  ;;  %v2769_v37 = vmul.f32 %v3690_v54, %v4250_v62  ;;  %v2981_v55 = vld [vmem:[#allocation11 + $0x678] sm:$0xff]  ;;  %v3015_v8 = vld [vmem:[#allocation11 + $0x788] sm:$0xff]  ;;  %v2982_v54 = vld [vmem:[#allocation11 + $0x680] sm:$0xff] }
 0x545   : > { %3170 = vmatmul.f32.vlgmr.msrb.gmra.mxu2 %v2764_v38  ;;  %3190 = vmatmul.f32.vlgmr.msrb.gmra.mxu3 %v2765_v16  ;;  %v3013_v19 = vld [vmem:[#allocation11 + $0x778] sm:$0xff]  ;;  %v2980_v38 = vld [vmem:[#allocation11 + $0x670] sm:$0xff] }
 0x546   : > { %3198 = vmatpush.msra.mxu0 %v2913_v23  ;;  %3218 = vmatpush.msra.mxu1 %v2929_v57  ;;  %v3012_v16 = vld [vmem:[#allocation11 + $0x770] sm:$0xff]  ;;  %v2979_v57 = vld [vmem:[#allocation11 + $0x668] sm:$0xff] }
 0x547   : > { %3238 = vmatpush.msra.mxu2 %v2945_v24  ;;  %3258 = vmatpush.msra.mxu3 %v2961_v25  ;;  %v3028_v23 = vld [vmem:[#allocation11 + $0x7f0] sm:$0xff]  ;;  %v2995_v24 = vld [vmem:[#allocation11 + $0x6e8] sm:$0xff] }
 0x548   : > { %3199 = vmatpush.msra.mxu0 %v2912_v40  ;;  %3219 = vmatpush.msra.mxu1 %v2928_v21  ;;  %v3011_v25 = vld [vmem:[#allocation11 + $0x768] sm:$0xff]  ;;  %v2978_v21 = vld [vmem:[#allocation11 + $0x660] sm:$0xff] }
 0x549   : > { %3239 = vmatpush.msra.mxu2 %v2944_v26  ;;  %3259 = vmatpush.msra.mxu3 %v2960_v27  ;;  %v3027_v40 = vld [vmem:[#allocation11 + $0x7e8] sm:$0xff]  ;;  %v2994_v26 = vld [vmem:[#allocation11 + $0x6e0] sm:$0xff] }
 0x54a   : > { %3200 = vmatpush.msra.mxu0 %v2911_v28  ;;  %3220 = vmatpush.msra.mxu1 %v2927_v29  ;;  %v3010_v27 = vld [vmem:[#allocation11 + $0x760] sm:$0xff]  ;;  %v2977_v29 = vld [vmem:[#allocation11 + $0x658] sm:$0xff] }
 0x54b   : > { %3240 = vmatpush.msra.mxu2 %v2943_v30  ;;  %3260 = vmatpush.msra.mxu3 %v2959_v31  ;;  %v3026_v28 = vld [vmem:[#allocation11 + $0x7e0] sm:$0xff]  ;;  %v2993_v30 = vld [vmem:[#allocation11 + $0x6d8] sm:$0xff] }
 0x54c   : > { %3201 = vmatpush.msra.mxu0 %v2910_v32  ;;  %3221 = vmatpush.msra.mxu1 %v2926_v33  ;;  %v3009_v31 = vld [vmem:[#allocation11 + $0x758] sm:$0xff]  ;;  %v2976_v33 = vld [vmem:[#allocation11 + $0x650] sm:$0xff] }
 0x54d   : > { %3241 = vmatpush.msra.mxu2 %v2942_v34  ;;  %3261 = vmatpush.msra.mxu3 %v2958_v35  ;;  %v3025_v32 = vld [vmem:[#allocation11 + $0x7d8] sm:$0xff]  ;;  %v2992_v34 = vld [vmem:[#allocation11 + $0x6d0] sm:$0xff] }
 0x54e   : > { %3202 = vmatpush.msra.mxu0 %v2909_v39  ;;  %3222 = vmatpush.msra.mxu1 %v2925_v41  ;;  %v3008_v35 = vld [vmem:[#allocation11 + $0x750] sm:$0xff]  ;;  %v2975_v41 = vld [vmem:[#allocation11 + $0x648] sm:$0xff] }
 0x54f   : > { %3242 = vmatpush.msra.mxu2 %v2941_v42  ;;  %3262 = vmatpush.msra.mxu3 %v2957_v44  ;;  %v3024_v39 = vld [vmem:[#allocation11 + $0x7d0] sm:$0xff]  ;;  %v2991_v42 = vld [vmem:[#allocation11 + $0x6c8] sm:$0xff] }
 0x550   : > { %3203 = vmatpush.msra.mxu0 %v2908_v56  ;;  %3223 = vmatpush.msra.mxu1 %v2924_v58  ;;  %v3007_v44 = vld [vmem:[#allocation11 + $0x748] sm:$0xff]  ;;  %v2974_v58 = vld [vmem:[#allocation11 + $0x640] sm:$0xff] }
 0x551   : > { %3243 = vmatpush.msra.mxu2 %v2940_v59  ;;  %3263 = vmatpush.msra.mxu3 %v2956_v61  ;;  %v3023_v56 = vld [vmem:[#allocation11 + $0x7c8] sm:$0xff]  ;;  %v2990_v59 = vld [vmem:[#allocation11 + $0x6c0] sm:$0xff] }
 0x552   : > { %3204 = vmatpush.msra.mxu0 %v2907_v43  ;;  %3224 = vmatpush.msra.mxu1 %v2923_v1  ;;  %v3006_v61 = vld [vmem:[#allocation11 + $0x740] sm:$0xff]  ;;  %v2973_v1 = vld [vmem:[#allocation11 + $0x638] sm:$0xff] }
 0x553   : > { %3244 = vmatpush.msra.mxu2 %v2939_v2  ;;  %3264 = vmatpush.msra.mxu3 %v2955_v60  ;;  %v3022_v43 = vld [vmem:[#allocation11 + $0x7c0] sm:$0xff]  ;;  %v2989_v2 = vld [vmem:[#allocation11 + $0x6b8] sm:$0xff] }
 0x554   : > { %3205 = vmatpush.msra.mxu0 %v2906_v45  ;;  %3225 = vmatpush.msra.mxu1 %v2922_v5  ;;  %v3005_v60 = vld [vmem:[#allocation11 + $0x738] sm:$0xff]  ;;  %v2972_v5 = vld [vmem:[#allocation11 + $0x630] sm:$0xff] }
 0x555   : > { %3245 = vmatpush.msra.mxu2 %v2938_v6  ;;  %3265 = vmatpush.msra.mxu3 %v2954_v46  ;;  %v3021_v45 = vld [vmem:[#allocation11 + $0x7b8] sm:$0xff]  ;;  %v2988_v6 = vld [vmem:[#allocation11 + $0x6b0] sm:$0xff] }
 0x556   : > { %3206 = vmatpush.msra.mxu0 %v2905_v9  ;;  %3226 = vmatpush.msra.mxu1 %v2921_v63  ;;  %v3004_v46 = vld [vmem:[#allocation11 + $0x730] sm:$0xff]  ;;  %v2971_v63 = vld [vmem:[#allocation11 + $0x628] sm:$0xff] }
 0x557   : > { %3246 = vmatpush.msra.mxu2 %v2937_v48  ;;  %3266 = vmatpush.msra.mxu3 %v2953_v47  ;;  %v3020_v9 = vld [vmem:[#allocation11 + $0x7b0] sm:$0xff]  ;;  %v2987_v48 = vld [vmem:[#allocation11 + $0x6a8] sm:$0xff] }
 0x558   : > { %3207 = vmatpush.msra.mxu0 %v2904_v3  ;;  %3227 = vmatpush.msra.mxu1 %v2920_v0  ;;  %v3003_v47 = vld [vmem:[#allocation11 + $0x728] sm:$0xff]  ;;  %v2970_v0 = vld [vmem:[#allocation11 + $0x620] sm:$0xff] }
 0x559   : > { %3247 = vmatpush.msra.mxu2 %v2936_v10  ;;  %3267 = vmatpush.msra.mxu3 %v2952_v49  ;;  %v3019_v3 = vld [vmem:[#allocation11 + $0x7a8] sm:$0xff]  ;;  %v2986_v10 = vld [vmem:[#allocation11 + $0x6a0] sm:$0xff] }
 0x55a   : > { %3208 = vmatpush.msra.mxu0 %v2903_v50  ;;  %3228 = vmatpush.msra.mxu1 %v2919_v4  ;;  %v3002_v49 = vld [vmem:[#allocation11 + $0x720] sm:$0xff]  ;;  %v2969_v4 = vld [vmem:[#allocation11 + $0x618] sm:$0xff] }
 0x55b   : > { %3248 = vmatpush.msra.mxu2 %v2935_v7  ;;  %3268 = vmatpush.msra.mxu3 %v2951_v13  ;;  %v3018_v50 = vld [vmem:[#allocation11 + $0x7a0] sm:$0xff]  ;;  %v2985_v7 = vld [vmem:[#allocation11 + $0x698] sm:$0xff] }
 0x55c   : > { %3209 = vmatpush.msra.mxu0 %v2902_v53  ;;  %3229 = vmatpush.msra.mxu1 %v2918_v14  ;;  %v3001_v13 = vld [vmem:[#allocation11 + $0x718] sm:$0xff]  ;;  %v2968_v14 = vld [vmem:[#allocation11 + $0x610] sm:$0xff] }
 0x55d   : > { %3249 = vmatpush.msra.mxu2 %v2934_v51  ;;  %3269 = vmatpush.msra.mxu3 %v2950_v11  ;;  %v3017_v53 = vld [vmem:[#allocation11 + $0x798] sm:$0xff]  ;;  %v2984_v51 = vld [vmem:[#allocation11 + $0x690] sm:$0xff] }
 0x55e   : > { %3210 = vmatmul.f32.vlgmr.msra.gmra.mxu0 %v2766_v17  ;;  %3230 = vmatmul.f32.vlgmr.msra.gmra.mxu1 %v2767_v36  ;;  %v3000_v11 = vld [vmem:[#allocation11 + $0x710] sm:$0xff]  ;;  %v2967_v17 = vld [vmem:[#allocation11 + $0x608] sm:$0xff] }
 0x55f   : > { %3250 = vmatmul.f32.vlgmr.msra.gmra.mxu2 %v2768_v18  ;;  %3270 = vmatmul.f32.vlgmr.msra.gmra.mxu3 %v2769_v37  ;;  %v2999_v36 = vld [vmem:[#allocation11 + $0x708] sm:$0xff]  ;;  %v2966_v18 = vld [vmem:[#allocation11 + $0x600] sm:$0xff] }
 0x560   : > { %3274 = vmatpush.msrb.mxu0 %v2981_v55  ;;  %3294 = vmatpush.msrb.mxu1 %v2997_v12  ;;  %v2998_v37 = vld [vmem:[#allocation11 + $0x700] sm:$0xff]  ;;  %v3691_v12 = vld [vmem:[%s4129_s13 + $0x60] sm:$0xff] }
 0x561   : > { %3314 = vmatpush.msrb.mxu2 %v3013_v19  ;;  %3334 = vmatpush.msrb.mxu3 %v3029_v20  ;;  %v3014_v55 = vld [vmem:[#allocation11 + $0x780] sm:$0xff]  ;;  %v2770_v19 = vmul.f32 %v3691_v12, %v4250_v62 }
 0x562   : > { %3275 = vmatpush.msrb.mxu0 %v2980_v38  ;;  %3295 = vmatpush.msrb.mxu1 %v2996_v22  ;;  %v3692_v20 = vld [vmem:[%s4129_s13 + $0x68] sm:$0xff]  ;;  %v3693_v22 = vld [vmem:[%s4129_s13 + $0x70] sm:$0xff] }
 0x563   : > { %3315 = vmatpush.msrb.mxu2 %v3012_v16  ;;  %3335 = vmatpush.msrb.mxu3 %v3028_v23  ;;  %v2771_v38 = vmul.f32 %v3692_v20, %v4250_v62  ;;  %v2772_v16 = vmul.f32 %v3693_v22, %v4250_v62  ;;  %v3694_v23 = vld [vmem:[%s4129_s13 + $0x78] sm:$0xff] }
 0x564   : > { %3276 = vmatpush.msrb.mxu0 %v2979_v57  ;;  %3296 = vmatpush.msrb.mxu1 %v2995_v24  ;;  %v2773_v57 = vmul.f32 %v3694_v23, %v4250_v62  ;;  %v3617_v24 = vld [vmem:[#allocation12] ss:$0 sm:$0xff] }
 0x565   : > { %3316 = vmatpush.msrb.mxu2 %v3011_v25  ;;  %3336 = vmatpush.msrb.mxu3 %v3027_v40 }
 0x566   : > { %3277 = vmatpush.msrb.mxu0 %v2978_v21  ;;  %3297 = vmatpush.msrb.mxu1 %v2994_v26 }
 0x567   : > { %3317 = vmatpush.msrb.mxu2 %v3010_v27  ;;  %3337 = vmatpush.msrb.mxu3 %v3026_v28 }
 0x568   : > { %3278 = vmatpush.msrb.mxu0 %v2977_v29  ;;  %3298 = vmatpush.msrb.mxu1 %v2993_v30 }
 0x569   : > { %3318 = vmatpush.msrb.mxu2 %v3009_v31  ;;  %3338 = vmatpush.msrb.mxu3 %v3025_v32 }
 0x56a   : > { %3279 = vmatpush.msrb.mxu0 %v2976_v33  ;;  %3299 = vmatpush.msrb.mxu1 %v2992_v34 }
 0x56b   : > { %3319 = vmatpush.msrb.mxu2 %v3008_v35  ;;  %3339 = vmatpush.msrb.mxu3 %v3024_v39 }
 0x56c   : > { %3280 = vmatpush.msrb.mxu0 %v2975_v41  ;;  %3300 = vmatpush.msrb.mxu1 %v2991_v42 }
 0x56d   : > { %3320 = vmatpush.msrb.mxu2 %v3007_v44  ;;  %3340 = vmatpush.msrb.mxu3 %v3023_v56 }
 0x56e   : > { %3281 = vmatpush.msrb.mxu0 %v2974_v58  ;;  %3301 = vmatpush.msrb.mxu1 %v2990_v59 }
 0x56f   : > { %3321 = vmatpush.msrb.mxu2 %v3006_v61  ;;  %3341 = vmatpush.msrb.mxu3 %v3022_v43 }
 0x570   : > { %3282 = vmatpush.msrb.mxu0 %v2973_v1  ;;  %3302 = vmatpush.msrb.mxu1 %v2989_v2 }
 0x571   : > { %3322 = vmatpush.msrb.mxu2 %v3005_v60  ;;  %3342 = vmatpush.msrb.mxu3 %v3021_v45 }
 0x572   : > { %3283 = vmatpush.msrb.mxu0 %v2972_v5  ;;  %3303 = vmatpush.msrb.mxu1 %v2988_v6 }
 0x573   : > { %3323 = vmatpush.msrb.mxu2 %v3004_v46  ;;  %3343 = vmatpush.msrb.mxu3 %v3020_v9 }
 0x574   : > { %3284 = vmatpush.msrb.mxu0 %v2971_v63  ;;  %3304 = vmatpush.msrb.mxu1 %v2987_v48 }
 0x575   : > { %3324 = vmatpush.msrb.mxu2 %v3003_v47  ;;  %3344 = vmatpush.msrb.mxu3 %v3019_v3 }
 0x576   : > { %3285 = vmatpush.msrb.mxu0 %v2970_v0  ;;  %3305 = vmatpush.msrb.mxu1 %v2986_v10 }
 0x577   : > { %3325 = vmatpush.msrb.mxu2 %v3002_v49  ;;  %3345 = vmatpush.msrb.mxu3 %v3018_v50 }
 0x578   : > { %3286 = vmatpush.msrb.mxu0 %v2969_v4  ;;  %3306 = vmatpush.msrb.mxu1 %v2985_v7 }
 0x579   : > { %3326 = vmatpush.msrb.mxu2 %v3001_v13  ;;  %3346 = vmatpush.msrb.mxu3 %v3017_v53 }
 0x57a   : > { %3287 = vmatpush.msrb.mxu0 %v2968_v14  ;;  %3307 = vmatpush.msrb.mxu1 %v2984_v51 }
 0x57b   : > { %3327 = vmatpush.msrb.mxu2 %v3000_v11  ;;  %3347 = vmatpush.msrb.mxu3 %v3016_v15 }
 0x57c   : > { %3288 = vmatpush.msrb.mxu0 %v2967_v17  ;;  %3308 = vmatpush.msrb.mxu1 %v2983_v52 }
 0x57d   : > { %3328 = vmatpush.msrb.mxu2 %v2999_v36  ;;  %3348 = vmatpush.msrb.mxu3 %v3015_v8 }
 0x57e   : > { %3289 = vmatpush.msrb.mxu0 %v2966_v18  ;;  %3309 = vmatpush.msrb.mxu1 %v2982_v54 }
 0x57f   : > { %3329 = vmatpush.msrb.mxu2 %v2998_v37  ;;  %3349 = vmatpush.msrb.mxu3 %v3014_v55 }
 0x580   : > { %3290 = vmatmul.f32.vlgmr.msrb.gmra.mxu0 %v2770_v19  ;;  %3310 = vmatmul.f32.vlgmr.msrb.gmra.mxu1 %v2771_v38 }
 0x581   : > { %3330 = vmatmul.f32.vlgmr.msrb.gmra.mxu2 %v2772_v16  ;;  %3350 = vmatmul.f32.vlgmr.msrb.gmra.mxu3 %v2773_v57 }
 0x5b7   : > { %v3051_v25 = vpop.f32.mrf.mxu0  ;;  %v3071_v21 = vpop.f32.mrf.mxu1 }
 0x5b8   : > { %v3052_v40 = vadd.f32 %v3617_v24, %v3051_v25 }
 0x5ba   : > { %v3072_v27 = vadd.f32 %v3071_v21, %v3052_v40 }
 0x5be   : > { %v3091_v26 = vpop.f32.mrf.mxu2  ;;  %v3111_v29 = vpop.f32.mrf.mxu3 }
 0x5bf   : > { %v3092_v28 = vadd.f32 %v3091_v26, %v3072_v27 }
 0x5c1   : > { %v3112_v30 = vadd.f32 %v3111_v29, %v3092_v28  ;;  %v3131_v31 = vpop.f32.mrf.mxu0  ;;  %v3151_v33 = vpop.f32.mrf.mxu1 }
 0x5c3   : > { %v3132_v32 = vadd.f32 %v3131_v31, %v3112_v30 }
 0x5c5   : > { %v3152_v34 = vadd.f32 %v3151_v33, %v3132_v32 }
 0x5c8   : > { %v3171_v62 = vpop.f32.mrf.mxu2  ;;  %v3191_v39 = vpop.f32.mrf.mxu3 }
 0x5c9   : > { %v3172_v35 = vadd.f32 %v3171_v62, %v3152_v34 }
 0x5cb   : > { %v3192_v42 = vadd.f32 %v3191_v39, %v3172_v35 }
 0x5db   : > { %v3211_v41 = vpop.f32.mrf.mxu0  ;;  %v3231_v56 = vpop.f32.mrf.mxu1 }
 0x5dc   : > { %v3212_v44 = vadd.f32 %v3211_v41, %v3192_v42 }
 0x5de   : > { %v3232_v59 = vadd.f32 %v3231_v56, %v3212_v44 }
 0x5e2   : > { %v3251_v58 = vpop.f32.mrf.mxu2  ;;  %v3271_v43 = vpop.f32.mrf.mxu3 }
 0x5e3   : > { %v3252_v61 = vadd.f32 %v3251_v58, %v3232_v59 }
 0x5e5   : > { %v3272_v1 = vadd.f32 %v3271_v43, %v3252_v61 }
 0x5fd   : > { %v3291_v2 = vpop.f32.mrf.mxu0  ;;  %v3311_v45 = vpop.f32.mrf.mxu1 }
 0x5fe   : > { %v3292_v60 = vadd.f32 %v3291_v2, %v3272_v1 }
 0x600   : > { %v3312_v5 = vadd.f32 %v3311_v45, %v3292_v60 }
 0x604   : > { %v3331_v6 = vpop.f32.mrf.mxu2  ;;  %v3351_v9 = vpop.f32.mrf.mxu3 }
 0x605   : > { %v3332_v46 = vadd.f32 %v3331_v6, %v3312_v5 }
 0x607   : > { %v3352_v63 = vadd.f32 %v3351_v9, %v3332_v46 }
 0x609   : > { %3354 = vst [vmem:[%s375_s21] sm:$0xff] %v3352_v63 }
 0x60a   : > { %3902 = shalt.err (!%p3899_p9)
}
 0x60b   : > { %3535 = dma.vmem_to_hbm [thread:$0]  (%p4094_p13), %s3369_s23, 128, %s3371_s24, %s3356_s8  }
 0x60c PF: > { %s3382_s30 = sand.u32 1, %s3941_s26   ;;  %p4332_p10 = scmp.ge.s32.totalorder %s3953_s29, 2 }
 0x60d   : > { %s3383_s16 = scalar_lea.sflag [#allocation5], %s3382_s30 }
 0x60e   : > { %p3558_p11 = pnand %p4332_p10, %p4099_p4 }
 0x610   : > { %p3559_p0 = pneg %p3558_p11 }
 0x612   : > { %3936 = dma.done.wait (%p3559_p0), %s3383_s16, 128  }
 0x613   : > { %3938 = vsyncadd (%p3559_p0), %s3383_s16, 4294967168  ;;  %p25_p2 = scmp.ge.s32.totalorder %s4074_s22, 4   ;;  %s4333_s26 = smov %s3945_s27 }
 0x614   : > { %s4334_s27 = smov %s3949_s28  ;;  %s4335_s28 = smov %s4086_s25 }
 0x615   : > { %s4336_s29 = smov %s4074_s22  ;;  %27 = sbr.rel (!%p25_p2) target bundleno = 11 (0xb), region = 113 }
 0x61a   :  { %3389 = vsyncpa [#allocation4], 1 }
 0x61b   :  { %3391 = vsyncpa [#allocation4 + $0x1], 1 }
 0x61c   :  { %3392 = vsyncpa [#allocation7], 1 }
 0x61d   :  { %3393 = vsyncpa [#allocation10], 1 }
 0x61e   :  { %3394 = vsyncpa [#allocation13], 1 }
 0x61f   :  { %3395 = vsyncpa [#allocation5], 1 }
 0x620   :  { %3397 = vsyncpa [#allocation5 + $0x1], 1 }

</bundles_post_ra>
